<compile_context>
chip_gen: v6e
topology: v6e:2x2x1
jax: 0.10.0
libtpu: 0.0.40
codegen_flags: <defaults>
</compile_context>

<pallas_src>
import functools

import jax
import jax.numpy as jnp
from jax import lax
from jax.experimental import pallas as pl
from jax.experimental.pallas import tpu as pltpu


def _residual_stack_kernel(x_ref, w3_ref, w1_ref, o_ref, pad_ref, act_ref,
                           *, num_layers):
    """Fused ResidualStack on a tile of `batch_tile` images (NHWC, channels padded).

    x_ref  : (B, H, W, Cp)        input tile
    w3_ref : (9*Cp, Crh_p)        3x3 conv weights, (dy, dx, c) row-major, lane-padded
    w1_ref : (Crh_p, Cp)          1x1 conv weights, lane-padded
    o_ref  : (B, H, W, Cp)        output tile
    pad_ref: VMEM (B, H+2, W+2, Cp)  zero-padded ReLU(x) scratch
    act_ref: VMEM (B, H, W, Cp)   running activation (f32, resident across layers)
    """
    B, H, W, Cp = x_ref.shape
    M = B * H * W
    Crh_p = w3_ref.shape[1]

    # Zero only the 1-pixel border ring of the padded scratch; the interior is fully
    # overwritten every layer.  Re-zeroed every grid step (no program_id==0 guard:
    # scratch is per-core, and a second TensorCore never sees grid index 0).
    zrow = jnp.zeros((B, 1, W + 2, Cp), jnp.float32)
    pad_ref[:, 0:1, :, :] = zrow
    pad_ref[:, H + 1:H + 2, :, :] = zrow
    zcol = jnp.zeros((B, H + 2, 1, Cp), jnp.float32)
    pad_ref[:, :, 0:1, :] = zcol
    pad_ref[:, :, W + 1:W + 2, :] = zcol

    # Running activation resident in VMEM in f32 across all layers.
    act_ref[...] = x_ref[...].astype(jnp.float32)

    # Static unroll: fine for small L (see TODO at top for deep stacks).
    for _ in range(num_layers):
        h = jnp.maximum(act_ref[...], 0.0)                    # first ReLU  (B,H,W,Cp)
        pad_ref[:, 1:H + 1, 1:W + 1, :] = h

        # 3x3 conv = 9 accumulated MXU matmuls straight from the padded scratch.
        acc = jnp.zeros((M, Crh_p), jnp.float32)
        for dy in range(3):
            for dx in range(3):
                k = dy * 3 + dx
                tap = pad_ref[:, dy:dy + H, dx:dx + W, :].reshape(M, Cp)
                acc = acc + jnp.dot(tap, w3_ref[k * Cp:(k + 1) * Cp, :],
                                    preferred_element_type=jnp.float32)

        h2 = jnp.maximum(acc, 0.0)                            # second ReLU (M, Crh_p)
        delta = jnp.dot(h2, w1_ref[...], preferred_element_type=jnp.float32)
        act_ref[...] = act_ref[...] + delta.reshape(B, H, W, Cp)   # residual add

    # Final stack ReLU.
    o_ref[...] = jnp.maximum(act_ref[...], 0.0).astype(o_ref.dtype)


def residual_stack_forward(x_nchw, w3, w1, num_residual_layers, batch_tile=None):
    """ResidualStack.forward.

    x_nchw: (N, C, H, W); w3: (3, 3, C, Crh) HWIO (no bias); w1: (Crh, C) (no bias).
    """
    N, C, H, W = x_nchw.shape
    Crh = w3.shape[3]

    def _rup(v, m):
        return ((v + m - 1) // m) * m

    Cp = _rup(C, 128)          # lane-dense channel width
    Crh_p = _rup(Crh, 128)     # lane-dense residual-hidden width

    if batch_tile is None:
        # Largest divisor of N that is <= 8 while leaving >= 2 grid steps when possible
        # (fills MXU M = batch_tile*H*W, amortizes per-step overhead, keeps both v7x
        # TensorCores busy).
        limit = max(1, min(8, N // 2)) if N >= 2 else 1
        batch_tile = max(d for d in range(1, limit + 1) if N % d == 0)
    assert N % batch_tile == 0

    # Layout plumbing only (zero padding is exact: zero input channels / hidden units
    # contribute nothing; padded output channels stay 0 and are sliced off below).
    x = jnp.transpose(x_nchw, (0, 2, 3, 1))                        # NCHW -> NHWC
    x = jnp.pad(x, ((0, 0), (0, 0), (0, 0), (0, Cp - C)))
    w3p = jnp.pad(w3, ((0, 0), (0, 0), (0, Cp - C), (0, Crh_p - Crh)))
    w3p = w3p.reshape(9 * Cp, Crh_p)                               # (dy, dx, c) row-major
    w1p = jnp.pad(w1, ((0, Crh_p - Crh), (0, Cp - C)))

    # VMEM budget: double-buffered in/out/weight blocks + persistent scratch + headroom.
    blk_io = batch_tile * H * W * Cp * 4
    blk_w = (9 * Cp * Crh_p + Crh_p * Cp) * 4
    blk_pad = batch_tile * (H + 2) * (W + 2) * Cp * 4
    vmem_bytes = 2 * (2 * blk_io + blk_w) + blk_pad + blk_io
    vmem_limit = int(min(max(2 * vmem_bytes, 16 * 1024 * 1024), 64 * 1024 * 1024))

    kernel = functools.partial(_residual_stack_kernel,
                               num_layers=num_residual_layers)
    out = pl.pallas_call(
        kernel,
        out_shape=jax.ShapeDtypeStruct((N, H, W, Cp), x_nchw.dtype),
        grid_spec=pltpu.PrefetchScalarGridSpec(
            num_scalar_prefetch=0,
            grid=(N // batch_tile,),
            in_specs=[
                pl.BlockSpec((batch_tile, H, W, Cp), lambda n: (n, 0, 0, 0)),
                pl.BlockSpec((9 * Cp, Crh_p), lambda n: (0, 0)),
                pl.BlockSpec((Crh_p, Cp), lambda n: (0, 0)),
            ],
            out_specs=pl.BlockSpec((batch_tile, H, W, Cp), lambda n: (n, 0, 0, 0)),
            scratch_shapes=[
                pltpu.VMEM((batch_tile, H + 2, W + 2, Cp), jnp.float32),  # padded ReLU(x)
                pltpu.VMEM((batch_tile, H, W, Cp), jnp.float32),          # running activation
            ],
        ),
        compiler_params=pltpu.CompilerParams(
            dimension_semantics=("parallel",),
            vmem_limit_bytes=vmem_limit),
    )(x, w3p, w1p)

    out = out[..., :C]                                              # drop padded channels
    return jnp.transpose(out, (0, 3, 1, 2))                         # NHWC -> NCHW


def _reference_forward(x_nchw, w3, w1, num_residual_layers):
    """Pure-JAX reference (mirrors the PyTorch module)."""
    x = jnp.transpose(x_nchw, (0, 2, 3, 1))
    for _ in range(num_residual_layers):
        h = jax.nn.relu(x)
        h = lax.conv_general_dilated(
            h, w3, window_strides=(1, 1), padding="SAME",
            dimension_numbers=("NHWC", "HWIO", "NHWC"))
        h = jax.nn.relu(h)
        h = jnp.einsum("nhwc,cd->nhwd", h, w1)
        x = x + h
    x = jax.nn.relu(x)
    return jnp.transpose(x, (0, 3, 1, 2))


if __name__ == "__main__":
    # Module config (in_channels must equal num_hiddens for the residual add).
    in_channels = 32
    num_hiddens = 32
    num_residual_hiddens = 8
    num_residual_layers = 2

    N, H, W = 4, 8, 8

    key = jax.random.PRNGKey(0)
    kx, k3, k1 = jax.random.split(key, 3)

    x = jax.random.normal(kx, (N, in_channels, H, W), dtype=jnp.float32)

    # Deterministic kaiming-normal-like init (use_kaiming_normal=True).
    fan_in3 = 3 * 3 * in_channels
    w3 = jax.random.normal(k3, (3, 3, in_channels, num_residual_hiddens),
                           dtype=jnp.float32) * jnp.sqrt(2.0 / fan_in3)
    fan_in1 = num_residual_hiddens
    w1 = jax.random.normal(k1, (num_residual_hiddens, num_hiddens),
                           dtype=jnp.float32) * jnp.sqrt(2.0 / fan_in1)

    fwd = jax.jit(residual_stack_forward,
                  static_argnames=("num_residual_layers", "batch_tile"))
    out = fwd(x, w3, w1, num_residual_layers=num_residual_layers)
    out = jax.block_until_ready(out)

    ref = jax.block_until_ready(
        _reference_forward(x, w3, w1, num_residual_layers))

    assert out.shape == (N, in_channels, H, W)
    err = jnp.max(jnp.abs(out - ref))
    assert jnp.allclose(out, ref, atol=1e-4, rtol=1e-4), f"max abs err = {err}"

    print("KERNEL_OK")
</pallas_src>

<mosaic_0001>
module attributes {stable_mosaic.version = 11 : i64} {
  func.func @_residual_stack_kernel(%arg0: i32, %arg1: memref<2x8x8x128xf32, #tpu.memory_space<vmem>>, %arg2: memref<1152x128xf32, #tpu.memory_space<vmem>>, %arg3: memref<128x128xf32, #tpu.memory_space<vmem>>, %arg4: memref<2x8x8x128xf32, #tpu.memory_space<vmem>>, %arg5: memref<2x10x10x128xf32, #tpu.memory_space<vmem>>, %arg6: memref<2x8x8x128xf32, #tpu.memory_space<vmem>>) attributes {dimension_semantics = [#tpu.dimension_semantics<parallel>], iteration_bounds = array<i64: 2>, scalar_prefetch = 0 : i64, scratch_operands = 2 : i64, tpu.core_type = #tpu.core_type<tc>, window_params = [{transform_indices = @transform_0, window_bounds = array<i64: 2, 8, 8, 128>}, {pipeline_mode = #tpu.pipeline_mode<synchronous>, transform_indices = @transform_1, window_bounds = array<i64: 1152, 128>}, {pipeline_mode = #tpu.pipeline_mode<synchronous>, transform_indices = @transform_2, window_bounds = array<i64: 128, 128>}, {transform_indices = @transform_3, window_bounds = array<i64: 2, 8, 8, 128>}]} {
    %cst = arith.constant 0.000000e+00 : f32
    %0 = vector.broadcast %cst : f32 to vector<2x1x10x128xf32>
    %c0 = arith.constant 0 : index
    %c0_0 = arith.constant 0 : index
    %c0_1 = arith.constant 0 : index
    %c0_2 = arith.constant 0 : index
    %1 = vector.load %arg5[%c0, %c0_0, %c0_1, %c0_2] : memref<2x10x10x128xf32, #tpu.memory_space<vmem>>, vector<2x1x10x128xf32>
    tpu.vector_store %arg5[%c0, %c0_0, %c0_1, %c0_2], %0 {strides = array<i32>} : memref<2x10x10x128xf32, #tpu.memory_space<vmem>>, vector<2x1x10x128xf32>,
    %c0_3 = arith.constant 0 : index
    %c9 = arith.constant 9 : index
    %c0_4 = arith.constant 0 : index
    %c0_5 = arith.constant 0 : index
    %2 = vector.load %arg5[%c0_3, %c9, %c0_4, %c0_5] : memref<2x10x10x128xf32, #tpu.memory_space<vmem>>, vector<2x1x10x128xf32>
    tpu.vector_store %arg5[%c0_3, %c9, %c0_4, %c0_5], %0 {strides = array<i32>} : memref<2x10x10x128xf32, #tpu.memory_space<vmem>>, vector<2x1x10x128xf32>,
    %cst_6 = arith.constant 0.000000e+00 : f32
    %3 = vector.broadcast %cst_6 : f32 to vector<2x10x1x128xf32>
    %c0_7 = arith.constant 0 : index
    %c0_8 = arith.constant 0 : index
    %c0_9 = arith.constant 0 : index
    %c0_10 = arith.constant 0 : index
    %4 = vector.load %arg5[%c0_7, %c0_8, %c0_9, %c0_10] : memref<2x10x10x128xf32, #tpu.memory_space<vmem>>, vector<2x10x1x128xf32>
    tpu.vector_store %arg5[%c0_7, %c0_8, %c0_9, %c0_10], %3 {strides = array<i32>} : memref<2x10x10x128xf32, #tpu.memory_space<vmem>>, vector<2x10x1x128xf32>,
    %c0_11 = arith.constant 0 : index
    %c0_12 = arith.constant 0 : index
    %c9_13 = arith.constant 9 : index
    %c0_14 = arith.constant 0 : index
    %5 = vector.load %arg5[%c0_11, %c0_12, %c9_13, %c0_14] : memref<2x10x10x128xf32, #tpu.memory_space<vmem>>, vector<2x10x1x128xf32>
    tpu.vector_store %arg5[%c0_11, %c0_12, %c9_13, %c0_14], %3 {strides = array<i32>} : memref<2x10x10x128xf32, #tpu.memory_space<vmem>>, vector<2x10x1x128xf32>,
    %c0_15 = arith.constant 0 : index
    %c0_16 = arith.constant 0 : index
    %c0_17 = arith.constant 0 : index
    %c0_18 = arith.constant 0 : index
    %6 = vector.load %arg1[%c0_15, %c0_16, %c0_17, %c0_18] : memref<2x8x8x128xf32, #tpu.memory_space<vmem>>, vector<2x8x8x128xf32>
    %c0_19 = arith.constant 0 : index
    %c0_20 = arith.constant 0 : index
    %c0_21 = arith.constant 0 : index
    %c0_22 = arith.constant 0 : index
    %7 = vector.load %arg6[%c0_19, %c0_20, %c0_21, %c0_22] : memref<2x8x8x128xf32, #tpu.memory_space<vmem>>, vector<2x8x8x128xf32>
    tpu.vector_store %arg6[%c0_19, %c0_20, %c0_21, %c0_22], %6 {strides = array<i32>} : memref<2x8x8x128xf32, #tpu.memory_space<vmem>>, vector<2x8x8x128xf32>,
    %c0_23 = arith.constant 0 : index
    %c0_24 = arith.constant 0 : index
    %c0_25 = arith.constant 0 : index
    %c0_26 = arith.constant 0 : index
    %8 = vector.load %arg6[%c0_23, %c0_24, %c0_25, %c0_26] : memref<2x8x8x128xf32, #tpu.memory_space<vmem>>, vector<2x8x8x128xf32>
    %cst_27 = arith.constant 0.000000e+00 : f32
    %9 = vector.broadcast %cst_27 : f32 to vector<2x8x8x128xf32>
    %10 = arith.maximumf %8, %9 : vector<2x8x8x128xf32>
    %c0_28 = arith.constant 0 : index
    %c1 = arith.constant 1 : index
    %c1_29 = arith.constant 1 : index
    %c0_30 = arith.constant 0 : index
    %11 = vector.load %arg5[%c0_28, %c1, %c1_29, %c0_30] : memref<2x10x10x128xf32, #tpu.memory_space<vmem>>, vector<2x8x8x128xf32>
    tpu.vector_store %arg5[%c0_28, %c1, %c1_29, %c0_30], %10 {strides = array<i32>} : memref<2x10x10x128xf32, #tpu.memory_space<vmem>>, vector<2x8x8x128xf32>,
    %cst_31 = arith.constant 0.000000e+00 : f32
    %12 = vector.broadcast %cst_31 : f32 to vector<128x128xf32>
    %c0_32 = arith.constant 0 : index
    %c0_33 = arith.constant 0 : index
    %c0_34 = arith.constant 0 : index
    %c0_35 = arith.constant 0 : index
    %13 = vector.load %arg5[%c0_32, %c0_33, %c0_34, %c0_35] : memref<2x10x10x128xf32, #tpu.memory_space<vmem>>, vector<2x8x8x128xf32>
    %14 = vector.shape_cast %13 : vector<2x8x8x128xf32> to vector<128x128xf32>
    %c0_36 = arith.constant 0 : index
    %c0_37 = arith.constant 0 : index
    %15 = vector.load %arg2[%c0_36, %c0_37] : memref<1152x128xf32, #tpu.memory_space<vmem>>, vector<128x128xf32>
    %cst_38 = arith.constant dense<0.000000e+00> : vector<128x128xf32>
    %16 = tpu.matmul %14, %15, %cst_38 {dimension_numbers = #tpu.dot_dimension_numbers<[1], [0], [0], [1], [0, 0, 1, 1], [], []>} : vector<128x128xf32>, vector<128x128xf32>, vector<128x128xf32> -> vector<128x128xf32>
    %17 = arith.addf %12, %16 : vector<128x128xf32>
    %c0_39 = arith.constant 0 : index
    %c0_40 = arith.constant 0 : index
    %c1_41 = arith.constant 1 : index
    %c0_42 = arith.constant 0 : index
    %18 = vector.load %arg5[%c0_39, %c0_40, %c1_41, %c0_42] : memref<2x10x10x128xf32, #tpu.memory_space<vmem>>, vector<2x8x8x128xf32>
    %19 = vector.shape_cast %18 : vector<2x8x8x128xf32> to vector<128x128xf32>
    %c128 = arith.constant 128 : index
    %c0_43 = arith.constant 0 : index
    %20 = vector.load %arg2[%c128, %c0_43] : memref<1152x128xf32, #tpu.memory_space<vmem>>, vector<128x128xf32>
    %cst_44 = arith.constant dense<0.000000e+00> : vector<128x128xf32>
    %21 = tpu.matmul %19, %20, %cst_44 {dimension_numbers = #tpu.dot_dimension_numbers<[1], [0], [0], [1], [0, 0, 1, 1], [], []>} : vector<128x128xf32>, vector<128x128xf32>, vector<128x128xf32> -> vector<128x128xf32>
    %22 = arith.addf %17, %21 : vector<128x128xf32>
    %c0_45 = arith.constant 0 : index
    %c0_46 = arith.constant 0 : index
    %c2 = arith.constant 2 : index
    %c0_47 = arith.constant 0 : index
    %23 = vector.load %arg5[%c0_45, %c0_46, %c2, %c0_47] : memref<2x10x10x128xf32, #tpu.memory_space<vmem>>, vector<2x8x8x128xf32>
    %24 = vector.shape_cast %23 : vector<2x8x8x128xf32> to vector<128x128xf32>
    %c256 = arith.constant 256 : index
    %c0_48 = arith.constant 0 : index
    %25 = vector.load %arg2[%c256, %c0_48] : memref<1152x128xf32, #tpu.memory_space<vmem>>, vector<128x128xf32>
    %cst_49 = arith.constant dense<0.000000e+00> : vector<128x128xf32>
    %26 = tpu.matmul %24, %25, %cst_49 {dimension_numbers = #tpu.dot_dimension_numbers<[1], [0], [0], [1], [0, 0, 1, 1], [], []>} : vector<128x128xf32>, vector<128x128xf32>, vector<128x128xf32> -> vector<128x128xf32>
    %27 = arith.addf %22, %26 : vector<128x128xf32>
    %c0_50 = arith.constant 0 : index
    %c1_51 = arith.constant 1 : index
    %c0_52 = arith.constant 0 : index
    %c0_53 = arith.constant 0 : index
    %28 = vector.load %arg5[%c0_50, %c1_51, %c0_52, %c0_53] : memref<2x10x10x128xf32, #tpu.memory_space<vmem>>, vector<2x8x8x128xf32>
    %29 = vector.shape_cast %28 : vector<2x8x8x128xf32> to vector<128x128xf32>
    %c384 = arith.constant 384 : index
    %c0_54 = arith.constant 0 : index
    %30 = vector.load %arg2[%c384, %c0_54] : memref<1152x128xf32, #tpu.memory_space<vmem>>, vector<128x128xf32>
    %cst_55 = arith.constant dense<0.000000e+00> : vector<128x128xf32>
    %31 = tpu.matmul %29, %30, %cst_55 {dimension_numbers = #tpu.dot_dimension_numbers<[1], [0], [0], [1], [0, 0, 1, 1], [], []>} : vector<128x128xf32>, vector<128x128xf32>, vector<128x128xf32> -> vector<128x128xf32>
    %32 = arith.addf %27, %31 : vector<128x128xf32>
    %c0_56 = arith.constant 0 : index
    %c1_57 = arith.constant 1 : index
    %c1_58 = arith.constant 1 : index
    %c0_59 = arith.constant 0 : index
    %33 = vector.load %arg5[%c0_56, %c1_57, %c1_58, %c0_59] : memref<2x10x10x128xf32, #tpu.memory_space<vmem>>, vector<2x8x8x128xf32>
    %34 = vector.shape_cast %33 : vector<2x8x8x128xf32> to vector<128x128xf32>
    %c512 = arith.constant 512 : index
    %c0_60 = arith.constant 0 : index
    %35 = vector.load %arg2[%c512, %c0_60] : memref<1152x128xf32, #tpu.memory_space<vmem>>, vector<128x128xf32>
    %cst_61 = arith.constant dense<0.000000e+00> : vector<128x128xf32>
    %36 = tpu.matmul %34, %35, %cst_61 {dimension_numbers = #tpu.dot_dimension_numbers<[1], [0], [0], [1], [0, 0, 1, 1], [], []>} : vector<128x128xf32>, vector<128x128xf32>, vector<128x128xf32> -> vector<128x128xf32>
    %37 = arith.addf %32, %36 : vector<128x128xf32>
    %c0_62 = arith.constant 0 : index
    %c1_63 = arith.constant 1 : index
    %c2_64 = arith.constant 2 : index
    %c0_65 = arith.constant 0 : index
    %38 = vector.load %arg5[%c0_62, %c1_63, %c2_64, %c0_65] : memref<2x10x10x128xf32, #tpu.memory_space<vmem>>, vector<2x8x8x128xf32>
    %39 = vector.shape_cast %38 : vector<2x8x8x128xf32> to vector<128x128xf32>
    %c640 = arith.constant 640 : index
    %c0_66 = arith.constant 0 : index
    %40 = vector.load %arg2[%c640, %c0_66] : memref<1152x128xf32, #tpu.memory_space<vmem>>, vector<128x128xf32>
    %cst_67 = arith.constant dense<0.000000e+00> : vector<128x128xf32>
    %41 = tpu.matmul %39, %40, %cst_67 {dimension_numbers = #tpu.dot_dimension_numbers<[1], [0], [0], [1], [0, 0, 1, 1], [], []>} : vector<128x128xf32>, vector<128x128xf32>, vector<128x128xf32> -> vector<128x128xf32>
    %42 = arith.addf %37, %41 : vector<128x128xf32>
    %c0_68 = arith.constant 0 : index
    %c2_69 = arith.constant 2 : index
    %c0_70 = arith.constant 0 : index
    %c0_71 = arith.constant 0 : index
    %43 = vector.load %arg5[%c0_68, %c2_69, %c0_70, %c0_71] : memref<2x10x10x128xf32, #tpu.memory_space<vmem>>, vector<2x8x8x128xf32>
    %44 = vector.shape_cast %43 : vector<2x8x8x128xf32> to vector<128x128xf32>
    %c768 = arith.constant 768 : index
    %c0_72 = arith.constant 0 : index
    %45 = vector.load %arg2[%c768, %c0_72] : memref<1152x128xf32, #tpu.memory_space<vmem>>, vector<128x128xf32>
    %cst_73 = arith.constant dense<0.000000e+00> : vector<128x128xf32>
    %46 = tpu.matmul %44, %45, %cst_73 {dimension_numbers = #tpu.dot_dimension_numbers<[1], [0], [0], [1], [0, 0, 1, 1], [], []>} : vector<128x128xf32>, vector<128x128xf32>, vector<128x128xf32> -> vector<128x128xf32>
    %47 = arith.addf %42, %46 : vector<128x128xf32>
    %c0_74 = arith.constant 0 : index
    %c2_75 = arith.constant 2 : index
    %c1_76 = arith.constant 1 : index
    %c0_77 = arith.constant 0 : index
    %48 = vector.load %arg5[%c0_74, %c2_75, %c1_76, %c0_77] : memref<2x10x10x128xf32, #tpu.memory_space<vmem>>, vector<2x8x8x128xf32>
    %49 = vector.shape_cast %48 : vector<2x8x8x128xf32> to vector<128x128xf32>
    %c896 = arith.constant 896 : index
    %c0_78 = arith.constant 0 : index
    %50 = vector.load %arg2[%c896, %c0_78] : memref<1152x128xf32, #tpu.memory_space<vmem>>, vector<128x128xf32>
    %cst_79 = arith.constant dense<0.000000e+00> : vector<128x128xf32>
    %51 = tpu.matmul %49, %50, %cst_79 {dimension_numbers = #tpu.dot_dimension_numbers<[1], [0], [0], [1], [0, 0, 1, 1], [], []>} : vector<128x128xf32>, vector<128x128xf32>, vector<128x128xf32> -> vector<128x128xf32>
    %52 = arith.addf %47, %51 : vector<128x128xf32>
    %c0_80 = arith.constant 0 : index
    %c2_81 = arith.constant 2 : index
    %c2_82 = arith.constant 2 : index
    %c0_83 = arith.constant 0 : index
    %53 = vector.load %arg5[%c0_80, %c2_81, %c2_82, %c0_83] : memref<2x10x10x128xf32, #tpu.memory_space<vmem>>, vector<2x8x8x128xf32>
    %54 = vector.shape_cast %53 : vector<2x8x8x128xf32> to vector<128x128xf32>
    %c1024 = arith.constant 1024 : index
    %c0_84 = arith.constant 0 : index
    %55 = vector.load %arg2[%c1024, %c0_84] : memref<1152x128xf32, #tpu.memory_space<vmem>>, vector<128x128xf32>
    %cst_85 = arith.constant dense<0.000000e+00> : vector<128x128xf32>
    %56 = tpu.matmul %54, %55, %cst_85 {dimension_numbers = #tpu.dot_dimension_numbers<[1], [0], [0], [1], [0, 0, 1, 1], [], []>} : vector<128x128xf32>, vector<128x128xf32>, vector<128x128xf32> -> vector<128x128xf32>
    %57 = arith.addf %52, %56 : vector<128x128xf32>
    %cst_86 = arith.constant 0.000000e+00 : f32
    %58 = vector.broadcast %cst_86 : f32 to vector<128x128xf32>
    %59 = arith.maximumf %57, %58 : vector<128x128xf32>
    %c0_87 = arith.constant 0 : index
    %c0_88 = arith.constant 0 : index
    %60 = vector.load %arg3[%c0_87, %c0_88] : memref<128x128xf32, #tpu.memory_space<vmem>>, vector<128x128xf32>
    %cst_89 = arith.constant dense<0.000000e+00> : vector<128x128xf32>
    %61 = tpu.matmul %59, %60, %cst_89 {dimension_numbers = #tpu.dot_dimension_numbers<[1], [0], [0], [1], [0, 0, 1, 1], [], []>} : vector<128x128xf32>, vector<128x128xf32>, vector<128x128xf32> -> vector<128x128xf32>
    %c0_90 = arith.constant 0 : index
    %c0_91 = arith.constant 0 : index
    %c0_92 = arith.constant 0 : index
    %c0_93 = arith.constant 0 : index
    %62 = vector.load %arg6[%c0_90, %c0_91, %c0_92, %c0_93] : memref<2x8x8x128xf32, #tpu.memory_space<vmem>>, vector<2x8x8x128xf32>
    %63 = vector.shape_cast %61 : vector<128x128xf32> to vector<2x8x8x128xf32>
    %64 = arith.addf %62, %63 : vector<2x8x8x128xf32>
    %c0_94 = arith.constant 0 : index
    %c0_95 = arith.constant 0 : index
    %c0_96 = arith.constant 0 : index
    %c0_97 = arith.constant 0 : index
    %65 = vector.load %arg6[%c0_94, %c0_95, %c0_96, %c0_97] : memref<2x8x8x128xf32, #tpu.memory_space<vmem>>, vector<2x8x8x128xf32>
    tpu.vector_store %arg6[%c0_94, %c0_95, %c0_96, %c0_97], %64 {strides = array<i32>} : memref<2x8x8x128xf32, #tpu.memory_space<vmem>>, vector<2x8x8x128xf32>,
    %c0_98 = arith.constant 0 : index
    %c0_99 = arith.constant 0 : index
    %c0_100 = arith.constant 0 : index
    %c0_101 = arith.constant 0 : index
    %66 = vector.load %arg6[%c0_98, %c0_99, %c0_100, %c0_101] : memref<2x8x8x128xf32, #tpu.memory_space<vmem>>, vector<2x8x8x128xf32>
    %cst_102 = arith.constant 0.000000e+00 : f32
    %67 = vector.broadcast %cst_102 : f32 to vector<2x8x8x128xf32>
    %68 = arith.maximumf %66, %67 : vector<2x8x8x128xf32>
    %c0_103 = arith.constant 0 : index
    %c1_104 = arith.constant 1 : index
    %c1_105 = arith.constant 1 : index
    %c0_106 = arith.constant 0 : index
    %69 = vector.load %arg5[%c0_103, %c1_104, %c1_105, %c0_106] : memref<2x10x10x128xf32, #tpu.memory_space<vmem>>, vector<2x8x8x128xf32>
    tpu.vector_store %arg5[%c0_103, %c1_104, %c1_105, %c0_106], %68 {strides = array<i32>} : memref<2x10x10x128xf32, #tpu.memory_space<vmem>>, vector<2x8x8x128xf32>,
    %cst_107 = arith.constant 0.000000e+00 : f32
    %70 = vector.broadcast %cst_107 : f32 to vector<128x128xf32>
    %c0_108 = arith.constant 0 : index
    %c0_109 = arith.constant 0 : index
    %c0_110 = arith.constant 0 : index
    %c0_111 = arith.constant 0 : index
    %71 = vector.load %arg5[%c0_108, %c0_109, %c0_110, %c0_111] : memref<2x10x10x128xf32, #tpu.memory_space<vmem>>, vector<2x8x8x128xf32>
    %72 = vector.shape_cast %71 : vector<2x8x8x128xf32> to vector<128x128xf32>
    %c0_112 = arith.constant 0 : index
    %c0_113 = arith.constant 0 : index
    %73 = vector.load %arg2[%c0_112, %c0_113] : memref<1152x128xf32, #tpu.memory_space<vmem>>, vector<128x128xf32>
    %cst_114 = arith.constant dense<0.000000e+00> : vector<128x128xf32>
    %74 = tpu.matmul %72, %73, %cst_114 {dimension_numbers = #tpu.dot_dimension_numbers<[1], [0], [0], [1], [0, 0, 1, 1], [], []>} : vector<128x128xf32>, vector<128x128xf32>, vector<128x128xf32> -> vector<128x128xf32>
    %75 = arith.addf %70, %74 : vector<128x128xf32>
    %c0_115 = arith.constant 0 : index
    %c0_116 = arith.constant 0 : index
    %c1_117 = arith.constant 1 : index
    %c0_118 = arith.constant 0 : index
    %76 = vector.load %arg5[%c0_115, %c0_116, %c1_117, %c0_118] : memref<2x10x10x128xf32, #tpu.memory_space<vmem>>, vector<2x8x8x128xf32>
    %77 = vector.shape_cast %76 : vector<2x8x8x128xf32> to vector<128x128xf32>
    %c128_119 = arith.constant 128 : index
    %c0_120 = arith.constant 0 : index
    %78 = vector.load %arg2[%c128_119, %c0_120] : memref<1152x128xf32, #tpu.memory_space<vmem>>, vector<128x128xf32>
    %cst_121 = arith.constant dense<0.000000e+00> : vector<128x128xf32>
    %79 = tpu.matmul %77, %78, %cst_121 {dimension_numbers = #tpu.dot_dimension_numbers<[1], [0], [0], [1], [0, 0, 1, 1], [], []>} : vector<128x128xf32>, vector<128x128xf32>, vector<128x128xf32> -> vector<128x128xf32>
    %80 = arith.addf %75, %79 : vector<128x128xf32>
    %c0_122 = arith.constant 0 : index
    %c0_123 = arith.constant 0 : index
    %c2_124 = arith.constant 2 : index
    %c0_125 = arith.constant 0 : index
    %81 = vector.load %arg5[%c0_122, %c0_123, %c2_124, %c0_125] : memref<2x10x10x128xf32, #tpu.memory_space<vmem>>, vector<2x8x8x128xf32>
    %82 = vector.shape_cast %81 : vector<2x8x8x128xf32> to vector<128x128xf32>
    %c256_126 = arith.constant 256 : index
    %c0_127 = arith.constant 0 : index
    %83 = vector.load %arg2[%c256_126, %c0_127] : memref<1152x128xf32, #tpu.memory_space<vmem>>, vector<128x128xf32>
    %cst_128 = arith.constant dense<0.000000e+00> : vector<128x128xf32>
    %84 = tpu.matmul %82, %83, %cst_128 {dimension_numbers = #tpu.dot_dimension_numbers<[1], [0], [0], [1], [0, 0, 1, 1], [], []>} : vector<128x128xf32>, vector<128x128xf32>, vector<128x128xf32> -> vector<128x128xf32>
    %85 = arith.addf %80, %84 : vector<128x128xf32>
    %c0_129 = arith.constant 0 : index
    %c1_130 = arith.constant 1 : index
    %c0_131 = arith.constant 0 : index
    %c0_132 = arith.constant 0 : index
    %86 = vector.load %arg5[%c0_129, %c1_130, %c0_131, %c0_132] : memref<2x10x10x128xf32, #tpu.memory_space<vmem>>, vector<2x8x8x128xf32>
    %87 = vector.shape_cast %86 : vector<2x8x8x128xf32> to vector<128x128xf32>
    %c384_133 = arith.constant 384 : index
    %c0_134 = arith.constant 0 : index
    %88 = vector.load %arg2[%c384_133, %c0_134] : memref<1152x128xf32, #tpu.memory_space<vmem>>, vector<128x128xf32>
    %cst_135 = arith.constant dense<0.000000e+00> : vector<128x128xf32>
    %89 = tpu.matmul %87, %88, %cst_135 {dimension_numbers = #tpu.dot_dimension_numbers<[1], [0], [0], [1], [0, 0, 1, 1], [], []>} : vector<128x128xf32>, vector<128x128xf32>, vector<128x128xf32> -> vector<128x128xf32>
    %90 = arith.addf %85, %89 : vector<128x128xf32>
    %c0_136 = arith.constant 0 : index
    %c1_137 = arith.constant 1 : index
    %c1_138 = arith.constant 1 : index
    %c0_139 = arith.constant 0 : index
    %91 = vector.load %arg5[%c0_136, %c1_137, %c1_138, %c0_139] : memref<2x10x10x128xf32, #tpu.memory_space<vmem>>, vector<2x8x8x128xf32>
    %92 = vector.shape_cast %91 : vector<2x8x8x128xf32> to vector<128x128xf32>
    %c512_140 = arith.constant 512 : index
    %c0_141 = arith.constant 0 : index
    %93 = vector.load %arg2[%c512_140, %c0_141] : memref<1152x128xf32, #tpu.memory_space<vmem>>, vector<128x128xf32>
    %cst_142 = arith.constant dense<0.000000e+00> : vector<128x128xf32>
    %94 = tpu.matmul %92, %93, %cst_142 {dimension_numbers = #tpu.dot_dimension_numbers<[1], [0], [0], [1], [0, 0, 1, 1], [], []>} : vector<128x128xf32>, vector<128x128xf32>, vector<128x128xf32> -> vector<128x128xf32>
    %95 = arith.addf %90, %94 : vector<128x128xf32>
    %c0_143 = arith.constant 0 : index
    %c1_144 = arith.constant 1 : index
    %c2_145 = arith.constant 2 : index
    %c0_146 = arith.constant 0 : index
    %96 = vector.load %arg5[%c0_143, %c1_144, %c2_145, %c0_146] : memref<2x10x10x128xf32, #tpu.memory_space<vmem>>, vector<2x8x8x128xf32>
    %97 = vector.shape_cast %96 : vector<2x8x8x128xf32> to vector<128x128xf32>
    %c640_147 = arith.constant 640 : index
    %c0_148 = arith.constant 0 : index
    %98 = vector.load %arg2[%c640_147, %c0_148] : memref<1152x128xf32, #tpu.memory_space<vmem>>, vector<128x128xf32>
    %cst_149 = arith.constant dense<0.000000e+00> : vector<128x128xf32>
    %99 = tpu.matmul %97, %98, %cst_149 {dimension_numbers = #tpu.dot_dimension_numbers<[1], [0], [0], [1], [0, 0, 1, 1], [], []>} : vector<128x128xf32>, vector<128x128xf32>, vector<128x128xf32> -> vector<128x128xf32>
    %100 = arith.addf %95, %99 : vector<128x128xf32>
    %c0_150 = arith.constant 0 : index
    %c2_151 = arith.constant 2 : index
    %c0_152 = arith.constant 0 : index
    %c0_153 = arith.constant 0 : index
    %101 = vector.load %arg5[%c0_150, %c2_151, %c0_152, %c0_153] : memref<2x10x10x128xf32, #tpu.memory_space<vmem>>, vector<2x8x8x128xf32>
    %102 = vector.shape_cast %101 : vector<2x8x8x128xf32> to vector<128x128xf32>
    %c768_154 = arith.constant 768 : index
    %c0_155 = arith.constant 0 : index
    %103 = vector.load %arg2[%c768_154, %c0_155] : memref<1152x128xf32, #tpu.memory_space<vmem>>, vector<128x128xf32>
    %cst_156 = arith.constant dense<0.000000e+00> : vector<128x128xf32>
    %104 = tpu.matmul %102, %103, %cst_156 {dimension_numbers = #tpu.dot_dimension_numbers<[1], [0], [0], [1], [0, 0, 1, 1], [], []>} : vector<128x128xf32>, vector<128x128xf32>, vector<128x128xf32> -> vector<128x128xf32>
    %105 = arith.addf %100, %104 : vector<128x128xf32>
    %c0_157 = arith.constant 0 : index
    %c2_158 = arith.constant 2 : index
    %c1_159 = arith.constant 1 : index
    %c0_160 = arith.constant 0 : index
    %106 = vector.load %arg5[%c0_157, %c2_158, %c1_159, %c0_160] : memref<2x10x10x128xf32, #tpu.memory_space<vmem>>, vector<2x8x8x128xf32>
    %107 = vector.shape_cast %106 : vector<2x8x8x128xf32> to vector<128x128xf32>
    %c896_161 = arith.constant 896 : index
    %c0_162 = arith.constant 0 : index
    %108 = vector.load %arg2[%c896_161, %c0_162] : memref<1152x128xf32, #tpu.memory_space<vmem>>, vector<128x128xf32>
    %cst_163 = arith.constant dense<0.000000e+00> : vector<128x128xf32>
    %109 = tpu.matmul %107, %108, %cst_163 {dimension_numbers = #tpu.dot_dimension_numbers<[1], [0], [0], [1], [0, 0, 1, 1], [], []>} : vector<128x128xf32>, vector<128x128xf32>, vector<128x128xf32> -> vector<128x128xf32>
    %110 = arith.addf %105, %109 : vector<128x128xf32>
    %c0_164 = arith.constant 0 : index
    %c2_165 = arith.constant 2 : index
    %c2_166 = arith.constant 2 : index
    %c0_167 = arith.constant 0 : index
    %111 = vector.load %arg5[%c0_164, %c2_165, %c2_166, %c0_167] : memref<2x10x10x128xf32, #tpu.memory_space<vmem>>, vector<2x8x8x128xf32>
    %112 = vector.shape_cast %111 : vector<2x8x8x128xf32> to vector<128x128xf32>
    %c1024_168 = arith.constant 1024 : index
    %c0_169 = arith.constant 0 : index
    %113 = vector.load %arg2[%c1024_168, %c0_169] : memref<1152x128xf32, #tpu.memory_space<vmem>>, vector<128x128xf32>
    %cst_170 = arith.constant dense<0.000000e+00> : vector<128x128xf32>
    %114 = tpu.matmul %112, %113, %cst_170 {dimension_numbers = #tpu.dot_dimension_numbers<[1], [0], [0], [1], [0, 0, 1, 1], [], []>} : vector<128x128xf32>, vector<128x128xf32>, vector<128x128xf32> -> vector<128x128xf32>
    %115 = arith.addf %110, %114 : vector<128x128xf32>
    %cst_171 = arith.constant 0.000000e+00 : f32
    %116 = vector.broadcast %cst_171 : f32 to vector<128x128xf32>
    %117 = arith.maximumf %115, %116 : vector<128x128xf32>
    %c0_172 = arith.constant 0 : index
    %c0_173 = arith.constant 0 : index
    %118 = vector.load %arg3[%c0_172, %c0_173] : memref<128x128xf32, #tpu.memory_space<vmem>>, vector<128x128xf32>
    %cst_174 = arith.constant dense<0.000000e+00> : vector<128x128xf32>
    %119 = tpu.matmul %117, %118, %cst_174 {dimension_numbers = #tpu.dot_dimension_numbers<[1], [0], [0], [1], [0, 0, 1, 1], [], []>} : vector<128x128xf32>, vector<128x128xf32>, vector<128x128xf32> -> vector<128x128xf32>
    %c0_175 = arith.constant 0 : index
    %c0_176 = arith.constant 0 : index
    %c0_177 = arith.constant 0 : index
    %c0_178 = arith.constant 0 : index
    %120 = vector.load %arg6[%c0_175, %c0_176, %c0_177, %c0_178] : memref<2x8x8x128xf32, #tpu.memory_space<vmem>>, vector<2x8x8x128xf32>
    %121 = vector.shape_cast %119 : vector<128x128xf32> to vector<2x8x8x128xf32>
    %122 = arith.addf %120, %121 : vector<2x8x8x128xf32>
    %c0_179 = arith.constant 0 : index
    %c0_180 = arith.constant 0 : index
    %c0_181 = arith.constant 0 : index
    %c0_182 = arith.constant 0 : index
    %123 = vector.load %arg6[%c0_179, %c0_180, %c0_181, %c0_182] : memref<2x8x8x128xf32, #tpu.memory_space<vmem>>, vector<2x8x8x128xf32>
    tpu.vector_store %arg6[%c0_179, %c0_180, %c0_181, %c0_182], %122 {strides = array<i32>} : memref<2x8x8x128xf32, #tpu.memory_space<vmem>>, vector<2x8x8x128xf32>,
    %c0_183 = arith.constant 0 : index
    %c0_184 = arith.constant 0 : index
    %c0_185 = arith.constant 0 : index
    %c0_186 = arith.constant 0 : index
    %124 = vector.load %arg6[%c0_183, %c0_184, %c0_185, %c0_186] : memref<2x8x8x128xf32, #tpu.memory_space<vmem>>, vector<2x8x8x128xf32>
    %cst_187 = arith.constant 0.000000e+00 : f32
    %125 = vector.broadcast %cst_187 : f32 to vector<2x8x8x128xf32>
    %126 = arith.maximumf %124, %125 : vector<2x8x8x128xf32>
    %c0_188 = arith.constant 0 : index
    %c0_189 = arith.constant 0 : index
    %c0_190 = arith.constant 0 : index
    %c0_191 = arith.constant 0 : index
    %127 = vector.load %arg4[%c0_188, %c0_189, %c0_190, %c0_191] : memref<2x8x8x128xf32, #tpu.memory_space<vmem>>, vector<2x8x8x128xf32>
    tpu.vector_store %arg4[%c0_188, %c0_189, %c0_190, %c0_191], %126 {strides = array<i32>} : memref<2x8x8x128xf32, #tpu.memory_space<vmem>>, vector<2x8x8x128xf32>,
    return
  }
  func.func @transform_0(%arg0: i32) -> (i32, i32, i32, i32) {
    %c0_i32 = arith.constant 0 : i32
    %c0_i32_0 = arith.constant 0 : i32
    %c0_i32_1 = arith.constant 0 : i32
    %c0_i32_2 = arith.constant 0 : i32
    return %arg0, %c0_i32, %c0_i32_0, %c0_i32_1 : i32, i32, i32, i32
  }
  func.func @transform_1(%arg0: i32) -> (i32, i32) {
    %c0_i32 = arith.constant 0 : i32
    %c0_i32_0 = arith.constant 0 : i32
    %c0_i32_1 = arith.constant 0 : i32
    return %c0_i32, %c0_i32_0 : i32, i32
  }
  func.func @transform_2(%arg0: i32) -> (i32, i32) {
    %c0_i32 = arith.constant 0 : i32
    %c0_i32_0 = arith.constant 0 : i32
    %c0_i32_1 = arith.constant 0 : i32
    return %c0_i32, %c0_i32_0 : i32, i32
  }
  func.func @transform_3(%arg0: i32) -> (i32, i32, i32, i32) {
    %c0_i32 = arith.constant 0 : i32
    %c0_i32_0 = arith.constant 0 : i32
    %c0_i32_1 = arith.constant 0 : i32
    %c0_i32_2 = arith.constant 0 : i32
    return %arg0, %c0_i32, %c0_i32_0, %c0_i32_1 : i32, i32, i32, i32
  }
}

</mosaic_0001>

<bundles_post_ra>
// kernel: residual_stack_forward.1
= control target key start
LH: loop header
LB: loop body
LE: loop exit
PB: predicated region body
PF: predicated region fallthrough
CT: control target
= control target key end

     0   :  { %s6153_s12 = smov 0   ;;  %s8336_s0 = inlined_call_operand.vmem [shape: f32[4,8,8,128], index: 0, kind: input, shape index: {}]   ;;  %s8337_s1 = inlined_call_operand.vmem [shape: f32[1152,128], index: 1, kind: input, shape index: {}]   ;;  %s8338_s2 = inlined_call_operand.vmem [shape: f32[128,128], index: 2, kind: input, shape index: {}]   ;;  %s8339_s3 = inlined_call_operand.vmem [shape: f32[4,8,8,128], index: 3, kind: output, shape index: {}]  }
   0x1 LB: > { %s4324_s13 = sadd.s32 4294967295, %s6130_s12   ;;  %p4328_p0 = scmp.ge.s32.totalorder %s6130_s12, 1  ;;  %s6130_s12 = sphi %s6153_s12, %s13_s12  }
   0x2   : > { %p139_p1 = scmp.lt.s32.totalorder %s6130_s12, 3 }
   0x4   : > { %p140_p2 = pnand %p4328_p0, %p139_p1 }
   0x6   : > { %143 = sbr.rel (%p140_p2) target bundleno = 1228 (0x4cc), region = 32 }
   0xb   : > { %v372_v0 = vld [vmem:[%s8337_s1 + $0xf8] sm:$0xff]  ;;  %v371_v2 = vld [vmem:[%s8337_s1 + $0xf0] sm:$0xff]  ;;  %s6170_s20 = sshll.u32 %s4324_s13, 1  ;;  %v6132_v4 = vmov 0.0   ;;  %v370_v5 = vld [vmem:[%s8337_s1 + $0xe8] sm:$0xff] }
   0xc   : > { %v340_v1 = vld [vmem:[%s8337_s1 + $0x78] sm:$0xff]  ;;  %4979 = vmatprep.subr.mxu0 %v372_v0  ;;  %v339_v3 = vld [vmem:[%s8337_s1 + $0x70] sm:$0xff]  ;;  %179 = vst [vmem:[#allocation2] sm:$0xff] %v6132_v4  ;;  %180 = vst [vmem:[#allocation2 + $0x8] sm:$0x3] %v6132_v4  ;;  %p166_p3 = scmp.lt.s32.totalorder %s6170_s20, 3 }
   0xd   : > { %5035 = vmatprep.subr.mxu1 %v340_v1  ;;  %181 = vst [vmem:[#allocation2 + $0xa0] sm:$0xff] %v6132_v4  ;;  %182 = vst [vmem:[#allocation2 + $0xa8] sm:$0x3] %v6132_v4  ;;  %4980 = vmatpush3.msra.mxu0 %v372_v0  ;;  %v338_v6 = vld [vmem:[%s8337_s1 + $0x68] sm:$0xff]  ;;  %v369_v7 = vld [vmem:[%s8337_s1 + $0xe0] sm:$0xff] }
   0xe   : > { %184 = vst [vmem:[#allocation2 + $0x90] sm:$0xff] %v6132_v4  ;;  %185 = vst [vmem:[#allocation2 + $0x98] sm:$0x3] %v6132_v4  ;;  %5036 = vmatpush3.msra.mxu1 %v340_v1  ;;  %4981 = vmatprep.subr.mxu0 %v371_v2  ;;  %s8538_s20 = smov (!%p166_p3, %s6170_s20), 3  ;;  %v337_v8 = vld [vmem:[%s8337_s1 + $0x60] sm:$0xff]  ;;  %v368_v9 = vld [vmem:[%s8337_s1 + $0xd8] sm:$0xff] }
   0xf   : > { %186 = vst [vmem:[#allocation2 + $0x130] sm:$0xff] %v6132_v4  ;;  %187 = vst [vmem:[#allocation2 + $0x138] sm:$0x3] %v6132_v4  ;;  %5037 = vmatprep.subr.mxu1 %v339_v3  ;;  %4982 = vmatpush3.msra.mxu0 %v371_v2  ;;  %s4337_s4 = sshll.u32 %s8538_s20, 6  ;;  %v336_v10 = vld [vmem:[%s8337_s1 + $0x58] sm:$0xff]  ;;  %v367_v11 = vld [vmem:[%s8337_s1 + $0xd0] sm:$0xff] }
  0x10   : > { %189 = vst [vmem:[#allocation2 + $0x10] sm:$0x1] %v6132_v4  ;;  %190 = vst [vmem:[#allocation2 + $0x20] sm:$0x1] %v6132_v4  ;;  %5038 = vmatpush3.msra.mxu1 %v339_v3  ;;  %4983 = vmatprep.subr.mxu0 %v370_v5  ;;  %v335_v12 = vld [vmem:[%s8337_s1 + $0x50] sm:$0xff]  ;;  %s6211_s16 = scalar_lea.vmem %s8336_s0, %s4337_s4  ;;  %v366_v13 = vld [vmem:[%s8337_s1 + $0xc8] sm:$0xff]  ;;  %s8300_s28 = scalar_lea.vmem %s8339_s3, %s4337_s4 }
  0x11   : > { %191 = vst [vmem:[#allocation2 + $0x30] sm:$0x1] %v6132_v4  ;;  %192 = vst [vmem:[#allocation2 + $0x40] sm:$0x1] %v6132_v4  ;;  %5039 = vmatprep.subr.mxu1 %v338_v6  ;;  %4984 = vmatpush3.msra.mxu0 %v370_v5  ;;  %v334_v14 = vld [vmem:[%s8337_s1 + $0x48] sm:$0xff]  ;;  %v228_v15 = vld [vmem:[%s6211_s16] sm:$0xff] }
  0x12   : > { %193 = vst [vmem:[#allocation2 + $0x50] sm:$0x1] %v6132_v4  ;;  %194 = vst [vmem:[#allocation2 + $0x60] sm:$0x1] %v6132_v4  ;;  %5040 = vmatpush3.msra.mxu1 %v338_v6  ;;  %4985 = vmatprep.subr.mxu0 %v369_v7  ;;  %v365_v16 = vld [vmem:[%s8337_s1 + $0xc0] sm:$0xff]  ;;  %v6226_v18 = vmax.f32 %v228_v15, 0.0 }
  0x13   : > { %195 = vst [vmem:[#allocation2 + $0x70] sm:$0x1] %v6132_v4  ;;  %196 = vst [vmem:[#allocation2 + $0x80] sm:$0x1] %v6132_v4  ;;  %5041 = vmatprep.subr.mxu1 %v337_v8  ;;  %4986 = vmatpush3.msra.mxu0 %v369_v7  ;;  %v333_v17 = vld [vmem:[%s8337_s1 + $0x40] sm:$0xff]  ;;  %v229_v19 = vld [vmem:[%s6211_s16 + $0x8] sm:$0xff] }
  0x14   : > { %199 = vst [vmem:[#allocation2 + $0xb0] sm:$0x1] %v6132_v4  ;;  %200 = vst [vmem:[#allocation2 + $0xc0] sm:$0x1] %v6132_v4  ;;  %5042 = vmatpush3.msra.mxu1 %v337_v8  ;;  %4987 = vmatprep.subr.mxu0 %v368_v9  ;;  %v6229_v20 = vmax.f32 %v229_v19, 0.0  ;;  %v230_v21 = vld [vmem:[%s6211_s16 + $0x10] sm:$0xff] }
  0x15   : > { %201 = vst [vmem:[#allocation2 + $0xd0] sm:$0x1] %v6132_v4  ;;  %202 = vst [vmem:[#allocation2 + $0xe0] sm:$0x1] %v6132_v4  ;;  %5043 = vmatprep.subr.mxu1 %v336_v10  ;;  %4988 = vmatpush3.msra.mxu0 %v368_v9  ;;  %v364_v22 = vld [vmem:[%s8337_s1 + $0xb8] sm:$0xff]  ;;  %v6239_v24 = vmax.f32 %v230_v21, 0.0 }
  0x16   : > { %203 = vst [vmem:[#allocation2 + $0xf0] sm:$0x1] %v6132_v4  ;;  %204 = vst [vmem:[#allocation2 + $0x100] sm:$0x1] %v6132_v4  ;;  %5044 = vmatpush3.msra.mxu1 %v336_v10  ;;  %4989 = vmatprep.subr.mxu0 %v367_v11  ;;  %v332_v23 = vld [vmem:[%s8337_s1 + $0x38] sm:$0xff]  ;;  %v232_v27 = vld [vmem:[%s6211_s16 + $0x20] sm:$0xff] }
  0x17   : > { %205 = vst [vmem:[#allocation2 + $0x110] sm:$0x1] %v6132_v4  ;;  %206 = vst [vmem:[#allocation2 + $0x120] sm:$0x1] %v6132_v4  ;;  %5045 = vmatprep.subr.mxu1 %v335_v12  ;;  %4990 = vmatpush3.msra.mxu0 %v367_v11  ;;  %v231_v25 = vld [vmem:[%s6211_s16 + $0x18] sm:$0xff]  ;;  %v363_v28 = vld [vmem:[%s8337_s1 + $0xb0] sm:$0xff] }
  0x18   : > { %209 = vst [vmem:[#allocation2 + $0x19] sm:$0x1] %v6132_v4  ;;  %210 = vst [vmem:[#allocation2 + $0x29] sm:$0x1] %v6132_v4  ;;  %5046 = vmatpush3.msra.mxu1 %v335_v12  ;;  %4991 = vmatprep.subr.mxu0 %v366_v13  ;;  %v6243_v26 = vmax.f32 %v231_v25, 0.0  ;;  %v331_v29 = vld [vmem:[%s8337_s1 + $0x30] sm:$0xff] }
  0x19   : > { %211 = vst [vmem:[#allocation2 + $0x39] sm:$0x1] %v6132_v4  ;;  %212 = vst [vmem:[#allocation2 + $0x49] sm:$0x1] %v6132_v4  ;;  %5047 = vmatprep.subr.mxu1 %v334_v14  ;;  %4992 = vmatpush3.msra.mxu0 %v366_v13  ;;  %v6253_v30 = vmax.f32 %v232_v27, 0.0  ;;  %v233_v31 = vld [vmem:[%s6211_s16 + $0x28] sm:$0xff] }
  0x1a   : > { %213 = vst [vmem:[#allocation2 + $0x59] sm:$0x1] %v6132_v4  ;;  %214 = vst [vmem:[#allocation2 + $0x69] sm:$0x1] %v6132_v4  ;;  %5048 = vmatpush3.msra.mxu1 %v334_v14  ;;  %4993 = vmatprep.subr.mxu0 %v365_v16  ;;  %v6257_v32 = vmax.f32 %v233_v31, 0.0  ;;  %v234_v33 = vld [vmem:[%s6211_s16 + $0x30] sm:$0xff] }
  0x1b   : > { %215 = vst [vmem:[#allocation2 + $0x79] sm:$0x1] %v6132_v4  ;;  %216 = vst [vmem:[#allocation2 + $0x89] sm:$0x1] %v6132_v4  ;;  %5049 = vmatprep.subr.mxu1 %v333_v17  ;;  %4994 = vmatpush3.msra.mxu0 %v365_v16  ;;  %v362_v34 = vld [vmem:[%s8337_s1 + $0xa8] sm:$0xff]  ;;  %v6267_v36 = vmax.f32 %v234_v33, 0.0 }
  0x1c   : > { %219 = vst [vmem:[#allocation2 + $0xb9] sm:$0x1] %v6132_v4  ;;  %220 = vst [vmem:[#allocation2 + $0xc9] sm:$0x1] %v6132_v4  ;;  %5050 = vmatpush3.msra.mxu1 %v333_v17  ;;  %4995 = vmatprep.subr.mxu0 %v364_v22  ;;  %v330_v35 = vld [vmem:[%s8337_s1 + $0x28] sm:$0xff]  ;;  %v236_v37 = vld [vmem:[%s6211_s16 + $0x40] sm:$0xff] }
  0x1d   : > { %221 = vst [vmem:[#allocation2 + $0xd9] sm:$0x1] %v6132_v4  ;;  %222 = vst [vmem:[#allocation2 + $0xe9] sm:$0x1] %v6132_v4  ;;  %5051 = vmatprep.subr.mxu1 %v332_v23  ;;  %4996 = vmatpush3.msra.mxu0 %v364_v22  ;;  %v361_v38 = vld [vmem:[%s8337_s1 + $0xa0] sm:$0xff]  ;;  %v6278_v40 = vmax.f32 %v236_v37, 0.0 }
  0x1e   : > { %223 = vst [vmem:[#allocation2 + $0xf9] sm:$0x1] %v6132_v4  ;;  %224 = vst [vmem:[#allocation2 + $0x109] sm:$0x1] %v6132_v4  ;;  %5052 = vmatpush3.msra.mxu1 %v332_v23  ;;  %4997 = vmatprep.subr.mxu0 %v363_v28  ;;  %v329_v39 = vld [vmem:[%s8337_s1 + $0x20] sm:$0xff]  ;;  %v237_v41 = vld [vmem:[%s6211_s16 + $0x48] sm:$0xff] }
  0x1f   : > { %225 = vst [vmem:[#allocation2 + $0x119] sm:$0x1] %v6132_v4  ;;  %226 = vst [vmem:[#allocation2 + $0x129] sm:$0x1] %v6132_v4  ;;  %5053 = vmatprep.subr.mxu1 %v331_v29  ;;  %4998 = vmatpush3.msra.mxu0 %v363_v28  ;;  %v238_v42 = vld [vmem:[%s6211_s16 + $0x50] sm:$0xff]  ;;  %v360_v43 = vld [vmem:[%s8337_s1 + $0x98] sm:$0xff] }
  0x20   : > { %188 = vst [vmem:[#allocation2] sm:$0x1] %v6132_v4  ;;  %208 = vst [vmem:[#allocation2 + $0x9] sm:$0x1] %v6132_v4  ;;  %5054 = vmatpush3.msra.mxu1 %v331_v29  ;;  %4999 = vmatprep.subr.mxu0 %v362_v34  ;;  %v328_v44 = vld [vmem:[%s8337_s1 + $0x18] sm:$0xff]  ;;  %v6289_v45 = vmax.f32 %v237_v41, 0.0 }
  0x21   : > { %197 = vst [vmem:[#allocation2 + $0x90] sm:$0x1] %v6132_v4  ;;  %198 = vst [vmem:[#allocation2 + $0xa0] sm:$0x1] %v6132_v4  ;;  %5055 = vmatprep.subr.mxu1 %v330_v35  ;;  %5000 = vmatpush3.msra.mxu0 %v362_v34  ;;  %v6291_v46 = vmax.f32 %v238_v42, 0.0  ;;  %v359_v47 = vld [vmem:[%s8337_s1 + $0x90] sm:$0xff] }
  0x22   : > { %207 = vst [vmem:[#allocation2 + $0x130] sm:$0x1] %v6132_v4  ;;  %217 = vst [vmem:[#allocation2 + $0x99] sm:$0x1] %v6132_v4  ;;  %5056 = vmatpush3.msra.mxu1 %v330_v35  ;;  %5001 = vmatprep.subr.mxu0 %v361_v38  ;;  %v327_v48 = vld [vmem:[%s8337_s1 + $0x10] sm:$0xff]  ;;  %v239_v49 = vld [vmem:[%s6211_s16 + $0x58] sm:$0xff] }
  0x23   : > { %218 = vst [vmem:[#allocation2 + $0xa9] sm:$0x1] %v6132_v4  ;;  %227 = vst [vmem:[#allocation2 + $0x139] sm:$0x1] %v6132_v4  ;;  %5057 = vmatprep.subr.mxu1 %v329_v39  ;;  %5002 = vmatpush3.msra.mxu0 %v361_v38  ;;  %v240_v50 = vld [vmem:[%s6211_s16 + $0x60] sm:$0xff]  ;;  %v6303_v51 = vmax.f32 %v239_v49, 0.0 }
  0x24   : > { %293 = vst [vmem:[#allocation2 + $0x11] sm:$0xff] %v6226_v18  ;;  %294 = vst [vmem:[#allocation2 + $0x21] sm:$0xff] %v6229_v20  ;;  %5058 = vmatpush3.msra.mxu1 %v329_v39  ;;  %5003 = vmatprep.subr.mxu0 %v360_v43  ;;  %v6305_v52 = vmax.f32 %v240_v50, 0.0  ;;  %v358_v53 = vld [vmem:[%s8337_s1 + $0x88] sm:$0xff]  ;;  %v242_v56 = vld [vmem:[%s6211_s16 + $0x70] sm:$0xff] }
  0x25   : > { %295 = vst [vmem:[#allocation2 + $0x31] sm:$0xff] %v6239_v24  ;;  %296 = vst [vmem:[#allocation2 + $0x41] sm:$0xff] %v6243_v26  ;;  %5059 = vmatprep.subr.mxu1 %v328_v44  ;;  %5004 = vmatpush3.msra.mxu0 %v360_v43  ;;  %v326_v54 = vld [vmem:[%s8337_s1 + $0x8] sm:$0xff]  ;;  %v357_v57 = vld [vmem:[%s8337_s1 + $0x80] sm:$0xff]  ;;  %v6325_v60 = vmax.f32 %v242_v56, 0.0 }
  0x26   : > { %297 = vst [vmem:[#allocation2 + $0x51] sm:$0xff] %v6253_v30  ;;  %298 = vst [vmem:[#allocation2 + $0x61] sm:$0xff] %v6257_v32  ;;  %5060 = vmatpush3.msra.mxu1 %v328_v44  ;;  %5005 = vmatprep.subr.mxu0 %v359_v47  ;;  %v241_v55 = vld [vmem:[%s6211_s16 + $0x68] sm:$0xff]  ;;  %v325_v58 = vld [vmem:[%s8337_s1] sm:$0xff] }
  0x27   : > { %299 = vst [vmem:[#allocation2 + $0x71] sm:$0xff] %v6267_v36  ;;  %301 = vst [vmem:[#allocation2 + $0xb1] sm:$0xff] %v6278_v40  ;;  %5061 = vmatprep.subr.mxu1 %v327_v48  ;;  %5006 = vmatpush3.msra.mxu0 %v359_v47  ;;  %v6323_v59 = vmax.f32 %v241_v55, 0.0  ;;  %v341_v61 = vld [vmem:[#allocation2 + $0x1] sm:$0xff]  ;;  %v694_v0 = vld [vmem:[%s8337_s1 + $0x178] sm:$0xff] }
  0x28   : > { %302 = vst [vmem:[#allocation2 + $0xc1] sm:$0xff] %v6289_v45  ;;  %303 = vst [vmem:[#allocation2 + $0xd1] sm:$0xff] %v6291_v46  ;;  %5062 = vmatpush3.msra.mxu1 %v327_v48  ;;  %5007 = vmatprep.subr.mxu0 %v358_v53  ;;  %v309_v62 = vld [vmem:[#allocation2] sm:$0xff]  ;;  %v887_v1 = vld [vmem:[%s8337_s1 + $0x1f8] sm:$0xff] }
  0x29   : > { %304 = vst [vmem:[#allocation2 + $0xe1] sm:$0xff] %v6303_v51  ;;  %305 = vst [vmem:[#allocation2 + $0xf1] sm:$0xff] %v6305_v52  ;;  %5063 = vmatprep.subr.mxu1 %v326_v54  ;;  %5008 = vmatpush3.msra.mxu0 %v358_v53  ;;  %v693_v2 = vld [vmem:[%s8337_s1 + $0x170] sm:$0xff]  ;;  %v692_v5 = vld [vmem:[%s8337_s1 + $0x168] sm:$0xff] }
  0x2a   : > { %5064 = vmatpush3.msra.mxu1 %v326_v54  ;;  %306 = vst [vmem:[#allocation2 + $0x101] sm:$0xff] %v6323_v59  ;;  %307 = vst [vmem:[#allocation2 + $0x111] sm:$0xff] %v6325_v60  ;;  %5009 = vmatprep.subr.mxu0 %v357_v57  ;;  %v886_v6 = vld [vmem:[%s8337_s1 + $0x1f0] sm:$0xff]  ;;  %v691_v7 = vld [vmem:[%s8337_s1 + $0x160] sm:$0xff] }
  0x2b   : > { %5065 = vmatprep.subr.mxu1 %v325_v58  ;;  %v6329_v63 = vld [vmem:[#allocation2 + $0x10] sm:$0xff]  ;;  %5010 = vmatpush3.msra.mxu0 %v357_v57  ;;  %v6342_v3 = vld [vmem:[#allocation2 + $0x20] sm:$0xff]  ;;  %v885_v8 = vld [vmem:[%s8337_s1 + $0x1e8] sm:$0xff] }
  0x2c   : > { %5011 = vmatprep.mubr.f32.mxu0 %v341_v61  ;;  %5066 = vmatpush3.msra.mxu1 %v325_v58  ;;  %v6345_v4 = vld [vmem:[#allocation2 + $0x30] sm:$0xff]  ;;  %v235_v9 = vld [vmem:[%s6211_s16 + $0x38] sm:$0xff]  ;;  %v6363_v10 = vld [vmem:[#allocation2 + $0x40] sm:$0xff] }
  0x2d   : > { %5067 = vmatprep.mubr.f32.mxu1 %v309_v62  ;;  %5012 = vmatmul.mubr.f32.vlgmr.msra.gmra.mxu0 %v6226_v18  ;;  %v6365_v11 = vmax.f32 %v235_v9, 0.0  ;;  %v6367_v12 = vld [vmem:[#allocation2 + $0x50] sm:$0xff]  ;;  %v690_v13 = vld [vmem:[%s8337_s1 + $0x158] sm:$0xff]  ;;  %v884_v14 = vld [vmem:[%s8337_s1 + $0x1e0] sm:$0xff] }
  0x2e   : > { %5068 = vmatmul.mubr.f32.vlgmr.msra.gmra.mxu1 %v6329_v63  ;;  %5091 = vmatprep.subr.mxu0 %v694_v0  ;;  %v689_v15 = vld [vmem:[%s8337_s1 + $0x150] sm:$0xff]  ;;  %v883_v16 = vld [vmem:[%s8337_s1 + $0x1d8] sm:$0xff]  ;;  %v6386_v17 = vld [vmem:[#allocation2 + $0x60] sm:$0xff] }
  0x2f   : > { %5147 = vmatprep.subr.mxu1 %v887_v1  ;;  %5092 = vmatpush3.msra.mxu0 %v694_v0  ;;  %300 = vst [vmem:[#allocation2 + $0x81] sm:$0xff] %v6365_v11  ;;  %v243_v19 = vld [vmem:[%s6211_s16 + $0x78] sm:$0xff]  ;;  %v6389_v21 = vld [vmem:[#allocation2 + $0x70] sm:$0xff]  ;;  %v688_v23 = vld [vmem:[%s8337_s1 + $0x148] sm:$0xff] }
  0x30   : > { %5014 = vmatprep.mubr.f32.mxu0 %v6229_v20  ;;  %5093 = vmatprep.subr.mxu0 %v693_v2  ;;  %v6391_v22 = vmax.f32 %v243_v19, 0.0  ;;  %v882_v25 = vld [vmem:[%s8337_s1 + $0x1d0] sm:$0xff]  ;;  %v687_v27 = vld [vmem:[%s8337_s1 + $0x140] sm:$0xff]  ;;  %v881_v28 = vld [vmem:[%s8337_s1 + $0x1c8] sm:$0xff] }
  0x31   : > { %5070 = vmatprep.mubr.f32.mxu1 %v6342_v3  ;;  %5094 = vmatpush3.msra.mxu0 %v693_v2  ;;  %v349_v29 = vld [vmem:[#allocation2 + $0xa1] sm:$0xff]  ;;  %v6410_v33 = vld [vmem:[#allocation2 + $0xb0] sm:$0xff]  ;;  %v686_v34 = vld [vmem:[%s8337_s1 + $0x138] sm:$0xff] }
  0x32   : > { %5148 = vmatpush3.msra.mxu1 %v887_v1  ;;  %5015 = vmatmul.mubr.f32.gmra.mxu0 %v6239_v24  ;;  %308 = vst [vmem:[#allocation2 + $0x121] sm:$0xff] %v6391_v22  ;;  %v317_v31 = vld [vmem:[#allocation2 + $0xa0] sm:$0xff]  ;;  %v685_v37 = vld [vmem:[%s8337_s1 + $0x130] sm:$0xff]  ;;  %v879_v38 = vld [vmem:[%s8337_s1 + $0x1b8] sm:$0xff] }
  0x33   : > { %5071 = vmatmul.mubr.f32.gmra.mxu1 %v6345_v4  ;;  %5095 = vmatprep.subr.mxu0 %v692_v5  ;;  %v880_v35 = vld [vmem:[%s8337_s1 + $0x1c0] sm:$0xff]  ;;  %v6428_v41 = vld [vmem:[#allocation2 + $0xd0] sm:$0xff]  ;;  %v684_v42 = vld [vmem:[%s8337_s1 + $0x128] sm:$0xff] }
  0x34   : > { %5149 = vmatprep.subr.mxu1 %v886_v6  ;;  %5096 = vmatpush3.msra.mxu0 %v692_v5  ;;  %v6426_v39 = vld [vmem:[#allocation2 + $0xc0] sm:$0xff]  ;;  %v878_v43 = vld [vmem:[%s8337_s1 + $0x1b0] sm:$0xff]  ;;  %v877_v47 = vld [vmem:[%s8337_s1 + $0x1a8] sm:$0xff] }
  0x35   : > { %5150 = vmatpush3.msra.mxu1 %v886_v6  ;;  %5097 = vmatprep.subr.mxu0 %v691_v7  ;;  %v683_v44 = vld [vmem:[%s8337_s1 + $0x120] sm:$0xff]  ;;  %v6448_v49 = vld [vmem:[#allocation2 + $0xf0] sm:$0xff]  ;;  %v682_v50 = vld [vmem:[%s8337_s1 + $0x118] sm:$0xff] }
  0x36   : > { %5151 = vmatprep.subr.mxu1 %v885_v8  ;;  %5017 = vmatprep.mubr.f32.mxu0 %v6243_v26  ;;  %v6446_v48 = vld [vmem:[#allocation2 + $0xe0] sm:$0xff]  ;;  %v681_v54 = vld [vmem:[%s8337_s1 + $0x110] sm:$0xff]  ;;  %v875_v55 = vld [vmem:[%s8337_s1 + $0x198] sm:$0xff] }
  0x37   : > { %5073 = vmatprep.mubr.f32.mxu1 %v6363_v10  ;;  %5098 = vmatpush3.msra.mxu0 %v691_v7  ;;  %v876_v53 = vld [vmem:[%s8337_s1 + $0x1a0] sm:$0xff]  ;;  %v6468_v57 = vld [vmem:[#allocation2 + $0x110] sm:$0xff]  ;;  %v680_v58 = vld [vmem:[%s8337_s1 + $0x108] sm:$0xff] }
  0x38   : > { %5152 = vmatpush3.msra.mxu1 %v885_v8  ;;  %5018 = vmatmul.mubr.f32.gmra.mxu0 %v6253_v30  ;;  %v6466_v56 = vld [vmem:[#allocation2 + $0x100] sm:$0xff]  ;;  %v874_v61 = vld [vmem:[%s8337_s1 + $0x190] sm:$0xff]  ;;  %v873_v0 = vld [vmem:[%s8337_s1 + $0x188] sm:$0xff] }
  0x39   : > { %5074 = vmatmul.mubr.f32.gmra.mxu1 %v6367_v12  ;;  %5099 = vmatprep.subr.mxu0 %v690_v13  ;;  %v679_v62 = vld [vmem:[%s8337_s1 + $0x100] sm:$0xff]  ;;  %v6486_v2 = vld [vmem:[#allocation2 + $0x12] sm:$0xff] }
  0x3a   : > { %5153 = vmatprep.subr.mxu1 %v884_v14  ;;  %5100 = vmatpush3.msra.mxu0 %v690_v13  ;;  %v663_v1 = vld [vmem:[#allocation2 + $0x2] sm:$0xff]  ;;  %v1080_v6 = vld [vmem:[%s8337_s1 + $0x278] sm:$0xff]  ;;  %v1079_v7 = vld [vmem:[%s8337_s1 + $0x270] sm:$0xff] }
  0x3b   : > { %5154 = vmatpush3.msra.mxu1 %v884_v14  ;;  %5101 = vmatprep.subr.mxu0 %v689_v15  ;;  %v872_v5 = vld [vmem:[%s8337_s1 + $0x180] sm:$0xff]  ;;  %v1273_v8 = vld [vmem:[%s8337_s1 + $0x2f8] sm:$0xff]  ;;  %v1078_v14 = vld [vmem:[%s8337_s1 + $0x268] sm:$0xff] }
  0x3c   : > { %5155 = vmatprep.subr.mxu1 %v883_v16  ;;  %5020 = vmatprep.mubr.f32.mxu0 %v6257_v32  ;;  %v6502_v9 = vld [vmem:[#allocation2 + $0x22] sm:$0xff]  ;;  %v6505_v13 = vld [vmem:[#allocation2 + $0x32] sm:$0xff] }
  0x3d   : > { %5076 = vmatprep.mubr.f32.mxu1 %v6386_v17  ;;  %5102 = vmatpush3.msra.mxu0 %v689_v15  ;;  %v1272_v15 = vld [vmem:[%s8337_s1 + $0x2f0] sm:$0xff]  ;;  %v6522_v19 = vld [vmem:[#allocation2 + $0x42] sm:$0xff] }
  0x3e   : > { %5156 = vmatpush3.msra.mxu1 %v883_v16  ;;  %5021 = vmatmul.mubr.f32.gmra.mxu0 %v6267_v36  ;;  %v1271_v16 = vld [vmem:[%s8337_s1 + $0x2e8] sm:$0xff] }
  0x3f   : > { %5077 = vmatmul.mubr.f32.gmra.mxu1 %v6389_v21  ;;  %5103 = vmatprep.subr.mxu0 %v688_v23 }
  0x40   : > { %5157 = vmatprep.subr.mxu1 %v882_v25  ;;  %5104 = vmatpush3.msra.mxu0 %v688_v23  ;;  %v6524_v23 = vld [vmem:[#allocation2 + $0x52] sm:$0xff] }
  0x41   : > { %5158 = vmatpush3.msra.mxu1 %v882_v25  ;;  %5105 = vmatprep.subr.mxu0 %v687_v27  ;;  %v1076_v25 = vld [vmem:[%s8337_s1 + $0x258] sm:$0xff] }
  0x42   : > { %5159 = vmatprep.subr.mxu1 %v881_v28  ;;  %5023 = vmatprep.mubr.f32.mxu0 %v349_v29  ;;  %v1269_v29 = vld [vmem:[%s8337_s1 + $0x2d8] sm:$0xff] }
  0x43   : > { %5079 = vmatprep.mubr.f32.mxu1 %v317_v31  ;;  %5106 = vmatpush3.msra.mxu0 %v687_v27  ;;  %v1270_v27 = vld [vmem:[%s8337_s1 + $0x2e0] sm:$0xff] }
  0x44   : > { %5160 = vmatpush3.msra.mxu1 %v881_v28  ;;  %5024 = vmatmul.mubr.f32.gmra.mxu0 %v6278_v40  ;;  %v1075_v28 = vld [vmem:[%s8337_s1 + $0x250] sm:$0xff]  ;;  %v6542_v31 = vld [vmem:[#allocation2 + $0x62] sm:$0xff] }
  0x45   : > { %5080 = vmatmul.mubr.f32.gmra.mxu1 %v6410_v33  ;;  %5107 = vmatprep.subr.mxu0 %v686_v34 }
  0x46   : > { %5161 = vmatprep.subr.mxu1 %v880_v35  ;;  %5108 = vmatpush3.msra.mxu0 %v686_v34  ;;  %v6544_v34 = vld [vmem:[#allocation2 + $0x72] sm:$0xff] }
  0x47   : > { %5162 = vmatpush3.msra.mxu1 %v880_v35  ;;  %5109 = vmatprep.subr.mxu0 %v685_v37  ;;  %v1074_v35 = vld [vmem:[%s8337_s1 + $0x248] sm:$0xff] }
  0x48   : > { %5163 = vmatprep.subr.mxu1 %v879_v38  ;;  %5026 = vmatprep.mubr.f32.mxu0 %v6289_v45 }
  0x49   : > { %5082 = vmatprep.mubr.f32.mxu1 %v6426_v39  ;;  %5110 = vmatpush3.msra.mxu0 %v685_v37  ;;  %v1268_v37 = vld [vmem:[%s8337_s1 + $0x2d0] sm:$0xff] }
  0x4a   : > { %5164 = vmatpush3.msra.mxu1 %v879_v38  ;;  %5027 = vmatmul.mubr.f32.gmra.mxu0 %v6291_v46  ;;  %v1073_v38 = vld [vmem:[%s8337_s1 + $0x240] sm:$0xff] }
  0x4b   : > { %5083 = vmatmul.mubr.f32.gmra.mxu1 %v6428_v41  ;;  %5111 = vmatprep.subr.mxu0 %v684_v42 }
  0x4c   : > { %5165 = vmatprep.subr.mxu1 %v878_v43  ;;  %5112 = vmatpush3.msra.mxu0 %v684_v42  ;;  %v6558_v42 = vld [vmem:[#allocation2 + $0x80] sm:$0xff] }
  0x4d   : > { %5166 = vmatpush3.msra.mxu1 %v878_v43  ;;  %5113 = vmatprep.subr.mxu0 %v683_v44  ;;  %v1267_v43 = vld [vmem:[%s8337_s1 + $0x2c8] sm:$0xff] }
  0x4e   : > { %5167 = vmatprep.subr.mxu1 %v877_v47  ;;  %5029 = vmatprep.mubr.f32.mxu0 %v6303_v51 }
  0x4f   : > { %5085 = vmatprep.mubr.f32.mxu1 %v6446_v48  ;;  %5114 = vmatpush3.msra.mxu0 %v683_v44  ;;  %v671_v44 = vld [vmem:[#allocation2 + $0xa2] sm:$0xff] }
  0x50   : > { %5168 = vmatpush3.msra.mxu1 %v877_v47  ;;  %5030 = vmatmul.mubr.f32.gmra.mxu0 %v6305_v52  ;;  %v6564_v47 = vld [vmem:[#allocation2 + $0xb2] sm:$0xff] }
  0x51   : > { %5086 = vmatmul.mubr.f32.gmra.mxu1 %v6448_v49  ;;  %5115 = vmatprep.subr.mxu0 %v682_v50 }
  0x52   : > { %5169 = vmatprep.subr.mxu1 %v876_v53  ;;  %5116 = vmatpush3.msra.mxu0 %v682_v50  ;;  %v1072_v50 = vld [vmem:[%s8337_s1 + $0x238] sm:$0xff] }
  0x53   : > { %5170 = vmatpush3.msra.mxu1 %v876_v53  ;;  %5117 = vmatprep.subr.mxu0 %v681_v54  ;;  %v1266_v53 = vld [vmem:[%s8337_s1 + $0x2c0] sm:$0xff] }
  0x54   : > { %5171 = vmatprep.subr.mxu1 %v875_v55  ;;  %5032 = vmatprep.mubr.f32.mxu0 %v6323_v59 }
  0x55   : > { %5088 = vmatprep.mubr.f32.mxu1 %v6466_v56  ;;  %5118 = vmatpush3.msra.mxu0 %v681_v54  ;;  %v1071_v54 = vld [vmem:[%s8337_s1 + $0x230] sm:$0xff] }
  0x56   : > { %5172 = vmatpush3.msra.mxu1 %v875_v55  ;;  %5033 = vmatmul.mubr.f32.gmra.mxu0 %v6325_v60  ;;  %v1265_v55 = vld [vmem:[%s8337_s1 + $0x2b8] sm:$0xff] }
  0x57   : > { %5089 = vmatmul.mubr.f32.gmra.mxu1 %v6468_v57  ;;  %5119 = vmatprep.subr.mxu0 %v680_v58 }
  0x58   : > { %5173 = vmatprep.subr.mxu1 %v874_v61  ;;  %5120 = vmatpush3.msra.mxu0 %v680_v58  ;;  %v6581_v58 = vld [vmem:[#allocation2 + $0xc2] sm:$0xff] }
  0x59   : > { %5174 = vmatpush3.msra.mxu1 %v874_v61  ;;  %5121 = vmatprep.subr.mxu0 %v679_v62  ;;  %v6583_v61 = vld [vmem:[#allocation2 + $0xd2] sm:$0xff] }
  0x5a   : > { %5175 = vmatprep.subr.mxu1 %v873_v0  ;;  %5122 = vmatpush3.msra.mxu0 %v679_v62  ;;  %v1070_v62 = vld [vmem:[%s8337_s1 + $0x228] sm:$0xff] }
  0x5b   : > { %5123 = vmatprep.mubr.f32.mxu0 %v663_v1  ;;  %5176 = vmatpush3.msra.mxu1 %v873_v0  ;;  %v1264_v0 = vld [vmem:[%s8337_s1 + $0x2b0] sm:$0xff]  ;;  %v1263_v1 = vld [vmem:[%s8337_s1 + $0x2a8] sm:$0xff] }
  0x5c   : > { %5124 = vmatmul.mubr.f32.vlgmr.msra.gmra.mxu0 %v6486_v2  ;;  %5177 = vmatprep.subr.mxu1 %v872_v5 }
  0x5d   : > { %5203 = vmatprep.subr.mxu0 %v1080_v6  ;;  %5178 = vmatpush3.msra.mxu1 %v872_v5  ;;  %v6601_v5 = vld [vmem:[#allocation2 + $0xe2] sm:$0xff] }
  0x5e   : > { %5179 = vmatprep.mubr.f32.mxu1 %v6329_v63  ;;  %5204 = vmatpush3.msra.mxu0 %v1080_v6  ;;  %v1077_v63 = vld [vmem:[%s8337_s1 + $0x260] sm:$0xff]  ;;  %v6603_v6 = vld [vmem:[#allocation2 + $0xf2] sm:$0xff] }
  0x5f   : > { %5180 = vmatmul.mubr.f32.vlgmr.msra.gmra.mxu1 %v6342_v3  ;;  %5205 = vmatprep.subr.mxu0 %v1079_v7 }
  0x60   : > { %5259 = vmatprep.subr.mxu1 %v1273_v8  ;;  %5126 = vmatprep.mubr.f32.mxu0 %v6502_v9 }
  0x61   : > { %5206 = vmatpush3.msra.mxu0 %v1079_v7  ;;  %5260 = vmatpush3.msra.mxu1 %v1273_v8  ;;  %v1068_v7 = vld [vmem:[%s8337_s1 + $0x218] sm:$0xff]  ;;  %v1262_v8 = vld [vmem:[%s8337_s1 + $0x2a0] sm:$0xff] }
  0x62   : > { %5127 = vmatmul.mubr.f32.gmra.mxu0 %v6505_v13  ;;  %5207 = vmatprep.subr.mxu0 %v1078_v14 }
  0x63   : > { %5261 = vmatprep.subr.mxu1 %v1272_v15  ;;  %5182 = vmatprep.mubr.f32.mxu1 %v6345_v4 }
  0x64   : > { %5208 = vmatpush3.msra.mxu0 %v1078_v14  ;;  %5262 = vmatpush3.msra.mxu1 %v1272_v15  ;;  %v1067_v14 = vld [vmem:[%s8337_s1 + $0x210] sm:$0xff]  ;;  %v1261_v15 = vld [vmem:[%s8337_s1 + $0x298] sm:$0xff] }
  0x65   : > { %5209 = vmatprep.subr.mxu0 %v1077_v63  ;;  %5183 = vmatmul.mubr.f32.gmra.mxu1 %v6363_v10 }
  0x66   : > { %5263 = vmatprep.subr.mxu1 %v1271_v16  ;;  %5129 = vmatprep.mubr.f32.mxu0 %v6522_v19 }
  0x67   : > { %5210 = vmatpush3.msra.mxu0 %v1077_v63  ;;  %5264 = vmatpush3.msra.mxu1 %v1271_v16  ;;  %v6621_v63 = vld [vmem:[#allocation2 + $0x102] sm:$0xff]  ;;  %v6623_v16 = vld [vmem:[#allocation2 + $0x112] sm:$0xff] }
  0x68   : > { %5130 = vmatmul.mubr.f32.gmra.mxu0 %v6524_v23  ;;  %5211 = vmatprep.subr.mxu0 %v1076_v25 }
  0x69   : > { %5265 = vmatprep.subr.mxu1 %v1270_v27  ;;  %5185 = vmatprep.mubr.f32.mxu1 %v6367_v12 }
  0x6a   : > { %5212 = vmatpush3.msra.mxu0 %v1076_v25  ;;  %5266 = vmatpush3.msra.mxu1 %v1270_v27  ;;  %v1066_v25 = vld [vmem:[%s8337_s1 + $0x208] sm:$0xff]  ;;  %v1260_v27 = vld [vmem:[%s8337_s1 + $0x290] sm:$0xff] }
  0x6b   : > { %5213 = vmatprep.subr.mxu0 %v1075_v28  ;;  %5186 = vmatmul.mubr.f32.gmra.mxu1 %v6386_v17 }
  0x6c   : > { %5267 = vmatprep.subr.mxu1 %v1269_v29  ;;  %5132 = vmatprep.mubr.f32.mxu0 %v6542_v31 }
  0x6d   : > { %5214 = vmatpush3.msra.mxu0 %v1075_v28  ;;  %5268 = vmatpush3.msra.mxu1 %v1269_v29  ;;  %v1065_v28 = vld [vmem:[%s8337_s1 + $0x200] sm:$0xff] }
  0x6e   : > { %5133 = vmatmul.mubr.f32.gmra.mxu0 %v6544_v34  ;;  %5215 = vmatprep.subr.mxu0 %v1074_v35  ;;  %v6637_v29 = vld [vmem:[#allocation2 + $0x120] sm:$0xff] }
  0x6f   : > { %5269 = vmatprep.subr.mxu1 %v1268_v37  ;;  %5188 = vmatprep.mubr.f32.mxu1 %v6389_v21 }
  0x70   : > { %5216 = vmatpush3.msra.mxu0 %v1074_v35  ;;  %5270 = vmatpush3.msra.mxu1 %v1268_v37  ;;  %v1259_v35 = vld [vmem:[%s8337_s1 + $0x288] sm:$0xff]  ;;  %v1258_v37 = vld [vmem:[%s8337_s1 + $0x280] sm:$0xff] }
  0x71   : > { %5217 = vmatprep.subr.mxu0 %v1073_v38  ;;  %5189 = vmatmul.mubr.f32.gmra.mxu1 %v6558_v42 }
  0x72   : > { %5271 = vmatprep.subr.mxu1 %v1267_v43  ;;  %5135 = vmatprep.mubr.f32.mxu0 %v671_v44  ;;  %v1660_v44 = vld [vmem:[%s8337_s1 + $0x3f8] sm:$0xff] }
  0x73   : > { %5218 = vmatpush3.msra.mxu0 %v1073_v38  ;;  %5272 = vmatpush3.msra.mxu1 %v1267_v43  ;;  %v1467_v38 = vld [vmem:[%s8337_s1 + $0x378] sm:$0xff]  ;;  %v1466_v43 = vld [vmem:[%s8337_s1 + $0x370] sm:$0xff] }
  0x74   : > { %5136 = vmatmul.mubr.f32.gmra.mxu0 %v6564_v47  ;;  %5219 = vmatprep.subr.mxu0 %v1072_v50 }
  0x75   : > { %5273 = vmatprep.subr.mxu1 %v1266_v53  ;;  %5191 = vmatprep.mubr.f32.mxu1 %v6410_v33  ;;  %v1069_v33 = vld [vmem:[%s8337_s1 + $0x220] sm:$0xff] }
  0x76   : > { %5220 = vmatpush3.msra.mxu0 %v1072_v50  ;;  %5274 = vmatpush3.msra.mxu1 %v1266_v53  ;;  %v1658_v50 = vld [vmem:[%s8337_s1 + $0x3e8] sm:$0xff]  ;;  %v1463_v53 = vld [vmem:[%s8337_s1 + $0x358] sm:$0xff] }
  0x77   : > { %5221 = vmatprep.subr.mxu0 %v1071_v54  ;;  %5192 = vmatmul.mubr.f32.gmra.mxu1 %v6426_v39 }
  0x78   : > { %5275 = vmatprep.subr.mxu1 %v1265_v55  ;;  %5138 = vmatprep.mubr.f32.mxu0 %v6581_v58 }
  0x79   : > { %5222 = vmatpush3.msra.mxu0 %v1071_v54  ;;  %5276 = vmatpush3.msra.mxu1 %v1265_v55  ;;  %v1657_v54 = vld [vmem:[%s8337_s1 + $0x3e0] sm:$0xff]  ;;  %v1462_v55 = vld [vmem:[%s8337_s1 + $0x350] sm:$0xff] }
  0x7a   : > { %5139 = vmatmul.mubr.f32.gmra.mxu0 %v6583_v61  ;;  %5223 = vmatprep.subr.mxu0 %v1070_v62 }
  0x7b   : > { %5277 = vmatprep.subr.mxu1 %v1264_v0  ;;  %5194 = vmatprep.mubr.f32.mxu1 %v6428_v41 }
  0x7c   : > { %5224 = vmatpush3.msra.mxu0 %v1070_v62  ;;  %5278 = vmatpush3.msra.mxu1 %v1264_v0  ;;  %v1656_v62 = vld [vmem:[%s8337_s1 + $0x3d8] sm:$0xff]  ;;  %v1461_v0 = vld [vmem:[%s8337_s1 + $0x348] sm:$0xff] }
  0x7d   : > { %5225 = vmatprep.subr.mxu0 %v1069_v33  ;;  %5195 = vmatmul.mubr.f32.gmra.mxu1 %v6446_v48 }
  0x7e   : > { %5279 = vmatprep.subr.mxu1 %v1263_v1  ;;  %5141 = vmatprep.mubr.f32.mxu0 %v6601_v5 }
  0x7f   : > { %5226 = vmatpush3.msra.mxu0 %v1069_v33  ;;  %5280 = vmatpush3.msra.mxu1 %v1263_v1  ;;  %v1655_v33 = vld [vmem:[%s8337_s1 + $0x3d0] sm:$0xff]  ;;  %v1460_v1 = vld [vmem:[%s8337_s1 + $0x340] sm:$0xff] }
  0x80   : > { %5142 = vmatmul.mubr.f32.gmra.mxu0 %v6603_v6  ;;  %5227 = vmatprep.subr.mxu0 %v1068_v7 }
  0x81   : > { %5281 = vmatprep.subr.mxu1 %v1262_v8  ;;  %5197 = vmatprep.mubr.f32.mxu1 %v6448_v49 }
  0x82   : > { %5228 = vmatpush3.msra.mxu0 %v1068_v7  ;;  %5282 = vmatpush3.msra.mxu1 %v1262_v8  ;;  %v6703_v7 = vld [vmem:[#allocation2 + $0x82] sm:$0xff] }
  0x83   : > { %5229 = vmatprep.subr.mxu0 %v1067_v14  ;;  %5198 = vmatmul.mubr.f32.gmra.mxu1 %v6466_v56  ;;  %v1654_v8 = vld [vmem:[%s8337_s1 + $0x3c8] sm:$0xff] }
  0x84   : > { %5283 = vmatprep.subr.mxu1 %v1261_v15  ;;  %5144 = vmatprep.mubr.f32.mxu0 %v6621_v63 }
  0x85   : > { %5230 = vmatpush3.msra.mxu0 %v1067_v14  ;;  %5284 = vmatpush3.msra.mxu1 %v1261_v15  ;;  %v1459_v14 = vld [vmem:[%s8337_s1 + $0x338] sm:$0xff]  ;;  %v1653_v15 = vld [vmem:[%s8337_s1 + $0x3c0] sm:$0xff] }
  0x86   : > { %5145 = vmatmul.mubr.f32.gmra.mxu0 %v6623_v16  ;;  %5231 = vmatprep.subr.mxu0 %v1066_v25 }
  0x87   : > { %5285 = vmatprep.subr.mxu1 %v1260_v27  ;;  %5200 = vmatprep.mubr.f32.mxu1 %v6468_v57 }
  0x88   : > { %5232 = vmatpush3.msra.mxu0 %v1066_v25  ;;  %5286 = vmatpush3.msra.mxu1 %v1260_v27  ;;  %v1458_v25 = vld [vmem:[%s8337_s1 + $0x330] sm:$0xff]  ;;  %v1652_v27 = vld [vmem:[%s8337_s1 + $0x3b8] sm:$0xff] }
  0x89   : > { %5233 = vmatprep.subr.mxu0 %v1065_v28  ;;  %5201 = vmatmul.mubr.f32.gmra.mxu1 %v6637_v29 }
  0x8a   : > { %5287 = vmatprep.subr.mxu1 %v1259_v35  ;;  %5234 = vmatpush3.msra.mxu0 %v1065_v28  ;;  %v1651_v28 = vld [vmem:[%s8337_s1 + $0x3b0] sm:$0xff] }
  0x8b   : > { %5235 = vmatprep.mubr.f32.mxu0 %v6226_v18  ;;  %5288 = vmatpush3.msra.mxu1 %v1259_v35  ;;  %v1465_v18 = vld [vmem:[%s8337_s1 + $0x368] sm:$0xff] }
  0x8c   : > { %5236 = vmatmul.mubr.f32.vlgmr.msra.gmra.mxu0 %v6229_v20  ;;  %5289 = vmatprep.subr.mxu1 %v1258_v37  ;;  %v1659_v20 = vld [vmem:[%s8337_s1 + $0x3f0] sm:$0xff]  ;;  %v1650_v35 = vld [vmem:[%s8337_s1 + $0x3a8] sm:$0xff] }
  0x8d   : > { %5315 = vmatprep.subr.mxu0 %v1467_v38  ;;  %5290 = vmatpush3.msra.mxu1 %v1258_v37  ;;  %v1455_v37 = vld [vmem:[%s8337_s1 + $0x318] sm:$0xff] }
  0x8e   : > { %5291 = vmatprep.mubr.f32.mxu1 %v6486_v2  ;;  %5316 = vmatpush3.msra.mxu0 %v1467_v38  ;;  %v1464_v2 = vld [vmem:[%s8337_s1 + $0x360] sm:$0xff] }
  0x8f   : > { %5292 = vmatmul.mubr.f32.vlgmr.msra.gmra.mxu1 %v6502_v9  ;;  %5317 = vmatprep.subr.mxu0 %v1466_v43  ;;  %v1649_v38 = vld [vmem:[%s8337_s1 + $0x3a0] sm:$0xff] }
  0x90   : > { %5371 = vmatprep.subr.mxu1 %v1660_v44  ;;  %5238 = vmatprep.mubr.f32.mxu0 %v6239_v24 }
  0x91   : > { %5318 = vmatpush3.msra.mxu0 %v1466_v43  ;;  %5372 = vmatpush3.msra.mxu1 %v1660_v44  ;;  %v1454_v43 = vld [vmem:[%s8337_s1 + $0x310] sm:$0xff]  ;;  %v1648_v44 = vld [vmem:[%s8337_s1 + $0x398] sm:$0xff] }
  0x92   : > { %5239 = vmatmul.mubr.f32.gmra.mxu0 %v6243_v26  ;;  %5319 = vmatprep.subr.mxu0 %v1465_v18 }
  0x93   : > { %5373 = vmatprep.subr.mxu1 %v1659_v20  ;;  %5294 = vmatprep.mubr.f32.mxu1 %v6505_v13 }
  0x94   : > { %5320 = vmatpush3.msra.mxu0 %v1465_v18  ;;  %5374 = vmatpush3.msra.mxu1 %v1659_v20  ;;  %v1453_v18 = vld [vmem:[%s8337_s1 + $0x308] sm:$0xff]  ;;  %v1647_v20 = vld [vmem:[%s8337_s1 + $0x390] sm:$0xff] }
  0x95   : > { %5321 = vmatprep.subr.mxu0 %v1464_v2  ;;  %5295 = vmatmul.mubr.f32.gmra.mxu1 %v6522_v19 }
  0x96   : > { %5375 = vmatprep.subr.mxu1 %v1658_v50  ;;  %5241 = vmatprep.mubr.f32.mxu0 %v6253_v30 }
  0x97   : > { %5322 = vmatpush3.msra.mxu0 %v1464_v2  ;;  %5376 = vmatpush3.msra.mxu1 %v1658_v50  ;;  %v1452_v2 = vld [vmem:[%s8337_s1 + $0x300] sm:$0xff] }
  0x98   : > { %5242 = vmatmul.mubr.f32.gmra.mxu0 %v6257_v32  ;;  %5323 = vmatprep.subr.mxu0 %v1463_v53  ;;  %v6769_v50 = vld [vmem:[#allocation2 + $0x122] sm:$0xff] }
  0x99   : > { %5377 = vmatprep.subr.mxu1 %v1657_v54  ;;  %5297 = vmatprep.mubr.f32.mxu1 %v6524_v23 }
  0x9a   : > { %5324 = vmatpush3.msra.mxu0 %v1463_v53  ;;  %5378 = vmatpush3.msra.mxu1 %v1657_v54  ;;  %v1646_v53 = vld [vmem:[%s8337_s1 + $0x388] sm:$0xff]  ;;  %v1645_v54 = vld [vmem:[%s8337_s1 + $0x380] sm:$0xff] }
  0x9b   : > { %5325 = vmatprep.subr.mxu0 %v1462_v55  ;;  %5298 = vmatmul.mubr.f32.gmra.mxu1 %v6542_v31 }
  0x9c   : > { %5379 = vmatprep.subr.mxu1 %v1656_v62  ;;  %5244 = vmatprep.mubr.f32.mxu0 %v6267_v36 }
  0x9d   : > { %5326 = vmatpush3.msra.mxu0 %v1462_v55  ;;  %5380 = vmatpush3.msra.mxu1 %v1656_v62  ;;  %v1853_v55 = vld [vmem:[%s8337_s1 + $0x478] sm:$0xff]  ;;  %v1629_v62 = vld [vmem:[#allocation2 + $0x21] sm:$0xff] }
  0x9e   : > { %5245 = vmatmul.mubr.f32.gmra.mxu0 %v6365_v11  ;;  %5327 = vmatprep.subr.mxu0 %v1461_v0 }
  0x9f   : > { %5381 = vmatprep.subr.mxu1 %v1655_v33  ;;  %5300 = vmatprep.mubr.f32.mxu1 %v6544_v34 }
  0xa0   : > { %5328 = vmatpush3.msra.mxu0 %v1461_v0  ;;  %5382 = vmatpush3.msra.mxu1 %v1655_v33  ;;  %v1852_v0 = vld [vmem:[%s8337_s1 + $0x470] sm:$0xff]  ;;  %v1851_v33 = vld [vmem:[%s8337_s1 + $0x468] sm:$0xff] }
  0xa1   : > { %5329 = vmatprep.subr.mxu0 %v1460_v1  ;;  %5301 = vmatmul.mubr.f32.gmra.mxu1 %v6703_v7 }
  0xa2   : > { %5383 = vmatprep.subr.mxu1 %v1654_v8  ;;  %5247 = vmatprep.mubr.f32.mxu0 %v6278_v40  ;;  %v1457_v40 = vld [vmem:[%s8337_s1 + $0x328] sm:$0xff] }
  0xa3   : > { %5330 = vmatpush3.msra.mxu0 %v1460_v1  ;;  %5384 = vmatpush3.msra.mxu1 %v1654_v8  ;;  %v2046_v8 = vld [vmem:[%s8338_s2 + $0x78] sm:$0xff] }
  0xa4   : > { %5248 = vmatmul.mubr.f32.gmra.mxu0 %v6289_v45  ;;  %5331 = vmatprep.subr.mxu0 %v1459_v14 }
  0xa5   : > { %5385 = vmatprep.subr.mxu1 %v1653_v15  ;;  %5303 = vmatprep.mubr.f32.mxu1 %v6564_v47  ;;  %v1456_v47 = vld [vmem:[%s8337_s1 + $0x320] sm:$0xff] }
  0xa6   : > { %5332 = vmatpush3.msra.mxu0 %v1459_v14  ;;  %5386 = vmatpush3.msra.mxu1 %v1653_v15 }
  0xa7   : > { %5333 = vmatprep.subr.mxu0 %v1458_v25  ;;  %5304 = vmatmul.mubr.f32.gmra.mxu1 %v6581_v58 }
  0xa8   : > { %5387 = vmatprep.subr.mxu1 %v1652_v27  ;;  %5250 = vmatprep.mubr.f32.mxu0 %v6291_v46 }
  0xa9   : > { %5334 = vmatpush3.msra.mxu0 %v1458_v25  ;;  %5388 = vmatpush3.msra.mxu1 %v1652_v27  ;;  %v2045_v27 = vld [vmem:[%s8338_s2 + $0x70] sm:$0xff] }
  0xaa   : > { %5251 = vmatmul.mubr.f32.gmra.mxu0 %v6303_v51  ;;  %5335 = vmatprep.subr.mxu0 %v1457_v40 }
  0xab   : > { %5389 = vmatprep.subr.mxu1 %v1651_v28  ;;  %5306 = vmatprep.mubr.f32.mxu1 %v6583_v61 }
  0xac   : > { %5336 = vmatpush3.msra.mxu0 %v1457_v40  ;;  %5390 = vmatpush3.msra.mxu1 %v1651_v28  ;;  %v2044_v40 = vld [vmem:[%s8338_s2 + $0x68] sm:$0xff] }
  0xad   : > { %5337 = vmatprep.subr.mxu0 %v1456_v47  ;;  %5307 = vmatmul.mubr.f32.gmra.mxu1 %v6601_v5 }
  0xae   : > { %5391 = vmatprep.subr.mxu1 %v1650_v35  ;;  %5253 = vmatprep.mubr.f32.mxu0 %v6305_v52 }
  0xaf   : > { %5338 = vmatpush3.msra.mxu0 %v1456_v47  ;;  %5392 = vmatpush3.msra.mxu1 %v1650_v35  ;;  %v2043_v35 = vld [vmem:[%s8338_s2 + $0x60] sm:$0xff] }
  0xb0   : > { %5254 = vmatmul.mubr.f32.gmra.mxu0 %v6323_v59  ;;  %5339 = vmatprep.subr.mxu0 %v1455_v37 }
  0xb1   : > { %5393 = vmatprep.subr.mxu1 %v1649_v38  ;;  %5309 = vmatprep.mubr.f32.mxu1 %v6603_v6 }
  0xb2   : > { %5340 = vmatpush3.msra.mxu0 %v1455_v37  ;;  %5394 = vmatpush3.msra.mxu1 %v1649_v38 }
  0xb3   : > { %5341 = vmatprep.subr.mxu0 %v1454_v43  ;;  %5310 = vmatmul.mubr.f32.gmra.mxu1 %v6621_v63 }
  0xb4   : > { %5395 = vmatprep.subr.mxu1 %v1648_v44  ;;  %5256 = vmatprep.mubr.f32.mxu0 %v6325_v60 }
  0xb5   : > { %5342 = vmatpush3.msra.mxu0 %v1454_v43  ;;  %5396 = vmatpush3.msra.mxu1 %v1648_v44  ;;  %v2042_v44 = vld [vmem:[%s8338_s2 + $0x58] sm:$0xff] }
  0xb6   : > { %5257 = vmatmul.mubr.f32.gmra.mxu0 %v6391_v22  ;;  %5343 = vmatprep.subr.mxu0 %v1453_v18 }
  0xb7   : > { %5397 = vmatprep.subr.mxu1 %v1647_v20  ;;  %5312 = vmatprep.mubr.f32.mxu1 %v6623_v16 }
  0xb8   : > { %5344 = vmatpush3.msra.mxu0 %v1453_v18  ;;  %5398 = vmatpush3.msra.mxu1 %v1647_v20  ;;  %v2041_v18 = vld [vmem:[%s8338_s2 + $0x50] sm:$0xff] }
  0xb9   : > { %5345 = vmatprep.subr.mxu0 %v1452_v2  ;;  %5313 = vmatmul.mubr.f32.gmra.mxu1 %v6769_v50 }
  0xba   : > { %5399 = vmatprep.subr.mxu1 %v1646_v53  ;;  %5346 = vmatpush3.msra.mxu0 %v1452_v2 }
  0xbb   : > { %5347 = vmatprep.mubr.f32.mxu0 %v6342_v3  ;;  %5400 = vmatpush3.msra.mxu1 %v1646_v53  ;;  %v1850_v3 = vld [vmem:[%s8337_s1 + $0x460] sm:$0xff] }
  0xbc   : > { %5348 = vmatmul.mubr.f32.vlgmr.msra.gmra.mxu0 %v6345_v4  ;;  %5401 = vmatprep.subr.mxu1 %v1645_v54  ;;  %v1847_v4 = vld [vmem:[%s8337_s1 + $0x448] sm:$0xff] }
  0xbd   : > { %5427 = vmatprep.subr.mxu0 %v1853_v55  ;;  %5402 = vmatpush3.msra.mxu1 %v1645_v54 }
  0xbe   : > { %5403 = vmatprep.mubr.f32.mxu1 %v1629_v62  ;;  %5428 = vmatpush3.msra.mxu0 %v1853_v55  ;;  %v2039_v62 = vld [vmem:[%s8338_s2 + $0x40] sm:$0xff] }
  0xbf   : > { %5404 = vmatmul.mubr.f32.vlgmr.msra.gmra.mxu1 %v6239_v24  ;;  %5429 = vmatprep.subr.mxu0 %v1852_v0  ;;  %v1849_v24 = vld [vmem:[%s8337_s1 + $0x458] sm:$0xff] }
  0xc0   : > { %5350 = vmatprep.mubr.f32.mxu0 %v6363_v10  ;;  %5430 = vmatpush3.msra.mxu0 %v1852_v0  ;;  %v1636_v10 = vld [vmem:[#allocation2 + $0x91] sm:$0xff] }
  0xc1   : > { %5406 = vmatprep.mubr.f32.mxu1 %v6243_v26  ;;  %5351 = vmatmul.mubr.f32.gmra.mxu0 %v6367_v12  ;;  %v1848_v26 = vld [vmem:[%s8337_s1 + $0x450] sm:$0xff]  ;;  %v1843_v12 = vld [vmem:[%s8337_s1 + $0x428] sm:$0xff]  ;;  %v2038_v0 = vld [vmem:[%s8338_s2 + $0x38] sm:$0xff] }
  0xc2   : > { %5431 = vmatprep.subr.mxu0 %v1851_v33  ;;  %5353 = vmatprep.mubr.f32.mxu0 %v6386_v17  ;;  %v1839_v17 = vld [vmem:[%s8337_s1 + $0x408] sm:$0xff] }
  0xc3   : > { %5432 = vmatpush3.msra.mxu0 %v1851_v33  ;;  %5407 = vmatmul.mubr.f32.gmra.mxu1 %v6253_v30  ;;  %v1443_v30 = vld [vmem:[#allocation2 + $0x90] sm:$0xff] }
  0xc4   : > { %5433 = vmatprep.subr.mxu0 %v1850_v3  ;;  %5409 = vmatprep.mubr.f32.mxu1 %v6257_v32  ;;  %v1846_v32 = vld [vmem:[%s8337_s1 + $0x440] sm:$0xff] }
  0xc5   : > { %5434 = vmatpush3.msra.mxu0 %v1850_v3  ;;  %5483 = vmatprep.subr.mxu1 %v2046_v8 }
  0xc6   : > { %5354 = vmatmul.mubr.f32.gmra.mxu0 %v6389_v21  ;;  %5435 = vmatprep.subr.mxu0 %v1849_v24  ;;  %v1644_v21 = vld [vmem:[#allocation2 + $0x131] sm:$0xff] }
  0xc7   : > { %5436 = vmatpush3.msra.mxu0 %v1849_v24  ;;  %5410 = vmatmul.mubr.f32.gmra.mxu1 %v6267_v36  ;;  %v1845_v36 = vld [vmem:[%s8337_s1 + $0x438] sm:$0xff]  ;;  %v2037_v24 = vld [vmem:[%s8338_s2 + $0x30] sm:$0xff] }
  0xc8   : > { %5437 = vmatprep.subr.mxu0 %v1848_v26  ;;  %5356 = vmatprep.mubr.f32.mxu0 %v6558_v42 }
  0xc9   : > { %5438 = vmatpush3.msra.mxu0 %v1848_v26  ;;  %5412 = vmatprep.mubr.f32.mxu1 %v6365_v11  ;;  %v1844_v11 = vld [vmem:[%s8337_s1 + $0x430] sm:$0xff] }
  0xca   : > { %5357 = vmatmul.mubr.f32.gmra.mxu0 %v1443_v30  ;;  %5439 = vmatprep.subr.mxu0 %v1847_v4 }
  0xcb   : > { %5440 = vmatpush3.msra.mxu0 %v1847_v4  ;;  %5413 = vmatmul.mubr.f32.gmra.mxu1 %v1636_v10  ;;  %v2036_v4 = vld [vmem:[%s8338_s2 + $0x28] sm:$0xff]  ;;  %v2035_v10 = vld [vmem:[%s8338_s2 + $0x20] sm:$0xff] }
  0xcc   : > { %5441 = vmatprep.subr.mxu0 %v1846_v32  ;;  %5359 = vmatprep.mubr.f32.mxu0 %v6426_v39 }
  0xcd   : > { %5442 = vmatpush3.msra.mxu0 %v1846_v32  ;;  %5415 = vmatprep.mubr.f32.mxu1 %v6289_v45  ;;  %v1842_v45 = vld [vmem:[%s8337_s1 + $0x420] sm:$0xff] }
  0xce   : > { %5360 = vmatmul.mubr.f32.gmra.mxu0 %v6428_v41  ;;  %5443 = vmatprep.subr.mxu0 %v1845_v36 }
  0xcf   : > { %5444 = vmatpush3.msra.mxu0 %v1845_v36  ;;  %5416 = vmatmul.mubr.f32.gmra.mxu1 %v6291_v46  ;;  %v1841_v46 = vld [vmem:[%s8337_s1 + $0x418] sm:$0xff] }
  0xd0   : > { %5445 = vmatprep.subr.mxu0 %v1844_v11  ;;  %5362 = vmatprep.mubr.f32.mxu0 %v6446_v48 }
  0xd1   : > { %5446 = vmatpush3.msra.mxu0 %v1844_v11  ;;  %5418 = vmatprep.mubr.f32.mxu1 %v6303_v51  ;;  %v1840_v51 = vld [vmem:[%s8337_s1 + $0x410] sm:$0xff] }
  0xd2   : > { %5363 = vmatmul.mubr.f32.gmra.mxu0 %v6448_v49  ;;  %5447 = vmatprep.subr.mxu0 %v1843_v12 }
  0xd3   : > { %5448 = vmatpush3.msra.mxu0 %v1843_v12  ;;  %5419 = vmatmul.mubr.f32.gmra.mxu1 %v6305_v52  ;;  %v1451_v52 = vld [vmem:[#allocation2 + $0x130] sm:$0xff]  ;;  %v2034_v12 = vld [vmem:[%s8338_s2 + $0x18] sm:$0xff] }
  0xd4   : > { %5449 = vmatprep.subr.mxu0 %v1842_v45  ;;  %5365 = vmatprep.mubr.f32.mxu0 %v6466_v56 }
  0xd5   : > { %5450 = vmatpush3.msra.mxu0 %v1842_v45  ;;  %5421 = vmatprep.mubr.f32.mxu1 %v6323_v59  ;;  %v1838_v59 = vld [vmem:[%s8337_s1 + $0x400] sm:$0xff] }
  0xd6   : > { %5366 = vmatmul.mubr.f32.gmra.mxu0 %v6468_v57  ;;  %5451 = vmatprep.subr.mxu0 %v1841_v46 }
  0xd7   : > { %5452 = vmatpush3.msra.mxu0 %v1841_v46  ;;  %5422 = vmatmul.mubr.f32.gmra.mxu1 %v6325_v60  ;;  %v1829_v60 = vld [vmem:[#allocation2 + $0x92] sm:$0xff] }
  0xd8   : > { %5453 = vmatprep.subr.mxu0 %v1840_v51  ;;  %5368 = vmatprep.mubr.f32.mxu0 %v6637_v29 }
  0xd9   : > { %5454 = vmatpush3.msra.mxu0 %v1840_v51  ;;  %5424 = vmatprep.mubr.f32.mxu1 %v6391_v22  ;;  %v2033_v51 = vld [vmem:[%s8338_s2 + $0x10] sm:$0xff] }
  0xda   : > { %5369 = vmatmul.mubr.f32.gmra.mxu0 %v1451_v52  ;;  %5455 = vmatprep.subr.mxu0 %v1839_v17  ;;  %v2032_v52 = vld [vmem:[%s8338_s2 + $0x8] sm:$0xff] }
  0xdb   : > { %5456 = vmatpush3.msra.mxu0 %v1839_v17  ;;  %5425 = vmatmul.mubr.f32.gmra.mxu1 %v1644_v21 }
  0xdc   : > { %5457 = vmatprep.subr.mxu0 %v1838_v59  ;;  %5459 = vmatprep.mubr.f32.mxu0 %v6502_v9 }
  0xdd   : > { %5458 = vmatpush3.msra.mxu0 %v1838_v59  ;;  %5484 = vmatpush3.msra.mxu1 %v2046_v8 }
  0xde   : > { %5460 = vmatmul.mubr.f32.vlgmr.msra.gmra.mxu0 %v6505_v13  ;;  %5485 = vmatprep.subr.mxu1 %v2045_v27 }
  0xdf   : > { %5462 = vmatprep.mubr.f32.mxu0 %v6522_v19  ;;  %5486 = vmatpush3.msra.mxu1 %v2045_v27 }
  0xe0   : > { %5487 = vmatprep.subr.mxu1 %v2044_v40 }
  0xe1   : > { %5488 = vmatpush3.msra.mxu1 %v2044_v40 }
  0xe2   : > { %5463 = vmatmul.mubr.f32.gmra.mxu0 %v6524_v23  ;;  %v1837_v23 = vld [vmem:[#allocation2 + $0x132] sm:$0xff]  ;;  %5489 = vmatprep.subr.mxu1 %v2043_v35 }
  0xe3   : > { %5465 = vmatprep.mubr.f32.mxu0 %v6542_v31  ;;  %5490 = vmatpush3.msra.mxu1 %v2043_v35 }
  0xe4   : > { %5491 = vmatprep.subr.mxu1 %v2042_v44 }
  0xe5   : > { %5492 = vmatpush3.msra.mxu1 %v2042_v44 }
  0xe6   : > { %5466 = vmatmul.mubr.f32.gmra.mxu0 %v6544_v34  ;;  %5493 = vmatprep.subr.mxu1 %v2041_v18 }
  0xe7   : > { %5468 = vmatprep.mubr.f32.mxu0 %v6703_v7  ;;  %5494 = vmatpush3.msra.mxu1 %v2041_v18 }
  0xea   : > { %5469 = vmatmul.mubr.f32.gmra.mxu0 %v1829_v60  ;;  %v2031_v60 = vld [vmem:[%s8338_s2] sm:$0xff] }
  0xeb   : > { %5471 = vmatprep.mubr.f32.mxu0 %v6581_v58 }
  0xed   : > { %v5013_v22 = vpop.f32.mrf.mxu0 }
  0xee   : > { %5472 = vmatmul.mubr.f32.gmra.mxu0 %v6583_v61  ;;  %v5069_v39 = vpop.f32.mrf.mxu1 }
  0xef   : > { %5474 = vmatprep.mubr.f32.mxu0 %v6601_v5  ;;  %v6864_v41 = vadd.f32 %v5069_v39, %v5013_v22  ;;  %v6866_v48 = vpop.f32.mrf.mxu0 }
  0xf0   : > { %v6868_v49 = vpop.f32.mrf.mxu1 }
  0xf2   : > { %5475 = vmatmul.mubr.f32.gmra.mxu0 %v6603_v6  ;;  %v5016_v56 = vpop.f32.mrf.mxu0 }
  0xf3   : > { %5477 = vmatprep.mubr.f32.mxu0 %v6621_v63  ;;  %v5072_v57 = vpop.f32.mrf.mxu1 }
  0xf4   : > { %v6872_v9 = vadd.f32 %v5072_v57, %v5016_v56  ;;  %v6874_v13 = vpop.f32.mrf.mxu0 }
  0xf5   : > { %v6876_v19 = vpop.f32.mrf.mxu1 }
  0xf6   : > { %5478 = vmatmul.mubr.f32.gmra.mxu0 %v6623_v16 }
  0xf7   : > { %5480 = vmatprep.mubr.f32.mxu0 %v6769_v50  ;;  %v2040_v50 = vld [vmem:[%s8338_s2 + $0x48] sm:$0xff] }
  0xf8   : > { %v5019_v31 = vpop.f32.mrf.mxu0  ;;  %5495 = vmatprep.subr.mxu1 %v2040_v50 }
  0xf9   : > { %v5075_v34 = vpop.f32.mrf.mxu1  ;;  %5496 = vmatpush3.msra.mxu1 %v2040_v50  ;;  %v2351_v50 = vld [vmem:[%s8337_s1 + $0xf8] sm:$0xff] }
  0xfa   : > { %5481 = vmatmul.mubr.f32.gmra.mxu0 %v1837_v23  ;;  %v6880_v42 = vadd.f32 %v5075_v34, %v5019_v31  ;;  %v6882_v58 = vpop.f32.mrf.mxu0  ;;  %5497 = vmatprep.subr.mxu1 %v2039_v62 }
  0xfb   : > { %v6884_v61 = vpop.f32.mrf.mxu1  ;;  %5498 = vmatpush3.msra.mxu1 %v2039_v62  ;;  %v2350_v62 = vld [vmem:[%s8337_s1 + $0xf0] sm:$0xff]  ;;  %5539 = vmatprep.subr.mxu0 %v2351_v50 }
  0xfc   : > { %5499 = vmatprep.subr.mxu1 %v2038_v0  ;;  %5540 = vmatpush3.msra.mxu0 %v2351_v50 }
  0xfd   : > { %5500 = vmatpush3.msra.mxu1 %v2038_v0  ;;  %v2349_v0 = vld [vmem:[%s8337_s1 + $0xe8] sm:$0xff]  ;;  %5541 = vmatprep.subr.mxu0 %v2350_v62 }
  0xfe   : > { %v5022_v5 = vpop.f32.mrf.mxu0  ;;  %5501 = vmatprep.subr.mxu1 %v2037_v24  ;;  %5542 = vmatpush3.msra.mxu0 %v2350_v62 }
  0xff   : > { %v5078_v6 = vpop.f32.mrf.mxu1  ;;  %5502 = vmatpush3.msra.mxu1 %v2037_v24  ;;  %v2348_v24 = vld [vmem:[%s8337_s1 + $0xe0] sm:$0xff]  ;;  %5543 = vmatprep.subr.mxu0 %v2349_v0 }
 0x100   : > { %v6886_v63 = vadd.f32 %v5078_v6, %v5022_v5  ;;  %v6888_v29 = vpop.f32.mrf.mxu0  ;;  %5503 = vmatprep.subr.mxu1 %v2036_v4  ;;  %5544 = vmatpush3.msra.mxu0 %v2349_v0 }
 0x101   : > { %v6890_v1 = vpop.f32.mrf.mxu1  ;;  %5504 = vmatpush3.msra.mxu1 %v2036_v4  ;;  %5545 = vmatprep.subr.mxu0 %v2348_v24 }
 0x102   : > { %5505 = vmatprep.subr.mxu1 %v2035_v10  ;;  %5546 = vmatpush3.msra.mxu0 %v2348_v24 }
 0x103   : > { %5506 = vmatpush3.msra.mxu1 %v2035_v10 }
 0x104   : > { %v5025_v16 = vpop.f32.mrf.mxu0  ;;  %5507 = vmatprep.subr.mxu1 %v2034_v12 }
 0x105   : > { %v5081_v7 = vpop.f32.mrf.mxu1  ;;  %5508 = vmatpush3.msra.mxu1 %v2034_v12 }
 0x106   : > { %v6895_v14 = vadd.f32 %v5081_v7, %v5025_v16  ;;  %v6897_v15 = vpop.f32.mrf.mxu0  ;;  %5509 = vmatprep.subr.mxu1 %v2033_v51 }
 0x107   : > { %v6899_v25 = vpop.f32.mrf.mxu1  ;;  %5510 = vmatpush3.msra.mxu1 %v2033_v51  ;;  %v2346_v51 = vld [vmem:[%s8337_s1 + $0xd0] sm:$0xff] }
 0x108   : > { %5511 = vmatprep.subr.mxu1 %v2032_v52 }
 0x109   : > { %5512 = vmatpush3.msra.mxu1 %v2032_v52 }
 0x10a   : > { %v5028_v28 = vpop.f32.mrf.mxu0  ;;  %5513 = vmatprep.subr.mxu1 %v2031_v60 }
 0x10b   : > { %v5084_v47 = vpop.f32.mrf.mxu1  ;;  %5514 = vmatpush3.msra.mxu1 %v2031_v60 }
 0x10c   : > { %v6910_v37 = vadd.f32 %v5084_v47, %v5028_v28  ;;  %v6912_v38 = vpop.f32.mrf.mxu0 }
 0x10d   : > { %v6914_v43 = vpop.f32.mrf.mxu1 }
 0x110   : > { %v5031_v20 = vpop.f32.mrf.mxu0 }
 0x111   : > { %v5087_v2 = vpop.f32.mrf.mxu1 }
 0x112   : > { %v6925_v53 = vadd.f32 %v5087_v2, %v5031_v20  ;;  %v6927_v54 = vpop.f32.mrf.mxu0 }
 0x113   : > { %v6929_v55 = vpop.f32.mrf.mxu1 }
 0x116   : > { %v5034_v33 = vpop.f32.mrf.mxu0 }
 0x117   : > { %v5090_v3 = vpop.f32.mrf.mxu1 }
 0x118   : > { %v6940_v26 = vadd.f32 %v5090_v3, %v5034_v33  ;;  %v6942_v30 = vpop.f32.mrf.mxu0 }
 0x119   : > { %v6950_v36 = vpop.f32.mrf.mxu1 }
 0x11c   : > { %v5125_v32 = vpop.f32.mrf.mxu0 }
 0x11d   : > { %v6953_v11 = vadd.f32 %v5125_v32, %v6864_v41  ;;  %v2347_v32 = vld [vmem:[%s8337_s1 + $0xd8] sm:$0xff] }
 0x11e   : > { %v6958_v45 = vpop.f32.mrf.mxu0  ;;  %5547 = vmatprep.subr.mxu0 %v2347_v32 }
 0x11f   : > { %v6960_v46 = vpop.f32.mrf.mxu1  ;;  %5548 = vmatpush3.msra.mxu0 %v2347_v32 }
 0x120   : > { %5549 = vmatprep.subr.mxu0 %v2346_v51 }
 0x121   : > { %v6968_v21 = vpop.f32.mrf.mxu1  ;;  %5550 = vmatpush3.msra.mxu0 %v2346_v51 }
 0x122   : > { %v5128_v17 = vpop.f32.mrf.mxu0 }
 0x123   : > { %v6971_v59 = vadd.f32 %v5128_v17, %v6872_v9  ;;  %v2345_v17 = vld [vmem:[%s8337_s1 + $0xc8] sm:$0xff] }
 0x124   : > { %v6976_v22 = vpop.f32.mrf.mxu0  ;;  %5551 = vmatprep.subr.mxu0 %v2345_v17 }
 0x125   : > { %v6978_v39 = vpop.f32.mrf.mxu1  ;;  %5552 = vmatpush3.msra.mxu0 %v2345_v17 }
 0x127   : > { %v6980_v56 = vpop.f32.mrf.mxu1 }
 0x128   : > { %v5131_v41 = vpop.f32.mrf.mxu0 }
 0x129   : > { %v6983_v57 = vadd.f32 %v5131_v41, %v6880_v42  ;;  %v2344_v41 = vld [vmem:[%s8337_s1 + $0xc0] sm:$0xff] }
 0x12a   : > { %v6985_v23 = vpop.f32.mrf.mxu0  ;;  %5553 = vmatprep.subr.mxu0 %v2344_v41 }
 0x12b   : > { %v6987_v9 = vpop.f32.mrf.mxu1  ;;  %5554 = vmatpush3.msra.mxu0 %v2344_v41 }
 0x12d   : > { %v6989_v34 = vpop.f32.mrf.mxu1 }
 0x12e   : > { %v5134_v31 = vpop.f32.mrf.mxu0 }
 0x12f   : > { %v6992_v5 = vadd.f32 %v5134_v31, %v6886_v63 }
 0x130   : > { %v6994_v6 = vpop.f32.mrf.mxu0 }
 0x131   : > { %v6996_v16 = vpop.f32.mrf.mxu1 }
 0x133   : > { %v6998_v8 = vpop.f32.mrf.mxu1 }
 0x134   : > { %v5137_v7 = vpop.f32.mrf.mxu0 }
 0x135   : > { %v7001_v42 = vadd.f32 %v5137_v7, %v6895_v14  ;;  %v2343_v7 = vld [vmem:[%s8337_s1 + $0xb8] sm:$0xff] }
 0x136   : > { %v7003_v27 = vpop.f32.mrf.mxu0  ;;  %5555 = vmatprep.subr.mxu0 %v2343_v7 }
 0x137   : > { %v7005_v40 = vpop.f32.mrf.mxu1  ;;  %5556 = vmatpush3.msra.mxu0 %v2343_v7 }
 0x138   : > { %8358 = vst [vmem:[#allocation4_spill] sm:$0xff] %v7005_v40 }
 0x139   : > { %v7007_v47 = vpop.f32.mrf.mxu1 }
 0x13a   : > { %v5140_v28 = vpop.f32.mrf.mxu0  ;;  %8359 = vst [vmem:[#allocation5_spill] sm:$0xff] %v7007_v47 }
 0x13b   : > { %v7010_v63 = vadd.f32 %v5140_v28, %v6910_v37  ;;  %v7029_v37 = vld [vmem:[%s8337_s1 + $0x78] sm:$0xff] }
 0x13c   : > { %v7012_v35 = vpop.f32.mrf.mxu0  ;;  %8366 = vst [vmem:[#allocation12_spill] sm:$0xff] %v7029_v37  ;;  %5595 = vmatprep.subr.mxu1 %v7029_v37 }
 0x13d   : > { %8360 = vst [vmem:[#allocation6_spill] sm:$0xff] %v7010_v63  ;;  %8361 = vst [vmem:[#allocation7_spill] sm:$0xff] %v7012_v35  ;;  %v7014_v44 = vpop.f32.mrf.mxu1 }
 0x13e   : > { %8362 = vst [vmem:[#allocation8_spill] sm:$0xff] %v7014_v44 }
 0x13f   : > { %v7016_v20 = vpop.f32.mrf.mxu1 }
 0x140   : > { %v5143_v18 = vpop.f32.mrf.mxu0  ;;  %8363 = vst [vmem:[#allocation9_spill] sm:$0xff] %v7016_v20 }
 0x141   : > { %v7019_v14 = vadd.f32 %v5143_v18, %v6925_v53 }
 0x142   : > { %v7021_v2 = vpop.f32.mrf.mxu0 }
 0x143   : > { %8364 = vst [vmem:[#allocation10_spill] sm:$0xff] %v7019_v14  ;;  %8365 = vst [vmem:[#allocation11_spill] sm:$0xff] %v7021_v2  ;;  %v7035_v53 = vpop.f32.mrf.mxu1 }
 0x144   : > { %8367 = vst [vmem:[#allocation13_spill] sm:$0xff] %v7035_v53 }
 0x145   : > { %v7040_v3 = vpop.f32.mrf.mxu1 }
 0x146   : > { %v5146_v33 = vpop.f32.mrf.mxu0  ;;  %8368 = vst [vmem:[#allocation14_spill] sm:$0xff] %v7040_v3 }
 0x147   : > { %v7046_v4 = vadd.f32 %v5146_v33, %v6940_v26 }
 0x148   : > { %v7048_v10 = vpop.f32.mrf.mxu0 }
 0x149   : > { %8369 = vst [vmem:[#allocation15_spill] sm:$0xff] %v7046_v4  ;;  %8370 = vst [vmem:[#allocation16_spill] sm:$0xff] %v7048_v10  ;;  %v7053_v12 = vpop.f32.mrf.mxu1 }
 0x14a   : > { %8371 = vst [vmem:[#allocation17_spill] sm:$0xff] %v7053_v12 }
 0x14b   : > { %v7058_v52 = vpop.f32.mrf.mxu1 }
 0x14c   : > { %8372 = vst [vmem:[#allocation18_spill] sm:$0xff] %v7058_v52  ;;  %v7060_v26 = vpop.f32.mrf.mxu0 }
 0x14e   : > { %v7065_v60 = vpop.f32.mrf.mxu0 }
 0x14f   : > { %v7070_v31 = vpop.f32.mrf.mxu1 }
 0x151   : > { %v7077_v18 = vpop.f32.mrf.mxu1 }
 0x152   : > { %v7075_v28 = vpop.f32.mrf.mxu0 }
 0x154   : > { %v7079_v50 = vpop.f32.mrf.mxu0 }
 0x155   : > { %v7081_v62 = vpop.f32.mrf.mxu1 }
 0x157   : > { %v7085_v33 = vpop.f32.mrf.mxu1 }
 0x158   : > { %v7083_v0 = vpop.f32.mrf.mxu0 }
 0x15a   : > { %v7087_v24 = vpop.f32.mrf.mxu0 }
 0x15b   : > { %v7089_v32 = vpop.f32.mrf.mxu1 }
 0x15d   : > { %v7093_v17 = vpop.f32.mrf.mxu1 }
 0x15e   : > { %v7091_v51 = vpop.f32.mrf.mxu0 }
 0x160   : > { %v7095_v52 = vpop.f32.mrf.mxu0 }
 0x161   : > { %v7097_v41 = vpop.f32.mrf.mxu1 }
 0x162   : > { %8373 = vst [vmem:[#allocation19_spill] sm:$0xff] %v7097_v41 }
 0x163   : > { %v7101_v7 = vpop.f32.mrf.mxu1 }
 0x164   : > { %v7099_v12 = vpop.f32.mrf.mxu0  ;;  %8375 = vst [vmem:[#allocation21_spill] sm:$0xff] %v7101_v7 }
 0x165   : > { %8374 = vst [vmem:[#allocation20_spill] sm:$0xff] %v7099_v12 }
 0x166   : > { %v7103_v4 = vpop.f32.mrf.mxu0 }
 0x167   : > { %8376 = vst [vmem:[#allocation22_spill] sm:$0xff] %v7103_v4  ;;  %v7105_v10 = vpop.f32.mrf.mxu1 }
 0x168   : > { %8377 = vst [vmem:[#allocation23_spill] sm:$0xff] %v7105_v10 }
 0x169   : > { %v7109_v37 = vpop.f32.mrf.mxu1 }
 0x16a   : > { %v7107_v3 = vpop.f32.mrf.mxu0  ;;  %8379 = vst [vmem:[#allocation25_spill] sm:$0xff] %v7109_v37 }
 0x16b   : > { %8378 = vst [vmem:[#allocation24_spill] sm:$0xff] %v7107_v3 }
 0x16c   : > { %v7111_v53 = vpop.f32.mrf.mxu0 }
 0x16d   : > { %8380 = vst [vmem:[#allocation26_spill] sm:$0xff] %v7111_v53  ;;  %v7113_v14 = vpop.f32.mrf.mxu1 }
 0x16e   : > { %8381 = vst [vmem:[#allocation27_spill] sm:$0xff] %v7113_v14 }
 0x16f   : > { %v7117_v20 = vpop.f32.mrf.mxu1 }
 0x170   : > { %v7115_v2 = vpop.f32.mrf.mxu0  ;;  %8383 = vst [vmem:[#allocation29_spill] sm:$0xff] %v7117_v20 }
 0x171   : > { %8382 = vst [vmem:[#allocation28_spill] sm:$0xff] %v7115_v2 }
 0x172   : > { %v7119_v44 = vpop.f32.mrf.mxu0 }
 0x173   : > { %8384 = vst [vmem:[#allocation30_spill] sm:$0xff] %v7119_v44  ;;  %v7121_v63 = vpop.f32.mrf.mxu1 }
 0x174   : > { %8385 = vst [vmem:[#allocation31_spill] sm:$0xff] %v7121_v63 }
 0x175   : > { %v7125_v4 = vpop.f32.mrf.mxu1 }
 0x176   : > { %v7123_v7 = vpop.f32.mrf.mxu0  ;;  %8387 = vst [vmem:[#allocation33_spill] sm:$0xff] %v7125_v4 }
 0x177   : > { %8386 = vst [vmem:[#allocation32_spill] sm:$0xff] %v7123_v7 }
 0x178   : > { %v7127_v10 = vpop.f32.mrf.mxu0 }
 0x179   : > { %8388 = vst [vmem:[#allocation34_spill] sm:$0xff] %v7127_v10  ;;  %v7129_v3 = vpop.f32.mrf.mxu1 }
 0x17a   : > { %8389 = vst [vmem:[#allocation35_spill] sm:$0xff] %v7129_v3 }
 0x17b   : > { %v7131_v37 = vpop.f32.mrf.mxu1 }
 0x17c   : > { %8390 = vst [vmem:[#allocation36_spill] sm:$0xff] %v7131_v37  ;;  %v5349_v53 = vpop.f32.mrf.mxu0  ;;  %v585_v37 = vadd.f32 %v6868_v49, %v6866_v48 }
 0x17e   : > { %v1534_v14 = vpop.f32.mrf.mxu0  ;;  %v840_v40 = vadd.f32 %v6958_v45, %v585_v37  ;;  %v605_v37 = vadd.f32 %v6884_v61, %v6882_v58  ;;  %v615_v58 = vadd.f32 %v6890_v1, %v6888_v29 }
 0x17f   : > { %v5405_v12 = vpop.f32.mrf.mxu1 }
 0x181   : > { %v1727_v2 = vpop.f32.mrf.mxu1  ;;  %v5352_v41 = vpop.f32.mrf.mxu0 }
 0x183   : > { %v1544_v20 = vpop.f32.mrf.mxu0  ;;  %v7133_v47 = vpop.f32.mrf.mxu1 }
 0x184   : > { %8391 = vst [vmem:[#allocation37_spill] sm:$0xff] %v7133_v47 }
 0x185   : > { %v7137_v63 = vpop.f32.mrf.mxu1 }
 0x186   : > { %v7135_v44 = vpop.f32.mrf.mxu0 }
 0x187   : > { %8392 = vst [vmem:[#allocation38_spill] sm:$0xff] %v7135_v44  ;;  %v7143_v10 = vpop.f32.mrf.mxu1 }
 0x188   : > { %v7139_v7 = vpop.f32.mrf.mxu0  ;;  %8395 = vst [vmem:[#allocation41_spill] sm:$0xff] %v7143_v10 }
 0x189   : > { %8393 = vst [vmem:[#allocation39_spill] sm:$0xff] %v7139_v7  ;;  %v7152_v47 = vpop.f32.mrf.mxu1  ;;  %v595_v7 = vadd.f32 %v6876_v19, %v6874_v13  ;;  %v1036_v19 = vadd.f32 %v6978_v39, %v6971_v59  ;;  %v1038_v39 = vadd.f32 %v6987_v9, %v6983_v57 }
 0x18a   : > { %v7141_v4 = vpop.f32.mrf.mxu0 }
 0x18b   : > { %8394 = vst [vmem:[#allocation40_spill] sm:$0xff] %v7141_v4  ;;  %v1034_v4 = vadd.f32 %v6960_v46, %v6953_v11  ;;  %v842_v48 = vadd.f32 %v6976_v22, %v595_v7  ;;  %v1231_v7 = vadd.f32 %v7083_v0, %v1038_v39  ;;  %v8406_v39 = vld [vmem:[#allocation6_spill] sm:$0xff] }
 0x18c   : > { %v7145_v3 = vpop.f32.mrf.mxu0 }
 0x18d   : > { %8396 = vst [vmem:[#allocation42_spill] sm:$0xff] %v7145_v3  ;;  %v1033_v3 = vadd.f32 %v6968_v21, %v840_v40  ;;  %v1227_v49 = vadd.f32 %v7060_v26, %v1034_v4  ;;  %v1035_v46 = vadd.f32 %v6980_v56, %v842_v48  ;;  %v844_v21 = vadd.f32 %v6985_v23, %v605_v37 }
 0x18e   : > { %v7149_v35 = vpop.f32.mrf.mxu0  ;;  %v1229_v40 = vadd.f32 %v7075_v28, %v1036_v19 }
 0x18f   : > { %8397 = vst [vmem:[#allocation43_spill] sm:$0xff] %v7149_v35  ;;  %v7165_v35 = vpop.f32.mrf.mxu1  ;;  %v1226_v13 = vadd.f32 %v7065_v60, %v1033_v3  ;;  %v1420_v22 = vadd.f32 %v7070_v31, %v1227_v49  ;;  %v1228_v59 = vadd.f32 %v7079_v50, %v1035_v46  ;;  %v1037_v3 = vadd.f32 %v6989_v34, %v844_v21  ;;  %v8404_v21 = vld [vmem:[#allocation19_spill] sm:$0xff] }
 0x190   : > { %v7154_v44 = vpop.f32.mrf.mxu0  ;;  %v846_v60 = vadd.f32 %v6994_v6, %v615_v58  ;;  %v1422_v28 = vadd.f32 %v7081_v62, %v1229_v40  ;;  %v635_v34 = vadd.f32 %v6914_v43, %v6912_v38  ;;  %v1040_v6 = vadd.f32 %v6996_v16, %v6992_v5 }
 0x191   : > { %v7180_v4 = vpop.f32.mrf.mxu1  ;;  %v1419_v61 = vadd.f32 %v7077_v18, %v1226_v13  ;;  %v1614_v56 = vadd.f32 %v5349_v53, %v1420_v22  ;;  %v625_v18 = vadd.f32 %v6899_v25, %v6897_v15  ;;  %v1421_v57 = vadd.f32 %v7085_v33, %v1228_v59  ;;  %v8402_v13 = vld [vmem:[#allocation5_spill] sm:$0xff]  ;;  %v8405_v22 = vld [vmem:[#allocation20_spill] sm:$0xff] }
 0x192   : > { %v7160_v10 = vpop.f32.mrf.mxu0  ;;  %v1230_v9 = vadd.f32 %v7087_v24, %v1037_v3  ;;  %v1616_v53 = vadd.f32 %v5352_v41, %v1422_v28  ;;  %v1039_v62 = vadd.f32 %v6998_v8, %v846_v60  ;;  %v645_v15 = vadd.f32 %v6929_v55, %v6927_v54  ;;  %v8399_v54 = vld [vmem:[#allocation7_spill] sm:$0xff]  ;;  %v8400_v24 = vld [vmem:[#allocation37_spill] sm:$0xff]  ;;  %v8409_v28 = vld [vmem:[#allocation22_spill] sm:$0xff] }
 0x193   : > { %v1613_v31 = vadd.f32 %v1534_v14, %v1419_v61  ;;  %v7196_v29 = vpop.f32.mrf.mxu1  ;;  %v1807_v14 = vadd.f32 %v5405_v12, %v1614_v56  ;;  %v848_v0 = vadd.f32 %v7003_v27, %v625_v18  ;;  %v1615_v49 = vadd.f32 %v1544_v20, %v1421_v57  ;;  %v8398_v20 = vld [vmem:[#allocation4_spill] sm:$0xff]  ;;  %v8408_v60 = vld [vmem:[#allocation21_spill] sm:$0xff]  ;;  %v2318_v18 = vld [vmem:[%s8337_s1 + $0x70] sm:$0xff] }
 0x194   : > { %v7167_v45 = vpop.f32.mrf.mxu0  ;;  %v1424_v25 = vadd.f32 %v7089_v32, %v1231_v7  ;;  %v1233_v33 = vadd.f32 %v7091_v51, %v1040_v6  ;;  %v655_v16 = vadd.f32 %v6950_v36, %v6942_v30  ;;  %v1423_v8 = vadd.f32 %v7093_v17, %v1230_v9  ;;  %v8401_v51 = vld [vmem:[#allocation38_spill] sm:$0xff]  ;;  %v8403_v30 = vld [vmem:[#allocation39_spill] sm:$0xff]  ;;  %v8407_v56 = vld [vmem:[#allocation8_spill] sm:$0xff] }
 0x195   : > { %v1806_v48 = vadd.f32 %v1727_v2, %v1613_v31  ;;  %v7214_v38 = vpop.f32.mrf.mxu1  ;;  %v1232_v27 = vadd.f32 %v7095_v52, %v1039_v62  ;;  %v1042_v12 = vadd.f32 %v8398_v20, %v7001_v42  ;;  %v850_v55 = vadd.f32 %v8399_v54, %v635_v34  ;;  %v8410_v57 = vld [vmem:[#allocation9_spill] sm:$0xff]  ;;  %v8411_v34 = vld [vmem:[#allocation11_spill] sm:$0xff] }
 0x196   : > { %v7174_v11 = vpop.f32.mrf.mxu0  ;;  %v1809_v32 = vadd.f32 %v8400_v24, %v1616_v53  ;;  %v1618_v41 = vadd.f32 %v8401_v51, %v1424_v25  ;;  %v1041_v19 = vadd.f32 %v8402_v13, %v848_v0  ;;  %v1808_v46 = vadd.f32 %v7137_v63, %v1615_v49  ;;  %v8415_v49 = vld [vmem:[#allocation13_spill] sm:$0xff] }
 0x197   : > { %v1617_v36 = vadd.f32 %v8403_v30, %v1423_v8  ;;  %v1426_v52 = vadd.f32 %v8404_v21, %v1233_v33  ;;  %v1235_v40 = vadd.f32 %v8405_v22, %v1042_v12  ;;  %v7230_v58 = vpop.f32.mrf.mxu1  ;;  %v1044_v3 = vadd.f32 %v8407_v56, %v8406_v39  ;;  %v8419_v12 = vld [vmem:[#allocation24_spill] sm:$0xff]  ;;  %v8422_v30 = vld [vmem:[#allocation14_spill] sm:$0xff]  ;;  %v8423_v21 = vld [vmem:[#allocation43_spill] sm:$0xff] }
 0x198   : > { %v7182_v26 = vpop.f32.mrf.mxu0  ;;  %v1425_v31 = vadd.f32 %v8408_v60, %v1232_v27  ;;  %v1234_v7 = vadd.f32 %v8409_v28, %v1041_v19  ;;  %v1043_v9 = vadd.f32 %v8410_v57, %v850_v55  ;;  %v852_v6 = vadd.f32 %v8411_v34, %v645_v15  ;;  %v8417_v27 = vld [vmem:[#allocation12_spill] sm:$0xff]  ;;  %v2317_v15 = vld [vmem:[%s8337_s1 + $0x68] sm:$0xff]  ;;  %v2315_v56 = vld [vmem:[%s8337_s1 + $0x58] sm:$0xff] }
 0x199   : > { %v1810_v33 = vadd.f32 %v7152_v47, %v1617_v36  ;;  %v1237_v54 = vadd.f32 %v8419_v12, %v1044_v3  ;;  %v7253_v55 = vpop.f32.mrf.mxu1  ;;  %v8420_v47 = vld [vmem:[#allocation25_spill] sm:$0xff]  ;;  %v8425_v3 = vld [vmem:[#allocation27_spill] sm:$0xff]  ;;  %v2314_v34 = vld [vmem:[%s8337_s1 + $0x50] sm:$0xff] }
 0x19a   : > { %v7190_v23 = vpop.f32.mrf.mxu0  ;;  %v1045_v36 = vadd.f32 %v8422_v30, %v852_v6  ;;  %v8429_v6 = vld [vmem:[#allocation15_spill] sm:$0xff] }
 0x19b   : > { %v1430_v60 = vadd.f32 %v8425_v3, %v1237_v54  ;;  %v5423_v28 = vpop.f32.mrf.mxu1  ;;  %v8434_v54 = vld [vmem:[#allocation33_spill] sm:$0xff]  ;;  %v2311_v30 = vld [vmem:[%s8337_s1 + $0x38] sm:$0xff] }
 0x19c   : > { %v7198_v1 = vpop.f32.mrf.mxu0 }
 0x19e   : > { %v5461_v50 = vpop.f32.mrf.mxu0 }
 0x19f   : > { %v2000_v43 = vadd.f32 %v5461_v50, %v1807_v14  ;;  %v8412_v14 = vld [vmem:[#allocation41_spill] sm:$0xff]  ;;  %v8413_v50 = vld [vmem:[#allocation40_spill] sm:$0xff] }
 0x1a0   : > { %v1920_v5 = vpop.f32.mrf.mxu0  ;;  %v1811_v53 = vadd.f32 %v8412_v14, %v1618_v41  ;;  %v1620_v62 = vadd.f32 %v8413_v50, %v1426_v52  ;;  %v1427_v41 = vadd.f32 %v8420_v47, %v1234_v7  ;;  %v8430_v14 = vld [vmem:[#allocation17_spill] sm:$0xff] }
 0x1a1   : > { %v1999_v2 = vadd.f32 %v1920_v5, %v1806_v48  ;;  %v2016_v42 = vmax.f32 %v2000_v43, 0.0  ;;  %v8414_v48 = vld [vmem:[#allocation10_spill] sm:$0xff] }
 0x1a2   : > { %v5464_v37 = vpop.f32.mrf.mxu0  ;;  %v1046_v25 = vadd.f32 %v8415_v49, %v8414_v48  ;;  %v8416_v43 = vld [vmem:[#allocation42_spill] sm:$0xff] }
 0x1a3   : > { %v2015_v17 = vmax.f32 %v1999_v2, 0.0  ;;  %v2002_v61 = vadd.f32 %v5464_v37, %v1809_v32  ;;  %v1619_v5 = vadd.f32 %v8416_v43, %v1425_v31  ;;  %v8418_v2 = vld [vmem:[#allocation23_spill] sm:$0xff]  ;;  %v8421_v37 = vld [vmem:[#allocation26_spill] sm:$0xff] }
 0x1a4   : > { %v1930_v59 = vpop.f32.mrf.mxu0  ;;  %v1428_v20 = vadd.f32 %v8418_v2, %v1235_v40  ;;  %v1236_v13 = vadd.f32 %v8421_v37, %v1043_v9  ;;  %v8424_v40 = vld [vmem:[#allocation16_spill] sm:$0xff]  ;;  %v8431_v48 = vld [vmem:[#allocation18_spill] sm:$0xff] }
 0x1a5   : > { %v2001_v63 = vadd.f32 %v1930_v59, %v1808_v46  ;;  %5515 = vmatprep.mubr.f32.mxu1 %v2015_v17  ;;  %v2018_v24 = vmax.f32 %v2002_v61, 0.0  ;;  %v2316_v46 = vld [vmem:[%s8337_s1 + $0x60] sm:$0xff]  ;;  %v1813_v17 = vadd.f32 %v7165_v35, %v1620_v62  ;;  %v1812_v61 = vadd.f32 %v7180_v4, %v1619_v5  ;;  %v8428_v4 = vld [vmem:[#allocation30_spill] sm:$0xff]  ;;  %v2313_v5 = vld [vmem:[%s8337_s1 + $0x48] sm:$0xff] }
 0x1a6   : > { %v5467_v0 = vpop.f32.mrf.mxu0  ;;  %5516 = vmatmul.mubr.f32.vlgmr.msra.gmra.mxu1 %v2016_v42  ;;  %v1622_v52 = vadd.f32 %v8423_v21, %v1428_v20  ;;  %v854_v42 = vadd.f32 %v8424_v40, %v655_v16  ;;  %v1621_v59 = vadd.f32 %v7154_v44, %v1427_v41  ;;  %v8426_v35 = vld [vmem:[#allocation28_spill] sm:$0xff]  ;;  %v8427_v16 = vld [vmem:[#allocation29_spill] sm:$0xff]  ;;  %v1238_v9 = vadd.f32 %v8428_v4, %v1045_v36  ;;  %v8436_v36 = vld [vmem:[#allocation35_spill] sm:$0xff] }
 0x1a7   : > { %v2017_v8 = vmax.f32 %v2001_v63, 0.0  ;;  %5596 = vmatpush3.msra.mxu1 %v8417_v27  ;;  %v2004_v32 = vadd.f32 %v5467_v0, %v1811_v53  ;;  %v1239_v31 = vadd.f32 %v8426_v35, %v1046_v25  ;;  %v1429_v57 = vadd.f32 %v8427_v16, %v1236_v13 }
 0x1a8   : > { %v1940_v51 = vpop.f32.mrf.mxu0  ;;  %5597 = vmatprep.subr.mxu1 %v2318_v18  ;;  %v1048_v53 = vadd.f32 %v8430_v14, %v8429_v6  ;;  %v1815_v50 = vadd.f32 %v7196_v29, %v1622_v52  ;;  %v1624_v62 = vadd.f32 %v7160_v10, %v1430_v60  ;;  %v1047_v49 = vadd.f32 %v8431_v48, %v854_v42  ;;  %v8433_v29 = vld [vmem:[#allocation32_spill] sm:$0xff]  ;;  %v1787_v10 = vpop.f32.mrf.mxu1  ;;  %v2341_v6 = vld [vmem:[%s8337_s1 + $0xa8] sm:$0xff] }
 0x1a9   : > { %v2003_v19 = vadd.f32 %v1940_v51, %v1810_v33  ;;  %5518 = vmatprep.mubr.f32.mxu1 %v2017_v8  ;;  %5598 = vmatpush3.msra.mxu1 %v2318_v18  ;;  %v2020_v7 = vmax.f32 %v2004_v32, 0.0  ;;  %v1814_v25 = vadd.f32 %v7214_v38, %v1621_v59  ;;  %v1623_v33 = vadd.f32 %v7167_v45, %v1429_v57  ;;  %v8432_v8 = vld [vmem:[#allocation31_spill] sm:$0xff]  ;;  %v8435_v38 = vld [vmem:[#allocation34_spill] sm:$0xff]  ;;  %v2312_v51 = vld [vmem:[%s8337_s1 + $0x40] sm:$0xff] }
 0x1aa   : > { %v5470_v22 = vpop.f32.mrf.mxu0  ;;  %5519 = vmatmul.mubr.f32.gmra.mxu1 %v2018_v24  ;;  %5599 = vmatprep.subr.mxu1 %v2317_v15  ;;  %v1432_v27 = vadd.f32 %v8432_v8, %v1239_v31  ;;  %v1431_v24 = vadd.f32 %v8434_v54, %v1238_v9  ;;  %v1240_v32 = vadd.f32 %v8435_v38, %v1047_v49  ;;  %v5426_v21 = vpop.f32.mrf.mxu1  ;;  %v2340_v14 = vld [vmem:[%s8337_s1 + $0xa0] sm:$0xff]  ;;  %v2337_v48 = vld [vmem:[%s8337_s1 + $0x88] sm:$0xff]  ;;  %v2306_v8 = vld [vmem:[%s8337_s1 + $0x10] sm:$0xff] }
 0x1ab   : > { %v2019_v39 = vmax.f32 %v2003_v19, 0.0  ;;  %5600 = vmatpush3.msra.mxu1 %v2317_v15  ;;  %v2006_v63 = vadd.f32 %v5470_v22, %v1813_v17  ;;  %v1241_v15 = vadd.f32 %v8433_v29, %v1048_v53  ;;  %v1817_v47 = vadd.f32 %v7230_v58, %v1624_v62  ;;  %v2339_v53 = vld [vmem:[%s8337_s1 + $0x98] sm:$0xff]  ;;  %v2338_v62 = vld [vmem:[%s8337_s1 + $0x90] sm:$0xff]  ;;  %v2308_v49 = vld [vmem:[%s8337_s1 + $0x20] sm:$0xff] }
 0x1ac   : > { %v1950_v18 = vpop.f32.mrf.mxu0  ;;  %5601 = vmatprep.subr.mxu1 %v2316_v46  ;;  %v1626_v41 = vadd.f32 %v7174_v11, %v1432_v27  ;;  %v1816_v13 = vadd.f32 %v7253_v55, %v1623_v33  ;;  %v1625_v19 = vadd.f32 %v7182_v26, %v1431_v24  ;;  %v8437_v11 = vld [vmem:[#allocation36_spill] sm:$0xff]  ;;  %v1797_v3 = vpop.f32.mrf.mxu1  ;;  %v2305_v27 = vld [vmem:[%s8337_s1 + $0x8] sm:$0xff] }
 0x1ad   : > { %v2005_v44 = vadd.f32 %v1950_v18, %v1812_v61  ;;  %5521 = vmatprep.mubr.f32.mxu1 %v2019_v39  ;;  %5602 = vmatpush3.msra.mxu1 %v2316_v46  ;;  %v2022_v2 = vmax.f32 %v2006_v63, 0.0  ;;  %v1434_v17 = vadd.f32 %v8436_v36, %v1241_v15  ;;  %v1433_v40 = vadd.f32 %v8437_v11, %v1240_v32  ;;  %v2320_v33 = vld [vmem:[#allocation2 + $0x1] sm:$0xff] }
 0x1ae   : > { %v5473_v0 = vpop.f32.mrf.mxu0  ;;  %5522 = vmatmul.mubr.f32.gmra.mxu1 %v2020_v7  ;;  %5603 = vmatprep.subr.mxu1 %v2315_v56  ;;  %v1819_v55 = vadd.f32 %v5423_v28, %v1626_v41  ;;  %v1818_v59 = vadd.f32 %v1787_v10, %v1625_v19  ;;  %v2304_v29 = vld [vmem:[%s8337_s1] sm:$0xff]  ;;  %v2866_v10 = vld [vmem:[%s8337_s1 + $0x1f8] sm:$0xff] }
 0x1af   : > { %v2021_v43 = vmax.f32 %v2005_v44, 0.0  ;;  %5604 = vmatpush3.msra.mxu1 %v2315_v56  ;;  %v2008_v20 = vadd.f32 %v5473_v0, %v1815_v50  ;;  %v1628_v26 = vadd.f32 %v7190_v23, %v1434_v17  ;;  %v1627_v39 = vadd.f32 %v7198_v1, %v1433_v40  ;;  %v2310_v50 = vld [vmem:[%s8337_s1 + $0x30] sm:$0xff]  ;;  %v2309_v0 = vld [vmem:[%s8337_s1 + $0x28] sm:$0xff]  ;;  %5571 = vmatprep.mubr.f32.mxu0 %v2320_v33  ;;  %v2288_v15 = vld [vmem:[#allocation2] sm:$0xff] }
 0x1b0   : > { %v1960_v12 = vpop.f32.mrf.mxu0  ;;  %5605 = vmatprep.subr.mxu1 %v2314_v34  ;;  %v6109_v38 = vld [vmem:[%s6211_s16] sm:$0xff]  ;;  %v2671_v17 = vld [vmem:[%s8337_s1 + $0x168] sm:$0xff] }
 0x1b1   : > { %v2007_v45 = vadd.f32 %v1960_v12, %v1814_v25  ;;  %5524 = vmatprep.mubr.f32.mxu1 %v2021_v43  ;;  %5606 = vmatpush3.msra.mxu1 %v2314_v34  ;;  %v2024_v52 = vmax.f32 %v2008_v20, 0.0  ;;  %v1821_v63 = vadd.f32 %v5426_v21, %v1628_v26  ;;  %v1820_v28 = vadd.f32 %v1797_v3, %v1627_v39  ;;  %v2342_v34 = vld [vmem:[%s8337_s1 + $0xb0] sm:$0xff]  ;;  %v2336_v25 = vld [vmem:[%s8337_s1 + $0x80] sm:$0xff]  ;;  %v2307_v43 = vld [vmem:[%s8337_s1 + $0x18] sm:$0xff] }
 0x1b2   : > { %v5476_v37 = vpop.f32.mrf.mxu0  ;;  %5525 = vmatmul.mubr.f32.gmra.mxu1 %v2022_v2  ;;  %5607 = vmatprep.subr.mxu1 %v2313_v5  ;;  %v6108_v20 = vld [vmem:[%s6211_s16 + $0x8] sm:$0xff]  ;;  %v2670_v11 = vld [vmem:[%s8337_s1 + $0x160] sm:$0xff] }
 0x1b3   : > { %v2023_v46 = vmax.f32 %v2007_v45, 0.0  ;;  %5608 = vmatpush3.msra.mxu1 %v2313_v5  ;;  %v2010_v58 = vadd.f32 %v5476_v37, %v1817_v47  ;;  %5557 = vmatprep.subr.mxu0 %v2342_v34  ;;  %v2673_v5 = vld [vmem:[%s8337_s1 + $0x178] sm:$0xff] }
 0x1b4   : > { %v1970_v22 = vpop.f32.mrf.mxu0  ;;  %5609 = vmatprep.subr.mxu1 %v2312_v51  ;;  %5558 = vmatpush3.msra.mxu0 %v2342_v34  ;;  %v6110_v47 = vld [vmem:[%s6211_s16 + $0x18] sm:$0xff] }
 0x1b5   : > { %v2009_v42 = vadd.f32 %v1970_v22, %v1816_v13  ;;  %5527 = vmatprep.mubr.f32.mxu1 %v2023_v46  ;;  %5610 = vmatpush3.msra.mxu1 %v2312_v51  ;;  %v2026_v60 = vmax.f32 %v2010_v58, 0.0  ;;  %v2672_v13 = vld [vmem:[%s8337_s1 + $0x170] sm:$0xff] }
 0x1b6   : > { %v5479_v61 = vpop.f32.mrf.mxu0  ;;  %5528 = vmatmul.mubr.f32.gmra.mxu1 %v2024_v52  ;;  %5611 = vmatprep.subr.mxu1 %v2311_v30  ;;  %v6111_v46 = vld [vmem:[%s6211_s16 + $0x10] sm:$0xff]  ;;  %v6112_v52 = vld [vmem:[%s6211_s16 + $0x28] sm:$0xff] }
 0x1b7   : > { %v2025_v56 = vmax.f32 %v2009_v42, 0.0  ;;  %5612 = vmatpush3.msra.mxu1 %v2311_v30  ;;  %v2012_v35 = vadd.f32 %v5479_v61, %v1819_v55  ;;  %5559 = vmatprep.subr.mxu0 %v2341_v6  ;;  %v6113_v42 = vld [vmem:[%s6211_s16 + $0x20] sm:$0xff] }
 0x1b8   : > { %v1980_v31 = vpop.f32.mrf.mxu0  ;;  %5560 = vmatpush3.msra.mxu0 %v2341_v6  ;;  %5613 = vmatprep.subr.mxu1 %v2310_v50  ;;  %v6117_v6 = vld [vmem:[%s6211_s16 + $0x40] sm:$0xff] }
 0x1b9   : > { %v2011_v7 = vadd.f32 %v1980_v31, %v1818_v59  ;;  %5530 = vmatprep.mubr.f32.mxu1 %v2025_v56  ;;  %v2028_v23 = vmax.f32 %v2012_v35, 0.0  ;;  %5561 = vmatprep.subr.mxu0 %v2340_v14  ;;  %v6114_v59 = vld [vmem:[%s6211_s16 + $0x38] sm:$0xff] }
 0x1ba   : > { %v5482_v18 = vpop.f32.mrf.mxu0  ;;  %5531 = vmatmul.mubr.f32.gmra.mxu1 %v2026_v60  ;;  %5562 = vmatpush3.msra.mxu0 %v2340_v14  ;;  %v2865_v60 = vld [vmem:[%s8337_s1 + $0x1f0] sm:$0xff]  ;;  %v2669_v35 = vld [vmem:[%s8337_s1 + $0x158] sm:$0xff] }
 0x1bb   : > { %v2027_v16 = vmax.f32 %v2011_v7, 0.0  ;;  %v2014_v57 = vadd.f32 %v5482_v18, %v1821_v63  ;;  %5563 = vmatprep.subr.mxu0 %v2339_v53  ;;  %5614 = vmatpush3.msra.mxu1 %v2310_v50  ;;  %v6115_v7 = vld [vmem:[%s6211_s16 + $0x30] sm:$0xff] }
 0x1bc   : > { %v1990_v4 = vpop.f32.mrf.mxu0  ;;  %5564 = vmatpush3.msra.mxu0 %v2339_v53  ;;  %5615 = vmatprep.subr.mxu1 %v2309_v0  ;;  %v2668_v50 = vld [vmem:[%s8337_s1 + $0x150] sm:$0xff] }
 0x1bd   : > { %v2013_v9 = vadd.f32 %v1990_v4, %v1820_v28  ;;  %5533 = vmatprep.mubr.f32.mxu1 %v2027_v16  ;;  %v2030_v44 = vmax.f32 %v2014_v57, 0.0  ;;  %5565 = vmatprep.subr.mxu0 %v2338_v62  ;;  %v2864_v16 = vld [vmem:[%s8337_s1 + $0x1e8] sm:$0xff] }
 0x1be   : > { %5534 = vmatmul.mubr.f32.gmra.mxu1 %v2028_v23  ;;  %5566 = vmatpush3.msra.mxu0 %v2338_v62  ;;  %v6116_v57 = vld [vmem:[%s6211_s16 + $0x48] sm:$0xff] }
 0x1bf   : > { %v2029_v1 = vmax.f32 %v2013_v9, 0.0  ;;  %5567 = vmatprep.subr.mxu0 %v2337_v48  ;;  %5616 = vmatpush3.msra.mxu1 %v2309_v0  ;;  %v2862_v0 = vld [vmem:[%s8337_s1 + $0x1d8] sm:$0xff] }
 0x1c0   : > { %5568 = vmatpush3.msra.mxu0 %v2337_v48  ;;  %5617 = vmatprep.subr.mxu1 %v2308_v49 }
 0x1c1   : > { %5536 = vmatprep.mubr.f32.mxu1 %v2029_v1  ;;  %5569 = vmatprep.subr.mxu0 %v2336_v25 }
 0x1c2   : > { %5537 = vmatmul.mubr.f32.gmra.mxu1 %v2030_v44  ;;  %5570 = vmatpush3.msra.mxu0 %v2336_v25  ;;  %v2863_v44 = vld [vmem:[%s8337_s1 + $0x1e0] sm:$0xff] }
 0x1c3   : > { %5618 = vmatpush3.msra.mxu1 %v2308_v49  ;;  %5651 = vmatprep.subr.mxu0 %v2673_v5  ;;  %v6118_v49 = vld [vmem:[%s6211_s16 + $0x58] sm:$0xff] }
 0x1c4   : > { %5619 = vmatprep.subr.mxu1 %v2307_v43  ;;  %5627 = vmatprep.mubr.f32.mxu1 %v2288_v15 }
 0x1c5   : > { %5620 = vmatpush3.msra.mxu1 %v2307_v43 }
 0x1c6   : > { %5621 = vmatprep.subr.mxu1 %v2306_v8 }
 0x1c7   : > { %5622 = vmatpush3.msra.mxu1 %v2306_v8 }
 0x1c8   : > { %5623 = vmatprep.subr.mxu1 %v2305_v27 }
 0x1c9   : > { %5624 = vmatpush3.msra.mxu1 %v2305_v27  ;;  %v6119_v27 = vld [vmem:[%s6211_s16 + $0x50] sm:$0xff] }
 0x1ca   : > { %5625 = vmatprep.subr.mxu1 %v2304_v29 }
 0x1cb   : > { %5626 = vmatpush3.msra.mxu1 %v2304_v29 }
 0x1cc   : > { %5707 = vmatprep.subr.mxu1 %v2866_v10 }
 0x266   : > { %v5517_v2 = vpop.f32.mrf.mxu1 }
 0x267   : > { %v7353_v12 = vadd.f32 %v6108_v20, %v5517_v2  ;;  %v2667_v2 = vld [vmem:[%s8337_s1 + $0x148] sm:$0xff] }
 0x268   : > { %v2113_v54 = vpop.f32.mrf.mxu1 }
 0x269   : > { %8438 = vst [vmem:[#allocation4_spill] sm:$0xff] %v7353_v12  ;;  %v7356_v24 = vmax.f32 %v7353_v12, 0.0  ;;  %v7359_v32 = vadd.f32 %v6109_v38, %v2113_v54  ;;  %v6120_v54 = vld [vmem:[%s6211_s16 + $0x68] sm:$0xff] }
 0x26a   : > { %v5520_v45 = vpop.f32.mrf.mxu1 }
 0x26b   : > { %8439 = vst [vmem:[#allocation7_spill] sm:$0xff] %v7359_v32  ;;  %2273 = vst [vmem:[#allocation2 + $0x21] sm:$0xff] %v7356_v24  ;;  %v7363_v51 = vmax.f32 %v7359_v32, 0.0  ;;  %v7366_v41 = vadd.f32 %v6110_v47, %v5520_v45  ;;  %v2860_v45 = vld [vmem:[%s8337_s1 + $0x1c8] sm:$0xff] }
 0x26c   : > { %v2123_v37 = vpop.f32.mrf.mxu1 }
 0x26d   : > { %8440 = vst [vmem:[#allocation37_spill] sm:$0xff] %v7366_v41  ;;  %2272 = vst [vmem:[#allocation2 + $0x11] sm:$0xff] %v7363_v51  ;;  %v7373_v19 = vmax.f32 %v7366_v41, 0.0  ;;  %v7376_v30 = vadd.f32 %v6111_v46, %v2123_v37  ;;  %5572 = vmatmul.mubr.f32.vlgmr.msra.gmra.mxu0 %v7363_v51 }
 0x26e   : > { %v5523_v36 = vpop.f32.mrf.mxu1  ;;  %5574 = vmatprep.mubr.f32.mxu0 %v7356_v24  ;;  %5652 = vmatpush3.msra.mxu0 %v2673_v5  ;;  %v2861_v5 = vld [vmem:[%s8337_s1 + $0x1d0] sm:$0xff] }
 0x26f   : > { %8441 = vst [vmem:[#allocation38_spill] sm:$0xff] %v7376_v30  ;;  %2275 = vst [vmem:[#allocation2 + $0x41] sm:$0xff] %v7373_v19  ;;  %v7385_v21 = vmax.f32 %v7376_v30, 0.0  ;;  %v7388_v58 = vadd.f32 %v6112_v52, %v5523_v36  ;;  %5653 = vmatprep.subr.mxu0 %v2672_v13  ;;  %v6121_v36 = vld [vmem:[%s6211_s16 + $0x60] sm:$0xff] }
 0x270   : > { %v2133_v22 = vpop.f32.mrf.mxu1  ;;  %5654 = vmatpush3.msra.mxu0 %v2672_v13  ;;  %v2666_v13 = vld [vmem:[%s8337_s1 + $0x140] sm:$0xff] }
 0x271   : > { %8442 = vst [vmem:[#allocation5_spill] sm:$0xff] %v7388_v58  ;;  %2274 = vst [vmem:[#allocation2 + $0x31] sm:$0xff] %v7385_v21  ;;  %v7395_v40 = vmax.f32 %v7388_v58, 0.0  ;;  %v7398_v55 = vadd.f32 %v6113_v42, %v2133_v22  ;;  %5575 = vmatmul.mubr.f32.gmra.mxu0 %v7385_v21  ;;  %5655 = vmatprep.subr.mxu0 %v2671_v17  ;;  %v2859_v52 = vld [vmem:[%s8337_s1 + $0x1c0] sm:$0xff] }
 0x272   : > { %v5526_v26 = vpop.f32.mrf.mxu1  ;;  %5577 = vmatprep.mubr.f32.mxu0 %v7373_v19  ;;  %5656 = vmatpush3.msra.mxu0 %v2671_v17  ;;  %v7423_v18 = vld [vmem:[#allocation2 + $0x20] sm:$0xff] }
 0x273   : > { %8443 = vst [vmem:[#allocation39_spill] sm:$0xff] %v7398_v55  ;;  %2277 = vst [vmem:[#allocation2 + $0x61] sm:$0xff] %v7395_v40  ;;  %v7404_v61 = vmax.f32 %v7398_v55, 0.0  ;;  %v7407_v39 = vadd.f32 %v6114_v59, %v5526_v26  ;;  %5657 = vmatprep.subr.mxu0 %v2670_v11  ;;  %v2328_v22 = vld [vmem:[#allocation2 + $0xa1] sm:$0xff]  ;;  %v6122_v59 = vld [vmem:[%s6211_s16 + $0x78] sm:$0xff] }
 0x274   : > { %v2143_v56 = vpop.f32.mrf.mxu1  ;;  %v7409_v3 = vld [vmem:[#allocation2 + $0x10] sm:$0xff]  ;;  %5658 = vmatpush3.msra.mxu0 %v2670_v11  ;;  %v2296_v42 = vld [vmem:[#allocation2 + $0xa0] sm:$0xff] }
 0x275   : > { %8444 = vst [vmem:[#allocation19_spill] sm:$0xff] %v7407_v39  ;;  %2276 = vst [vmem:[#allocation2 + $0x51] sm:$0xff] %v7404_v61  ;;  %v8341_v31 = vmax.f32 %v7407_v39, 0.0  ;;  %v7420_v63 = vadd.f32 %v6115_v7, %v2143_v56  ;;  %5628 = vmatmul.mubr.f32.vlgmr.msra.gmra.mxu1 %v7409_v3  ;;  %5578 = vmatmul.mubr.f32.gmra.mxu0 %v7404_v61  ;;  %v2665_v7 = vld [vmem:[%s8337_s1 + $0x138] sm:$0xff] }
 0x276   : > { %v5529_v28 = vpop.f32.mrf.mxu1  ;;  %5630 = vmatprep.mubr.f32.mxu1 %v7423_v18  ;;  %5708 = vmatpush3.msra.mxu1 %v2866_v10  ;;  %v7452_v53 = vld [vmem:[#allocation2 + $0x40] sm:$0xff] }
 0x277   : > { %8445 = vst [vmem:[#allocation20_spill] sm:$0xff] %v7420_v63  ;;  %2279 = vst [vmem:[#allocation2 + $0x81] sm:$0xff] %v8341_v31  ;;  %v7433_v23 = vmax.f32 %v7420_v63, 0.0  ;;  %v7436_v4 = vadd.f32 %v6116_v57, %v5529_v28  ;;  %5709 = vmatprep.subr.mxu1 %v2865_v60  ;;  %5659 = vmatprep.subr.mxu0 %v2669_v35  ;;  %v3238_v31 = vld [vmem:[%s8337_s1 + $0x288] sm:$0xff] }
 0x278   : > { %v2153_v9 = vpop.f32.mrf.mxu1  ;;  %5710 = vmatpush3.msra.mxu1 %v2865_v60  ;;  %v7438_v1 = vld [vmem:[#allocation2 + $0x30] sm:$0xff]  ;;  %5580 = vmatprep.mubr.f32.mxu0 %v7395_v40 }
 0x279   : > { %8446 = vst [vmem:[#allocation6_spill] sm:$0xff] %v7436_v4  ;;  %2278 = vst [vmem:[#allocation2 + $0x71] sm:$0xff] %v7433_v23  ;;  %v7446_v34 = vmax.f32 %v7436_v4, 0.0  ;;  %v7449_v14 = vadd.f32 %v6117_v6, %v2153_v9  ;;  %5631 = vmatmul.mubr.f32.gmra.mxu1 %v7438_v1  ;;  %5711 = vmatprep.subr.mxu1 %v2864_v16  ;;  %v2858_v9 = vld [vmem:[%s8337_s1 + $0x1b8] sm:$0xff]  ;;  %v2664_v6 = vld [vmem:[%s8337_s1 + $0x130] sm:$0xff] }
 0x27a   : > { %v5532_v62 = vpop.f32.mrf.mxu1  ;;  %5633 = vmatprep.mubr.f32.mxu1 %v7452_v53  ;;  %5712 = vmatpush3.msra.mxu1 %v2864_v16  ;;  %v7481_v15 = vld [vmem:[#allocation2 + $0x60] sm:$0xff]  ;;  %v6123_v16 = vld [vmem:[%s6211_s16 + $0x70] sm:$0xff] }
 0x27b   : > { %8447 = vst [vmem:[#allocation8_spill] sm:$0xff] %v7449_v14  ;;  %2281 = vst [vmem:[#allocation2 + $0xc1] sm:$0xff] %v7446_v34  ;;  %v7463_v48 = vmax.f32 %v7449_v14, 0.0  ;;  %v7466_v25 = vadd.f32 %v6118_v49, %v5532_v62  ;;  %5713 = vmatprep.subr.mxu1 %v2863_v44  ;;  %5660 = vmatpush3.msra.mxu0 %v2669_v35  ;;  %v2857_v62 = vld [vmem:[%s8337_s1 + $0x1b0] sm:$0xff]  ;;  %v2663_v49 = vld [vmem:[%s8337_s1 + $0x128] sm:$0xff] }
 0x27c   : > { %v2163_v33 = vpop.f32.mrf.mxu1  ;;  %5714 = vmatpush3.msra.mxu1 %v2863_v44  ;;  %v7468_v43 = vld [vmem:[#allocation2 + $0x50] sm:$0xff]  ;;  %5661 = vmatprep.subr.mxu0 %v2668_v50 }
 0x27d   : > { %8448 = vst [vmem:[#allocation21_spill] sm:$0xff] %v7466_v25  ;;  %2280 = vst [vmem:[#allocation2 + $0xb1] sm:$0xff] %v7463_v48  ;;  %v7475_v8 = vmax.f32 %v7466_v25, 0.0  ;;  %v7478_v29 = vadd.f32 %v6119_v27, %v2163_v33  ;;  %5634 = vmatmul.mubr.f32.gmra.mxu1 %v7468_v43  ;;  %5715 = vmatprep.subr.mxu1 %v2862_v0  ;;  %v2856_v33 = vld [vmem:[%s8337_s1 + $0x1a8] sm:$0xff] }
 0x27e   : > { %v5535_v10 = vpop.f32.mrf.mxu1  ;;  %5636 = vmatprep.mubr.f32.mxu1 %v7481_v15  ;;  %5716 = vmatpush3.msra.mxu1 %v2862_v0 }
 0x27f   : > { %8449 = vst [vmem:[#allocation22_spill] sm:$0xff] %v7478_v29  ;;  %2283 = vst [vmem:[#allocation2 + $0xe1] sm:$0xff] %v7475_v8  ;;  %v7489_v20 = vmax.f32 %v7478_v29, 0.0  ;;  %v7492_v38 = vadd.f32 %v6120_v54, %v5535_v10  ;;  %5717 = vmatprep.subr.mxu1 %v2861_v5  ;;  %5662 = vmatpush3.msra.mxu0 %v2668_v50  ;;  %v2855_v10 = vld [vmem:[%s8337_s1 + $0x1a0] sm:$0xff]  ;;  %v2661_v54 = vld [vmem:[%s8337_s1 + $0x118] sm:$0xff] }
 0x280   : > { %v2173_v47 = vpop.f32.mrf.mxu1  ;;  %5718 = vmatpush3.msra.mxu1 %v2861_v5  ;;  %5581 = vmatmul.mubr.f32.gmra.mxu0 %v7433_v23  ;;  %v7498_v37 = vld [vmem:[#allocation2 + $0x70] sm:$0xff]  ;;  %v2662_v5 = vld [vmem:[%s8337_s1 + $0x120] sm:$0xff] }
 0x281   : > { %8450 = vst [vmem:[#allocation9_spill] sm:$0xff] %v7492_v38  ;;  %2282 = vst [vmem:[#allocation2 + $0xd1] sm:$0xff] %v7489_v20  ;;  %v7505_v46 = vmax.f32 %v7492_v38, 0.0  ;;  %v7508_v17 = vadd.f32 %v6121_v36, %v2173_v47  ;;  %5637 = vmatmul.mubr.f32.gmra.mxu1 %v7498_v37  ;;  %5663 = vmatprep.subr.mxu0 %v2667_v2  ;;  %v2660_v47 = vld [vmem:[%s8337_s1 + $0x110] sm:$0xff] }
 0x282   : > { %5719 = vmatprep.subr.mxu1 %v2860_v45  ;;  %v5538_v11 = vpop.f32.mrf.mxu1  ;;  %5664 = vmatpush3.msra.mxu0 %v2667_v2  ;;  %v7546_v50 = vld [vmem:[#allocation2 + $0xc0] sm:$0xff]  ;;  %v2853_v36 = vld [vmem:[%s8337_s1 + $0x190] sm:$0xff] }
 0x283   : > { %8451 = vst [vmem:[#allocation11_spill] sm:$0xff] %v7508_v17  ;;  %2285 = vst [vmem:[#allocation2 + $0x101] sm:$0xff] %v7505_v46  ;;  %v7516_v26 = vmax.f32 %v7508_v17, 0.0  ;;  %v7519_v56 = vadd.f32 %v6122_v59, %v5538_v11  ;;  %5720 = vmatpush3.msra.mxu1 %v2860_v45  ;;  %5665 = vmatprep.subr.mxu0 %v2666_v13  ;;  %v2854_v45 = vld [vmem:[%s8337_s1 + $0x198] sm:$0xff]  ;;  %v2852_v11 = vld [vmem:[%s8337_s1 + $0x188] sm:$0xff] }
 0x284   : > { %5721 = vmatprep.subr.mxu1 %v2859_v52  ;;  %v2183_v60 = vpop.f32.mrf.mxu1  ;;  %5583 = vmatprep.mubr.f32.mxu0 %v2328_v22  ;;  %v7521_v35 = vld [vmem:[#allocation2 + $0xb0] sm:$0xff]  ;;  %v2659_v22 = vld [vmem:[%s8337_s1 + $0x108] sm:$0xff]  ;;  %v2851_v59 = vld [vmem:[%s8337_s1 + $0x180] sm:$0xff] }
 0x285   : > { %8452 = vst [vmem:[#allocation41_spill] sm:$0xff] %v7519_v56  ;;  %2284 = vst [vmem:[#allocation2 + $0xf1] sm:$0xff] %v7516_v26  ;;  %v7528_v28 = vmax.f32 %v7519_v56, 0.0  ;;  %v7531_v57 = vadd.f32 %v6123_v16, %v2183_v60  ;;  %5639 = vmatprep.mubr.f32.mxu1 %v2296_v42  ;;  %5666 = vmatpush3.msra.mxu0 %v2666_v13  ;;  %v2658_v42 = vld [vmem:[%s8337_s1 + $0x100] sm:$0xff]  ;;  %v7613_v16 = vld [vmem:[#allocation2 + $0x12] sm:$0xff] }
 0x286   : > { %5722 = vmatpush3.msra.mxu1 %v2859_v52  ;;  %5584 = vmatmul.mubr.f32.gmra.mxu0 %v7463_v48  ;;  %v7567_v27 = vld [vmem:[#allocation2 + $0xe0] sm:$0xff] }
 0x287   : > { %8453 = vst [vmem:[#allocation40_spill] sm:$0xff] %v7531_v57  ;;  %2287 = vst [vmem:[#allocation2 + $0x121] sm:$0xff] %v7528_v28  ;;  %v7539_v44 = vmax.f32 %v7531_v57, 0.0  ;;  %5640 = vmatmul.mubr.f32.gmra.mxu1 %v7521_v35  ;;  %5667 = vmatprep.subr.mxu0 %v2665_v7  ;;  %v2642_v60 = vld [vmem:[#allocation2 + $0x2] sm:$0xff] }
 0x288   : > { %5723 = vmatprep.subr.mxu1 %v2858_v9  ;;  %5586 = vmatprep.mubr.f32.mxu0 %v7446_v34  ;;  %v7553_v0 = vld [vmem:[#allocation2 + $0xd0] sm:$0xff] }
 0x289   : > { %2286 = vst [vmem:[#allocation2 + $0x111] sm:$0xff] %v7539_v44  ;;  %5642 = vmatprep.mubr.f32.mxu1 %v7546_v50  ;;  %5668 = vmatpush3.msra.mxu0 %v2665_v7  ;;  %v3059_v7 = vld [vmem:[%s8337_s1 + $0x278] sm:$0xff] }
 0x28a   : > { %5724 = vmatpush3.msra.mxu1 %v2858_v9  ;;  %5669 = vmatprep.subr.mxu0 %v2664_v6  ;;  %v7587_v13 = vld [vmem:[#allocation2 + $0x100] sm:$0xff]  ;;  %v3252_v9 = vld [vmem:[%s8337_s1 + $0x2f8] sm:$0xff] }
 0x28b   : > { %5725 = vmatprep.subr.mxu1 %v2857_v62  ;;  %5670 = vmatpush3.msra.mxu0 %v2664_v6  ;;  %v3058_v6 = vld [vmem:[%s8337_s1 + $0x270] sm:$0xff] }
 0x28c   : > { %5726 = vmatpush3.msra.mxu1 %v2857_v62  ;;  %5587 = vmatmul.mubr.f32.gmra.mxu0 %v7489_v20  ;;  %v7573_v2 = vld [vmem:[#allocation2 + $0xf0] sm:$0xff] }
 0x28d   : > { %5643 = vmatmul.mubr.f32.gmra.mxu1 %v7553_v0  ;;  %5671 = vmatprep.subr.mxu0 %v2663_v49  ;;  %v3251_v62 = vld [vmem:[%s8337_s1 + $0x2f0] sm:$0xff] }
 0x28e   : > { %5727 = vmatprep.subr.mxu1 %v2856_v33  ;;  %5589 = vmatprep.mubr.f32.mxu0 %v7475_v8  ;;  %v7758_v57 = vld [vmem:[#allocation2 + $0x120] sm:$0xff] }
 0x28f   : > { %5645 = vmatprep.mubr.f32.mxu1 %v7567_v27  ;;  %5672 = vmatpush3.msra.mxu0 %v2663_v49  ;;  %v3057_v49 = vld [vmem:[%s8337_s1 + $0x268] sm:$0xff] }
 0x290   : > { %5728 = vmatpush3.msra.mxu1 %v2856_v33  ;;  %5673 = vmatprep.subr.mxu0 %v2662_v5  ;;  %v7593_v52 = vld [vmem:[#allocation2 + $0x110] sm:$0xff] }
 0x291   : > { %5729 = vmatprep.subr.mxu1 %v2855_v10  ;;  %5674 = vmatpush3.msra.mxu0 %v2662_v5  ;;  %v7633_v33 = vld [vmem:[#allocation2 + $0x32] sm:$0xff]  ;;  %v3250_v5 = vld [vmem:[%s8337_s1 + $0x2e8] sm:$0xff] }
 0x292   : > { %5730 = vmatpush3.msra.mxu1 %v2855_v10  ;;  %5590 = vmatmul.mubr.f32.gmra.mxu0 %v7516_v26  ;;  %v7640_v10 = vld [vmem:[#allocation2 + $0x42] sm:$0xff] }
 0x293   : > { %5646 = vmatmul.mubr.f32.gmra.mxu1 %v7573_v2  ;;  %5675 = vmatprep.subr.mxu0 %v2661_v54 }
 0x294   : > { %5731 = vmatprep.subr.mxu1 %v2854_v45  ;;  %5592 = vmatprep.mubr.f32.mxu0 %v7505_v46 }
 0x295   : > { %5648 = vmatprep.mubr.f32.mxu1 %v7587_v13  ;;  %5676 = vmatpush3.msra.mxu0 %v2661_v54  ;;  %v3056_v54 = vld [vmem:[%s8337_s1 + $0x260] sm:$0xff] }
 0x296   : > { %5732 = vmatpush3.msra.mxu1 %v2854_v45  ;;  %5677 = vmatprep.subr.mxu0 %v2660_v47  ;;  %v3249_v45 = vld [vmem:[%s8337_s1 + $0x2e0] sm:$0xff] }
 0x297   : > { %5733 = vmatprep.subr.mxu1 %v2853_v36  ;;  %5678 = vmatpush3.msra.mxu0 %v2660_v47  ;;  %v3055_v47 = vld [vmem:[%s8337_s1 + $0x258] sm:$0xff] }
 0x298   : > { %5734 = vmatpush3.msra.mxu1 %v2853_v36  ;;  %5593 = vmatmul.mubr.f32.gmra.mxu0 %v7539_v44  ;;  %v7653_v36 = vld [vmem:[#allocation2 + $0x52] sm:$0xff] }
 0x299   : > { %5649 = vmatmul.mubr.f32.gmra.mxu1 %v7593_v52  ;;  %5679 = vmatprep.subr.mxu0 %v2659_v22 }
 0x29a   : > { %5735 = vmatprep.subr.mxu1 %v2852_v11  ;;  %5680 = vmatpush3.msra.mxu0 %v2659_v22  ;;  %v3248_v22 = vld [vmem:[%s8337_s1 + $0x2d8] sm:$0xff] }
 0x29b   : > { %5736 = vmatpush3.msra.mxu1 %v2852_v11  ;;  %5739 = vmatprep.mubr.f32.mxu1 %v7409_v3  ;;  %v7620_v3 = vld [vmem:[#allocation2 + $0x22] sm:$0xff] }
 0x29c   : > { %5681 = vmatprep.subr.mxu0 %v2658_v42  ;;  %5737 = vmatprep.subr.mxu1 %v2851_v59  ;;  %v7660_v11 = vld [vmem:[#allocation2 + $0x62] sm:$0xff] }
 0x29d   : > { %5682 = vmatpush3.msra.mxu0 %v2658_v42  ;;  %5683 = vmatprep.mubr.f32.mxu0 %v2642_v60  ;;  %v3054_v42 = vld [vmem:[%s8337_s1 + $0x250] sm:$0xff]  ;;  %v3053_v60 = vld [vmem:[%s8337_s1 + $0x248] sm:$0xff] }
 0x29e   : > { %5738 = vmatpush3.msra.mxu1 %v2851_v59  ;;  %5684 = vmatmul.mubr.f32.vlgmr.msra.gmra.mxu0 %v7613_v16  ;;  %v3247_v59 = vld [vmem:[%s8337_s1 + $0x2d0] sm:$0xff] }
 0x29f   : > { %5740 = vmatmul.mubr.f32.vlgmr.msra.gmra.mxu1 %v7423_v18  ;;  %5763 = vmatprep.subr.mxu0 %v3059_v7 }
 0x2a0   : > { %5819 = vmatprep.subr.mxu1 %v3252_v9  ;;  %5686 = vmatprep.mubr.f32.mxu0 %v7620_v3 }
 0x2a1   : > { %5742 = vmatprep.mubr.f32.mxu1 %v7438_v1  ;;  %5764 = vmatpush3.msra.mxu0 %v3059_v7  ;;  %v7673_v7 = vld [vmem:[#allocation2 + $0x72] sm:$0xff] }
 0x2a2   : > { %5820 = vmatpush3.msra.mxu1 %v3252_v9  ;;  %5765 = vmatprep.subr.mxu0 %v3058_v6  ;;  %v3246_v9 = vld [vmem:[%s8337_s1 + $0x2c8] sm:$0xff] }
 0x2a3   : > { %5821 = vmatprep.subr.mxu1 %v3251_v62  ;;  %5766 = vmatpush3.msra.mxu0 %v3058_v6  ;;  %v7679_v6 = vld [vmem:[#allocation2 + $0x80] sm:$0xff] }
 0x2a4   : > { %5822 = vmatpush3.msra.mxu1 %v3251_v62  ;;  %5687 = vmatmul.mubr.f32.gmra.mxu0 %v7633_v33  ;;  %v3052_v62 = vld [vmem:[%s8337_s1 + $0x240] sm:$0xff] }
 0x2a5   : > { %5743 = vmatmul.mubr.f32.gmra.mxu1 %v7452_v53  ;;  %5767 = vmatprep.subr.mxu0 %v3057_v49 }
 0x2a6   : > { %5823 = vmatprep.subr.mxu1 %v3250_v5  ;;  %5689 = vmatprep.mubr.f32.mxu0 %v7640_v10 }
 0x2a7   : > { %5745 = vmatprep.mubr.f32.mxu1 %v7468_v43  ;;  %5768 = vmatpush3.msra.mxu0 %v3057_v49  ;;  %v3245_v49 = vld [vmem:[%s8337_s1 + $0x2c0] sm:$0xff] }
 0x2a8   : > { %5824 = vmatpush3.msra.mxu1 %v3250_v5  ;;  %5769 = vmatprep.subr.mxu0 %v3056_v54  ;;  %v2650_v5 = vld [vmem:[#allocation2 + $0xa2] sm:$0xff] }
 0x2a9   : > { %5825 = vmatprep.subr.mxu1 %v3249_v45  ;;  %5770 = vmatpush3.msra.mxu0 %v3056_v54  ;;  %v3051_v54 = vld [vmem:[%s8337_s1 + $0x238] sm:$0xff] }
 0x2aa   : > { %5826 = vmatpush3.msra.mxu1 %v3249_v45  ;;  %5690 = vmatmul.mubr.f32.gmra.mxu0 %v7653_v36  ;;  %v7692_v45 = vld [vmem:[#allocation2 + $0xb2] sm:$0xff] }
 0x2ab   : > { %5746 = vmatmul.mubr.f32.gmra.mxu1 %v7481_v15  ;;  %5771 = vmatprep.subr.mxu0 %v3055_v47 }
 0x2ac   : > { %5827 = vmatprep.subr.mxu1 %v3248_v22  ;;  %5692 = vmatprep.mubr.f32.mxu0 %v7660_v11 }
 0x2ad   : > { %5748 = vmatprep.mubr.f32.mxu1 %v7498_v37  ;;  %5772 = vmatpush3.msra.mxu0 %v3055_v47  ;;  %v3244_v47 = vld [vmem:[%s8337_s1 + $0x2b8] sm:$0xff] }
 0x2ae   : > { %5828 = vmatpush3.msra.mxu1 %v3248_v22  ;;  %5773 = vmatprep.subr.mxu0 %v3054_v42  ;;  %v3050_v22 = vld [vmem:[%s8337_s1 + $0x230] sm:$0xff] }
 0x2af   : > { %5829 = vmatprep.subr.mxu1 %v3247_v59  ;;  %5774 = vmatpush3.msra.mxu0 %v3054_v42  ;;  %v3243_v42 = vld [vmem:[%s8337_s1 + $0x2b0] sm:$0xff] }
 0x2b0   : > { %5830 = vmatpush3.msra.mxu1 %v3247_v59  ;;  %5693 = vmatmul.mubr.f32.gmra.mxu0 %v7673_v7  ;;  %v3049_v59 = vld [vmem:[%s8337_s1 + $0x228] sm:$0xff] }
 0x2b1   : > { %5749 = vmatmul.mubr.f32.gmra.mxu1 %v7679_v6  ;;  %5775 = vmatprep.subr.mxu0 %v3053_v60 }
 0x2b2   : > { %5831 = vmatprep.subr.mxu1 %v3246_v9  ;;  %5751 = vmatprep.mubr.f32.mxu1 %v7521_v35  ;;  %v7699_v35 = vld [vmem:[#allocation2 + $0xc2] sm:$0xff] }
 0x2b3   : > { %5776 = vmatpush3.msra.mxu0 %v3053_v60  ;;  %5832 = vmatpush3.msra.mxu1 %v3246_v9  ;;  %v7712_v60 = vld [vmem:[#allocation2 + $0xd2] sm:$0xff]  ;;  %v3242_v9 = vld [vmem:[%s8337_s1 + $0x2a8] sm:$0xff] }
 0x2b4   : > { %5777 = vmatprep.subr.mxu0 %v3052_v62  ;;  %5833 = vmatprep.subr.mxu1 %v3245_v49 }
 0x2b5   : > { %5695 = vmatprep.mubr.f32.mxu0 %v2650_v5  ;;  %5778 = vmatpush3.msra.mxu0 %v3052_v62  ;;  %v7719_v62 = vld [vmem:[#allocation2 + $0xe2] sm:$0xff] }
 0x2b6   : > { %5834 = vmatpush3.msra.mxu1 %v3245_v49  ;;  %5696 = vmatmul.mubr.f32.gmra.mxu0 %v7692_v45  ;;  %v3048_v49 = vld [vmem:[%s8337_s1 + $0x220] sm:$0xff] }
 0x2b7   : > { %5752 = vmatmul.mubr.f32.gmra.mxu1 %v7546_v50  ;;  %5779 = vmatprep.subr.mxu0 %v3051_v54  ;;  %v3241_v5 = vld [vmem:[%s8337_s1 + $0x2a0] sm:$0xff] }
 0x2b8   : > { %5835 = vmatprep.subr.mxu1 %v3244_v47  ;;  %5698 = vmatprep.mubr.f32.mxu0 %v7699_v35 }
 0x2b9   : > { %5754 = vmatprep.mubr.f32.mxu1 %v7553_v0  ;;  %5780 = vmatpush3.msra.mxu0 %v3051_v54  ;;  %v3047_v54 = vld [vmem:[%s8337_s1 + $0x218] sm:$0xff] }
 0x2ba   : > { %5836 = vmatpush3.msra.mxu1 %v3244_v47  ;;  %5781 = vmatprep.subr.mxu0 %v3050_v22  ;;  %v7732_v47 = vld [vmem:[#allocation2 + $0xf2] sm:$0xff] }
 0x2bb   : > { %5837 = vmatprep.subr.mxu1 %v3243_v42  ;;  %5782 = vmatpush3.msra.mxu0 %v3050_v22  ;;  %v3240_v22 = vld [vmem:[%s8337_s1 + $0x298] sm:$0xff] }
 0x2bc   : > { %5838 = vmatpush3.msra.mxu1 %v3243_v42  ;;  %5699 = vmatmul.mubr.f32.gmra.mxu0 %v7712_v60  ;;  %v7739_v42 = vld [vmem:[#allocation2 + $0x102] sm:$0xff] }
 0x2bd   : > { %5755 = vmatmul.mubr.f32.gmra.mxu1 %v7567_v27  ;;  %5783 = vmatprep.subr.mxu0 %v3049_v59 }
 0x2be   : > { %5839 = vmatprep.subr.mxu1 %v3242_v9  ;;  %5701 = vmatprep.mubr.f32.mxu0 %v7719_v62 }
 0x2bf   : > { %5757 = vmatprep.mubr.f32.mxu1 %v7573_v2  ;;  %5784 = vmatpush3.msra.mxu0 %v3049_v59  ;;  %v3046_v59 = vld [vmem:[%s8337_s1 + $0x210] sm:$0xff] }
 0x2c0   : > { %5840 = vmatpush3.msra.mxu1 %v3242_v9  ;;  %5785 = vmatprep.subr.mxu0 %v3048_v49  ;;  %v3239_v9 = vld [vmem:[%s8337_s1 + $0x290] sm:$0xff] }
 0x2c1   : > { %5841 = vmatprep.subr.mxu1 %v3241_v5  ;;  %5786 = vmatpush3.msra.mxu0 %v3048_v49  ;;  %v3045_v49 = vld [vmem:[%s8337_s1 + $0x208] sm:$0xff] }
 0x2c2   : > { %5842 = vmatpush3.msra.mxu1 %v3241_v5  ;;  %5702 = vmatmul.mubr.f32.gmra.mxu0 %v7732_v47  ;;  %v7752_v5 = vld [vmem:[#allocation2 + $0x112] sm:$0xff] }
 0x2c3   : > { %5758 = vmatmul.mubr.f32.gmra.mxu1 %v7587_v13  ;;  %5787 = vmatprep.subr.mxu0 %v3047_v54 }
 0x2c4   : > { %5843 = vmatprep.subr.mxu1 %v3240_v22  ;;  %5704 = vmatprep.mubr.f32.mxu0 %v7739_v42 }
 0x2c5   : > { %5760 = vmatprep.mubr.f32.mxu1 %v7593_v52  ;;  %5788 = vmatpush3.msra.mxu0 %v3047_v54  ;;  %v3044_v54 = vld [vmem:[%s8337_s1 + $0x200] sm:$0xff] }
 0x2c6   : > { %5844 = vmatpush3.msra.mxu1 %v3240_v22  ;;  %5789 = vmatprep.subr.mxu0 %v3046_v59  ;;  %v3237_v22 = vld [vmem:[%s8337_s1 + $0x280] sm:$0xff] }
 0x2c7   : > { %5845 = vmatprep.subr.mxu1 %v3239_v9  ;;  %5790 = vmatpush3.msra.mxu0 %v3046_v59  ;;  %v3445_v59 = vld [vmem:[%s8337_s1 + $0x378] sm:$0xff] }
 0x2c8   : > { %5846 = vmatpush3.msra.mxu1 %v3239_v9  ;;  %5705 = vmatmul.mubr.f32.gmra.mxu0 %v7752_v5  ;;  %v3638_v9 = vld [vmem:[%s8337_s1 + $0x3f8] sm:$0xff] }
 0x2c9   : > { %5761 = vmatmul.mubr.f32.gmra.mxu1 %v7758_v57  ;;  %5791 = vmatprep.subr.mxu0 %v3045_v49 }
 0x2ca   : > { %5847 = vmatprep.subr.mxu1 %v3238_v31  ;;  %5792 = vmatpush3.msra.mxu0 %v3045_v49  ;;  %v3635_v49 = vld [vmem:[%s8337_s1 + $0x3e0] sm:$0xff] }
 0x2cb   : > { %5795 = vmatprep.mubr.f32.mxu0 %v7363_v51  ;;  %5848 = vmatpush3.msra.mxu1 %v3238_v31  ;;  %v3444_v51 = vld [vmem:[%s8337_s1 + $0x370] sm:$0xff] }
 0x2cc   : > { %5851 = vmatprep.mubr.f32.mxu1 %v7613_v16  ;;  %5793 = vmatprep.subr.mxu0 %v3044_v54  ;;  %v3637_v31 = vld [vmem:[%s8337_s1 + $0x3f0] sm:$0xff]  ;;  %v3636_v16 = vld [vmem:[%s8337_s1 + $0x3e8] sm:$0xff] }
 0x2cd   : > { %5849 = vmatprep.subr.mxu1 %v3237_v22  ;;  %5794 = vmatpush3.msra.mxu0 %v3044_v54  ;;  %v3634_v54 = vld [vmem:[%s8337_s1 + $0x3d8] sm:$0xff] }
 0x2ce   : > { %5850 = vmatpush3.msra.mxu1 %v3237_v22  ;;  %5796 = vmatmul.mubr.f32.vlgmr.msra.gmra.mxu0 %v7356_v24  ;;  %v3443_v24 = vld [vmem:[%s8337_s1 + $0x368] sm:$0xff]  ;;  %v3633_v22 = vld [vmem:[%s8337_s1 + $0x3d0] sm:$0xff] }
 0x2cf   : > { %5852 = vmatmul.mubr.f32.vlgmr.msra.gmra.mxu1 %v7620_v3  ;;  %5875 = vmatprep.subr.mxu0 %v3445_v59 }
 0x2d0   : > { %5931 = vmatprep.subr.mxu1 %v3638_v9  ;;  %5798 = vmatprep.mubr.f32.mxu0 %v7385_v21  ;;  %v3442_v21 = vld [vmem:[%s8337_s1 + $0x360] sm:$0xff] }
 0x2d1   : > { %5854 = vmatprep.mubr.f32.mxu1 %v7633_v33  ;;  %5876 = vmatpush3.msra.mxu0 %v3445_v59  ;;  %v3632_v59 = vld [vmem:[%s8337_s1 + $0x3c8] sm:$0xff] }
 0x2d2   : > { %5932 = vmatpush3.msra.mxu1 %v3638_v9  ;;  %5877 = vmatprep.subr.mxu0 %v3444_v51  ;;  %v7825_v9 = vld [vmem:[#allocation2 + $0x82] sm:$0xff] }
 0x2d3   : > { %5933 = vmatprep.subr.mxu1 %v3637_v31  ;;  %5878 = vmatpush3.msra.mxu0 %v3444_v51  ;;  %v3438_v51 = vld [vmem:[%s8337_s1 + $0x340] sm:$0xff] }
 0x2d4   : > { %5934 = vmatpush3.msra.mxu1 %v3637_v31  ;;  %5799 = vmatmul.mubr.f32.gmra.mxu0 %v7373_v19  ;;  %v3441_v19 = vld [vmem:[%s8337_s1 + $0x358] sm:$0xff]  ;;  %v3631_v31 = vld [vmem:[%s8337_s1 + $0x3c0] sm:$0xff] }
 0x2d5   : > { %5855 = vmatmul.mubr.f32.gmra.mxu1 %v7640_v10  ;;  %5879 = vmatprep.subr.mxu0 %v3443_v24 }
 0x2d6   : > { %5935 = vmatprep.subr.mxu1 %v3636_v16  ;;  %5801 = vmatprep.mubr.f32.mxu0 %v7404_v61  ;;  %v3440_v61 = vld [vmem:[%s8337_s1 + $0x350] sm:$0xff] }
 0x2d7   : > { %5857 = vmatprep.mubr.f32.mxu1 %v7653_v36  ;;  %5880 = vmatpush3.msra.mxu0 %v3443_v24  ;;  %v3437_v24 = vld [vmem:[%s8337_s1 + $0x338] sm:$0xff] }
 0x2d8   : > { %5936 = vmatpush3.msra.mxu1 %v3636_v16  ;;  %5881 = vmatprep.subr.mxu0 %v3442_v21  ;;  %v3630_v16 = vld [vmem:[%s8337_s1 + $0x3b8] sm:$0xff] }
 0x2d9   : > { %5937 = vmatprep.subr.mxu1 %v3635_v49  ;;  %5882 = vmatpush3.msra.mxu0 %v3442_v21  ;;  %v3628_v21 = vld [vmem:[%s8337_s1 + $0x3a8] sm:$0xff] }
 0x2da   : > { %5938 = vmatpush3.msra.mxu1 %v3635_v49  ;;  %5802 = vmatmul.mubr.f32.gmra.mxu0 %v7395_v40  ;;  %v3439_v40 = vld [vmem:[%s8337_s1 + $0x348] sm:$0xff]  ;;  %v3627_v49 = vld [vmem:[%s8337_s1 + $0x3a0] sm:$0xff] }
 0x2db   : > { %5858 = vmatmul.mubr.f32.gmra.mxu1 %v7660_v11  ;;  %5883 = vmatprep.subr.mxu0 %v3441_v19 }
 0x2dc   : > { %5939 = vmatprep.subr.mxu1 %v3634_v54  ;;  %5804 = vmatprep.mubr.f32.mxu0 %v7433_v23  ;;  %v8454_v23 = vmax.f32 %v7407_v39, 0.0 }
 0x2dd   : > { %5860 = vmatprep.mubr.f32.mxu1 %v7673_v7  ;;  %5884 = vmatpush3.msra.mxu0 %v3441_v19  ;;  %v3626_v19 = vld [vmem:[%s8337_s1 + $0x398] sm:$0xff] }
 0x2de   : > { %5940 = vmatpush3.msra.mxu1 %v3634_v54  ;;  %5885 = vmatprep.subr.mxu0 %v3440_v61  ;;  %v3432_v54 = vld [vmem:[%s8337_s1 + $0x310] sm:$0xff] }
 0x2df   : > { %5941 = vmatprep.subr.mxu1 %v3633_v22  ;;  %5886 = vmatpush3.msra.mxu0 %v3440_v61  ;;  %v3625_v61 = vld [vmem:[%s8337_s1 + $0x390] sm:$0xff] }
 0x2e0   : > { %5942 = vmatpush3.msra.mxu1 %v3633_v22  ;;  %5805 = vmatmul.mubr.f32.gmra.mxu0 %v8454_v23  ;;  %v3624_v22 = vld [vmem:[%s8337_s1 + $0x388] sm:$0xff]  ;;  %v3623_v23 = vld [vmem:[%s8337_s1 + $0x380] sm:$0xff] }
 0x2e1   : > { %5861 = vmatmul.mubr.f32.gmra.mxu1 %v7825_v9  ;;  %5887 = vmatprep.subr.mxu0 %v3439_v40 }
 0x2e2   : > { %5943 = vmatprep.subr.mxu1 %v3632_v59  ;;  %5807 = vmatprep.mubr.f32.mxu0 %v7463_v48  ;;  %v3436_v48 = vld [vmem:[%s8337_s1 + $0x330] sm:$0xff] }
 0x2e3   : > { %5863 = vmatprep.mubr.f32.mxu1 %v7692_v45  ;;  %5888 = vmatpush3.msra.mxu0 %v3439_v40  ;;  %v3629_v45 = vld [vmem:[%s8337_s1 + $0x3b0] sm:$0xff]  ;;  %v7891_v40 = vld [vmem:[#allocation2 + $0x122] sm:$0xff] }
 0x2e4   : > { %5944 = vmatpush3.msra.mxu1 %v3632_v59  ;;  %5889 = vmatprep.subr.mxu0 %v3438_v51  ;;  %v3430_v59 = vld [vmem:[%s8337_s1 + $0x300] sm:$0xff] }
 0x2e5   : > { %5945 = vmatprep.subr.mxu1 %v3631_v31  ;;  %5890 = vmatpush3.msra.mxu0 %v3438_v51  ;;  %v3607_v51 = vld [vmem:[#allocation2 + $0x21] sm:$0xff] }
 0x2e6   : > { %5946 = vmatpush3.msra.mxu1 %v3631_v31  ;;  %5808 = vmatmul.mubr.f32.gmra.mxu0 %v7446_v34  ;;  %v3435_v34 = vld [vmem:[%s8337_s1 + $0x328] sm:$0xff]  ;;  %v3831_v31 = vld [vmem:[%s8337_s1 + $0x478] sm:$0xff] }
 0x2e7   : > { %5864 = vmatmul.mubr.f32.gmra.mxu1 %v7699_v35  ;;  %5891 = vmatprep.subr.mxu0 %v3437_v24 }
 0x2e8   : > { %5947 = vmatprep.subr.mxu1 %v3630_v16  ;;  %5810 = vmatprep.mubr.f32.mxu0 %v7489_v20  ;;  %v3434_v20 = vld [vmem:[%s8337_s1 + $0x320] sm:$0xff] }
 0x2e9   : > { %5866 = vmatprep.mubr.f32.mxu1 %v7712_v60  ;;  %5892 = vmatpush3.msra.mxu0 %v3437_v24  ;;  %v3608_v24 = vld [vmem:[#allocation2 + $0x31] sm:$0xff] }
 0x2ea   : > { %5948 = vmatpush3.msra.mxu1 %v3630_v16  ;;  %5893 = vmatprep.subr.mxu0 %v3436_v48  ;;  %v3609_v16 = vld [vmem:[#allocation2 + $0x41] sm:$0xff] }
 0x2eb   : > { %5949 = vmatprep.subr.mxu1 %v3629_v45  ;;  %5894 = vmatpush3.msra.mxu0 %v3436_v48  ;;  %v3829_v48 = vld [vmem:[%s8337_s1 + $0x468] sm:$0xff] }
 0x2ec   : > { %5950 = vmatpush3.msra.mxu1 %v3629_v45  ;;  %5811 = vmatmul.mubr.f32.gmra.mxu0 %v7475_v8  ;;  %v3433_v8 = vld [vmem:[%s8337_s1 + $0x318] sm:$0xff]  ;;  %v3828_v45 = vld [vmem:[%s8337_s1 + $0x460] sm:$0xff] }
 0x2ed   : > { %5867 = vmatmul.mubr.f32.gmra.mxu1 %v7719_v62  ;;  %5895 = vmatprep.subr.mxu0 %v3435_v34 }
 0x2ee   : > { %5951 = vmatprep.subr.mxu1 %v3628_v21  ;;  %5813 = vmatprep.mubr.f32.mxu0 %v7516_v26 }
 0x2ef   : > { %5869 = vmatprep.mubr.f32.mxu1 %v7732_v47  ;;  %5896 = vmatpush3.msra.mxu0 %v3435_v34  ;;  %v3827_v34 = vld [vmem:[%s8337_s1 + $0x458] sm:$0xff] }
 0x2f0   : > { %5952 = vmatpush3.msra.mxu1 %v3628_v21  ;;  %5897 = vmatprep.subr.mxu0 %v3434_v20  ;;  %v3826_v21 = vld [vmem:[%s8337_s1 + $0x450] sm:$0xff] }
 0x2f1   : > { %5953 = vmatprep.subr.mxu1 %v3627_v49  ;;  %5898 = vmatpush3.msra.mxu0 %v3434_v20  ;;  %v3421_v20 = vld [vmem:[#allocation2 + $0x90] sm:$0xff] }
 0x2f2   : > { %5954 = vmatpush3.msra.mxu1 %v3627_v49  ;;  %5814 = vmatmul.mubr.f32.gmra.mxu0 %v7505_v46  ;;  %v3431_v46 = vld [vmem:[%s8337_s1 + $0x308] sm:$0xff]  ;;  %v3614_v49 = vld [vmem:[#allocation2 + $0x91] sm:$0xff] }
 0x2f3   : > { %5870 = vmatmul.mubr.f32.gmra.mxu1 %v7739_v42  ;;  %5899 = vmatprep.subr.mxu0 %v3433_v8 }
 0x2f4   : > { %5955 = vmatprep.subr.mxu1 %v3626_v19  ;;  %5816 = vmatprep.mubr.f32.mxu0 %v7539_v44 }
 0x2f5   : > { %5872 = vmatprep.mubr.f32.mxu1 %v7752_v5  ;;  %5900 = vmatpush3.msra.mxu0 %v3433_v8  ;;  %v3825_v8 = vld [vmem:[%s8337_s1 + $0x448] sm:$0xff] }
 0x2f6   : > { %5956 = vmatpush3.msra.mxu1 %v3626_v19  ;;  %5901 = vmatprep.subr.mxu0 %v3432_v54  ;;  %v3823_v19 = vld [vmem:[%s8337_s1 + $0x438] sm:$0xff] }
 0x2f7   : > { %5957 = vmatprep.subr.mxu1 %v3625_v61  ;;  %5902 = vmatpush3.msra.mxu0 %v3432_v54  ;;  %v3616_v54 = vld [vmem:[#allocation2 + $0xd1] sm:$0xff] }
 0x2f8   : > { %5958 = vmatpush3.msra.mxu1 %v3625_v61  ;;  %5817 = vmatmul.mubr.f32.gmra.mxu0 %v7528_v28  ;;  %v3822_v61 = vld [vmem:[%s8337_s1 + $0x430] sm:$0xff] }
 0x2f9   : > { %5873 = vmatmul.mubr.f32.gmra.mxu1 %v7891_v40  ;;  %5903 = vmatprep.subr.mxu0 %v3431_v46 }
 0x2fa   : > { %5959 = vmatprep.subr.mxu1 %v3624_v22  ;;  %5904 = vmatpush3.msra.mxu0 %v3431_v46  ;;  %v3821_v46 = vld [vmem:[%s8337_s1 + $0x428] sm:$0xff] }
 0x2fb   : > { %5907 = vmatprep.mubr.f32.mxu0 %v7423_v18  ;;  %5960 = vmatpush3.msra.mxu1 %v3624_v22  ;;  %v3830_v18 = vld [vmem:[%s8337_s1 + $0x470] sm:$0xff]  ;;  %v3819_v22 = vld [vmem:[%s8337_s1 + $0x418] sm:$0xff] }
 0x2fc   : > { %5963 = vmatprep.mubr.f32.mxu1 %v3607_v51  ;;  %5905 = vmatprep.subr.mxu0 %v3430_v59 }
 0x2fd   : > { %5961 = vmatprep.subr.mxu1 %v3623_v23  ;;  %5906 = vmatpush3.msra.mxu0 %v3430_v59  ;;  %v3622_v59 = vld [vmem:[#allocation2 + $0x131] sm:$0xff] }
 0x2fe   : > { %5962 = vmatpush3.msra.mxu1 %v3623_v23  ;;  %5908 = vmatmul.mubr.f32.vlgmr.msra.gmra.mxu0 %v7438_v1  ;;  %v3610_v1 = vld [vmem:[#allocation2 + $0x51] sm:$0xff] }
 0x2ff   : > { %5964 = vmatmul.mubr.f32.vlgmr.msra.gmra.mxu1 %v3608_v24  ;;  %5987 = vmatprep.subr.mxu0 %v3831_v31 }
 0x300   : > { %5910 = vmatprep.mubr.f32.mxu0 %v7452_v53  ;;  %5966 = vmatprep.mubr.f32.mxu1 %v3609_v16  ;;  %v3611_v53 = vld [vmem:[#allocation2 + $0x61] sm:$0xff] }
 0x301   : > { %5988 = vmatpush3.msra.mxu0 %v3831_v31 }
 0x302   : > { %5989 = vmatprep.subr.mxu0 %v3830_v18  ;;  %5911 = vmatmul.mubr.f32.gmra.mxu0 %v7468_v43  ;;  %v3612_v43 = vld [vmem:[#allocation2 + $0x71] sm:$0xff] }
 0x303   : > { %5990 = vmatpush3.msra.mxu0 %v3830_v18  ;;  %5967 = vmatmul.mubr.f32.gmra.mxu1 %v3610_v1 }
 0x304   : > { %5991 = vmatprep.subr.mxu0 %v3829_v48  ;;  %5913 = vmatprep.mubr.f32.mxu0 %v7481_v15  ;;  %v3613_v15 = vld [vmem:[#allocation2 + $0x81] sm:$0xff] }
 0x305   : > { %5969 = vmatprep.mubr.f32.mxu1 %v3611_v53  ;;  %5992 = vmatpush3.msra.mxu0 %v3829_v48 }
 0x306   : > { %5993 = vmatprep.subr.mxu0 %v3828_v45  ;;  %5914 = vmatmul.mubr.f32.gmra.mxu0 %v7498_v37  ;;  %v3824_v37 = vld [vmem:[%s8337_s1 + $0x440] sm:$0xff] }
 0x307   : > { %5994 = vmatpush3.msra.mxu0 %v3828_v45  ;;  %5970 = vmatmul.mubr.f32.gmra.mxu1 %v3612_v43  ;;  %v4024_v43 = vld [vmem:[%s8338_s2 + $0x78] sm:$0xff] }
 0x308   : > { %5995 = vmatprep.subr.mxu0 %v3827_v34  ;;  %5916 = vmatprep.mubr.f32.mxu0 %v7679_v6  ;;  %v3615_v6 = vld [vmem:[#allocation2 + $0xc1] sm:$0xff] }
 0x309   : > { %5972 = vmatprep.mubr.f32.mxu1 %v3613_v15  ;;  %5996 = vmatpush3.msra.mxu0 %v3827_v34 }
 0x30a   : > { %5997 = vmatprep.subr.mxu0 %v3826_v21  ;;  %5917 = vmatmul.mubr.f32.gmra.mxu0 %v3421_v20 }
 0x30b   : > { %5998 = vmatpush3.msra.mxu0 %v3826_v21  ;;  %5973 = vmatmul.mubr.f32.gmra.mxu1 %v3614_v49  ;;  %v4023_v49 = vld [vmem:[%s8338_s2 + $0x70] sm:$0xff] }
 0x30c   : > { %5999 = vmatprep.subr.mxu0 %v3825_v8  ;;  %5919 = vmatprep.mubr.f32.mxu0 %v7546_v50  ;;  %v3617_v50 = vld [vmem:[#allocation2 + $0xe1] sm:$0xff] }
 0x30d   : > { %5975 = vmatprep.mubr.f32.mxu1 %v3615_v6  ;;  %6000 = vmatpush3.msra.mxu0 %v3825_v8 }
 0x30e   : > { %6001 = vmatprep.subr.mxu0 %v3824_v37  ;;  %5920 = vmatmul.mubr.f32.gmra.mxu0 %v7553_v0  ;;  %v3820_v0 = vld [vmem:[%s8337_s1 + $0x420] sm:$0xff] }
 0x30f   : > { %6002 = vmatpush3.msra.mxu0 %v3824_v37  ;;  %5976 = vmatmul.mubr.f32.gmra.mxu1 %v3616_v54  ;;  %v4022_v37 = vld [vmem:[%s8338_s2 + $0x68] sm:$0xff]  ;;  %v4021_v54 = vld [vmem:[%s8338_s2 + $0x60] sm:$0xff] }
 0x310   : > { %6003 = vmatprep.subr.mxu0 %v3823_v19  ;;  %5922 = vmatprep.mubr.f32.mxu0 %v7567_v27  ;;  %v3619_v27 = vld [vmem:[#allocation2 + $0x101] sm:$0xff] }
 0x311   : > { %5978 = vmatprep.mubr.f32.mxu1 %v3617_v50  ;;  %6004 = vmatpush3.msra.mxu0 %v3823_v19 }
 0x312   : > { %6005 = vmatprep.subr.mxu0 %v3822_v61  ;;  %5923 = vmatmul.mubr.f32.gmra.mxu0 %v7573_v2  ;;  %v3429_v2 = vld [vmem:[#allocation2 + $0x130] sm:$0xff] }
 0x313   : > { %6006 = vmatpush3.msra.mxu0 %v3822_v61  ;;  %5979 = vmatmul.mubr.f32.gmra.mxu1 %v7516_v26  ;;  %v3818_v26 = vld [vmem:[%s8337_s1 + $0x410] sm:$0xff] }
 0x314   : > { %6007 = vmatprep.subr.mxu0 %v3821_v46  ;;  %5925 = vmatprep.mubr.f32.mxu0 %v7587_v13  ;;  %v3817_v13 = vld [vmem:[%s8337_s1 + $0x408] sm:$0xff] }
 0x315   : > { %5981 = vmatprep.mubr.f32.mxu1 %v3619_v27  ;;  %6008 = vmatpush3.msra.mxu0 %v3821_v46 }
 0x316   : > { %6009 = vmatprep.subr.mxu0 %v3820_v0  ;;  %5926 = vmatmul.mubr.f32.gmra.mxu0 %v7593_v52 }
 0x317   : > { %6010 = vmatpush3.msra.mxu0 %v3820_v0  ;;  %5982 = vmatmul.mubr.f32.gmra.mxu1 %v7539_v44  ;;  %v3816_v44 = vld [vmem:[%s8337_s1 + $0x400] sm:$0xff]  ;;  %v4020_v0 = vld [vmem:[%s8338_s2 + $0x58] sm:$0xff] }
 0x318   : > { %6011 = vmatprep.subr.mxu0 %v3819_v22  ;;  %5928 = vmatprep.mubr.f32.mxu0 %v7758_v57 }
 0x319   : > { %5984 = vmatprep.mubr.f32.mxu1 %v7528_v28  ;;  %6012 = vmatpush3.msra.mxu0 %v3819_v22  ;;  %v3807_v28 = vld [vmem:[#allocation2 + $0x92] sm:$0xff] }
 0x31a   : > { %6013 = vmatprep.subr.mxu0 %v3818_v26  ;;  %5929 = vmatmul.mubr.f32.gmra.mxu0 %v3429_v2  ;;  %v4019_v22 = vld [vmem:[%s8338_s2 + $0x50] sm:$0xff] }
 0x31b   : > { %6014 = vmatpush3.msra.mxu0 %v3818_v26  ;;  %6019 = vmatprep.mubr.f32.mxu0 %v7620_v3 }
 0x31c   : > { %6015 = vmatprep.subr.mxu0 %v3817_v13  ;;  %5985 = vmatmul.mubr.f32.gmra.mxu1 %v3622_v59 }
 0x31d   : > { %6016 = vmatpush3.msra.mxu0 %v3817_v13  ;;  %6043 = vmatprep.subr.mxu1 %v4024_v43  ;;  %v4018_v13 = vld [vmem:[%s8338_s2 + $0x48] sm:$0xff] }
 0x31e   : > { %6017 = vmatprep.subr.mxu0 %v3816_v44  ;;  %6044 = vmatpush3.msra.mxu1 %v4024_v43  ;;  %v4010_v43 = vld [vmem:[%s8338_s2 + $0x8] sm:$0xff] }
 0x31f   : > { %6018 = vmatpush3.msra.mxu0 %v3816_v44  ;;  %6045 = vmatprep.subr.mxu1 %v4023_v49 }
 0x320   : > { %6020 = vmatmul.mubr.f32.vlgmr.msra.gmra.mxu0 %v7633_v33  ;;  %6046 = vmatpush3.msra.mxu1 %v4023_v49  ;;  %v4009_v49 = vld [vmem:[%s8338_s2] sm:$0xff] }
 0x321   : > { %6022 = vmatprep.mubr.f32.mxu0 %v7640_v10  ;;  %6047 = vmatprep.subr.mxu1 %v4022_v37 }
 0x322   : > { %6048 = vmatpush3.msra.mxu1 %v4022_v37 }
 0x323   : > { %6049 = vmatprep.subr.mxu1 %v4021_v54 }
 0x324   : > { %6023 = vmatmul.mubr.f32.gmra.mxu0 %v7653_v36  ;;  %6050 = vmatpush3.msra.mxu1 %v4021_v54 }
 0x325   : > { %6025 = vmatprep.mubr.f32.mxu0 %v7660_v11  ;;  %6051 = vmatprep.subr.mxu1 %v4020_v0 }
 0x326   : > { %6052 = vmatpush3.msra.mxu1 %v4020_v0 }
 0x327   : > { %6053 = vmatprep.subr.mxu1 %v4019_v22 }
 0x328   : > { %6026 = vmatmul.mubr.f32.gmra.mxu0 %v7673_v7  ;;  %6054 = vmatpush3.msra.mxu1 %v4019_v22 }
 0x329   : > { %6028 = vmatprep.mubr.f32.mxu0 %v7825_v9  ;;  %6055 = vmatprep.subr.mxu1 %v4018_v13 }
 0x32a   : > { %6056 = vmatpush3.msra.mxu1 %v4018_v13 }
 0x32c   : > { %6029 = vmatmul.mubr.f32.gmra.mxu0 %v3807_v28 }
 0x32d   : > { %6031 = vmatprep.mubr.f32.mxu0 %v7699_v35  ;;  %v5573_v57 = vpop.f32.mrf.mxu0 }
 0x32f   : > { %v2418_v52 = vpop.f32.mrf.mxu0 }
 0x330   : > { %6032 = vmatmul.mubr.f32.gmra.mxu0 %v7712_v60  ;;  %v3815_v60 = vld [vmem:[#allocation2 + $0x132] sm:$0xff] }
 0x331   : > { %6034 = vmatprep.mubr.f32.mxu0 %v7719_v62  ;;  %v5576_v3 = vpop.f32.mrf.mxu0 }
 0x333   : > { %v2428_v33 = vpop.f32.mrf.mxu0 }
 0x334   : > { %6035 = vmatmul.mubr.f32.gmra.mxu0 %v7732_v47 }
 0x335   : > { %6037 = vmatprep.mubr.f32.mxu0 %v7739_v42  ;;  %v5629_v10 = vpop.f32.mrf.mxu1  ;;  %v5579_v35 = vpop.f32.mrf.mxu0 }
 0x336   : > { %v7977_v36 = vadd.f32 %v5629_v10, %v5573_v57  ;;  %v4017_v57 = vld [vmem:[%s8338_s2 + $0x40] sm:$0xff] }
 0x337   : > { %v2563_v11 = vpop.f32.mrf.mxu1  ;;  %v2438_v42 = vpop.f32.mrf.mxu0  ;;  %6057 = vmatprep.subr.mxu1 %v4017_v57 }
 0x338   : > { %6038 = vmatmul.mubr.f32.gmra.mxu0 %v7752_v5  ;;  %v7980_v7 = vadd.f32 %v2563_v11, %v2418_v52  ;;  %6058 = vmatpush3.msra.mxu1 %v4017_v57  ;;  %v4015_v11 = vld [vmem:[%s8338_s2 + $0x30] sm:$0xff] }
 0x339   : > { %6040 = vmatprep.mubr.f32.mxu0 %v7891_v40  ;;  %v5632_v9 = vpop.f32.mrf.mxu1 }
 0x33a   : > { %v7983_v62 = vadd.f32 %v5632_v9, %v5576_v3  ;;  %v4016_v3 = vld [vmem:[%s8338_s2 + $0x38] sm:$0xff] }
 0x33b   : > { %v2573_v23 = vpop.f32.mrf.mxu1  ;;  %6059 = vmatprep.subr.mxu1 %v4016_v3 }
 0x33c   : > { %6041 = vmatmul.mubr.f32.gmra.mxu0 %v3815_v60  ;;  %v7985_v47 = vadd.f32 %v2573_v23, %v2428_v33  ;;  %6060 = vmatpush3.msra.mxu1 %v4016_v3  ;;  %v4014_v23 = vld [vmem:[%s8338_s2 + $0x28] sm:$0xff] }
 0x33d   : > { %v5635_v51 = vpop.f32.mrf.mxu1  ;;  %6061 = vmatprep.subr.mxu1 %v4015_v11 }
 0x33e   : > { %v7987_v31 = vadd.f32 %v5635_v51, %v5579_v35  ;;  %6062 = vmatpush3.msra.mxu1 %v4015_v11  ;;  %v4013_v51 = vld [vmem:[%s8338_s2 + $0x20] sm:$0xff] }
 0x33f   : > { %v2583_v24 = vpop.f32.mrf.mxu1  ;;  %6063 = vmatprep.subr.mxu1 %v4014_v23 }
 0x340   : > { %v7989_v16 = vadd.f32 %v2583_v24, %v2438_v42  ;;  %v5582_v5 = vpop.f32.mrf.mxu0  ;;  %6064 = vmatpush3.msra.mxu1 %v4014_v23 }
 0x341   : > { %v5638_v18 = vpop.f32.mrf.mxu1  ;;  %6065 = vmatprep.subr.mxu1 %v4013_v51 }
 0x342   : > { %v7991_v48 = vadd.f32 %v5638_v18, %v5582_v5  ;;  %v2448_v40 = vpop.f32.mrf.mxu0  ;;  %6066 = vmatpush3.msra.mxu1 %v4013_v51 }
 0x343   : > { %v2593_v1 = vpop.f32.mrf.mxu1 }
 0x344   : > { %v7993_v45 = vadd.f32 %v2593_v1, %v2448_v40  ;;  %v4012_v40 = vld [vmem:[%s8338_s2 + $0x18] sm:$0xff] }
 0x345   : > { %6067 = vmatprep.subr.mxu1 %v4012_v40 }
 0x346   : > { %v5585_v53 = vpop.f32.mrf.mxu0  ;;  %6068 = vmatpush3.msra.mxu1 %v4012_v40 }
 0x347   : > { %v5641_v34 = vpop.f32.mrf.mxu1 }
 0x348   : > { %v7998_v21 = vadd.f32 %v5641_v34, %v5585_v53  ;;  %v2458_v20 = vpop.f32.mrf.mxu0 }
 0x349   : > { %v2603_v15 = vpop.f32.mrf.mxu1 }
 0x34a   : > { %v8003_v8 = vadd.f32 %v2603_v15, %v2458_v20 }
 0x34c   : > { %v5588_v6 = vpop.f32.mrf.mxu0 }
 0x34d   : > { %v5644_v19 = vpop.f32.mrf.mxu1 }
 0x34e   : > { %v8011_v61 = vadd.f32 %v5644_v19, %v5588_v6  ;;  %v2468_v50 = vpop.f32.mrf.mxu0 }
 0x34f   : > { %v2613_v46 = vpop.f32.mrf.mxu1 }
 0x350   : > { %v8016_v27 = vadd.f32 %v2613_v46, %v2468_v50 }
 0x352   : > { %v5591_v26 = vpop.f32.mrf.mxu0 }
 0x353   : > { %v5647_v2 = vpop.f32.mrf.mxu1 }
 0x354   : > { %v8024_v59 = vadd.f32 %v5647_v2, %v5591_v26  ;;  %v2478_v44 = vpop.f32.mrf.mxu0 }
 0x355   : > { %v2623_v28 = vpop.f32.mrf.mxu1 }
 0x356   : > { %v8029_v52 = vadd.f32 %v2623_v28, %v2478_v44 }
 0x358   : > { %v5594_v33 = vpop.f32.mrf.mxu0 }
 0x359   : > { %v5650_v10 = vpop.f32.mrf.mxu1 }
 0x35a   : > { %v8037_v35 = vadd.f32 %v5650_v10, %v5594_v33  ;;  %v2488_v60 = vpop.f32.mrf.mxu0 }
 0x35b   : > { %v2633_v9 = vpop.f32.mrf.mxu1 }
 0x35c   : > { %v8042_v42 = vadd.f32 %v2633_v9, %v2488_v60 }
 0x35e   : > { %v5685_v24 = vpop.f32.mrf.mxu0 }
 0x35f   : > { %v8048_v5 = vadd.f32 %v5685_v24, %v7977_v36  ;;  %v8050_v18 = vpop.f32.mrf.mxu1  ;;  %v4011_v36 = vld [vmem:[%s8338_s2 + $0x10] sm:$0xff] }
 0x360   : > { %v2740_v1 = vpop.f32.mrf.mxu0  ;;  %6069 = vmatprep.subr.mxu1 %v4011_v36 }
 0x361   : > { %v8056_v53 = vadd.f32 %v2740_v1, %v7980_v7  ;;  %v8058_v34 = vpop.f32.mrf.mxu1  ;;  %6070 = vmatpush3.msra.mxu1 %v4011_v36 }
 0x362   : > { %6071 = vmatprep.subr.mxu1 %v4010_v43 }
 0x363   : > { %6072 = vmatpush3.msra.mxu1 %v4010_v43 }
 0x364   : > { %v5688_v20 = vpop.f32.mrf.mxu0  ;;  %6073 = vmatprep.subr.mxu1 %v4009_v49 }
 0x365   : > { %v8067_v15 = vadd.f32 %v5688_v20, %v7983_v62  ;;  %v8069_v7 = vpop.f32.mrf.mxu1  ;;  %6074 = vmatpush3.msra.mxu1 %v4009_v49 }
 0x366   : > { %v2750_v37 = vpop.f32.mrf.mxu0 }
 0x367   : > { %v8075_v6 = vadd.f32 %v2750_v37, %v7985_v47  ;;  %v8077_v19 = vpop.f32.mrf.mxu1 }
 0x36a   : > { %v5691_v54 = vpop.f32.mrf.mxu0 }
 0x36b   : > { %v8080_v50 = vadd.f32 %v5691_v54, %v7987_v31  ;;  %v8082_v62 = vpop.f32.mrf.mxu1 }
 0x36c   : > { %v2760_v46 = vpop.f32.mrf.mxu0 }
 0x36d   : > { %v8085_v0 = vadd.f32 %v2760_v46, %v7989_v16  ;;  %v8087_v22 = vpop.f32.mrf.mxu1 }
 0x370   : > { %v5694_v26 = vpop.f32.mrf.mxu0 }
 0x371   : > { %v8090_v2 = vadd.f32 %v5694_v26, %v7991_v48  ;;  %v8092_v47 = vpop.f32.mrf.mxu1 }
 0x372   : > { %v2770_v13 = vpop.f32.mrf.mxu0 }
 0x373   : > { %v8095_v44 = vadd.f32 %v2770_v13, %v7993_v45  ;;  %v8097_v31 = vpop.f32.mrf.mxu1 }
 0x376   : > { %v5697_v28 = vpop.f32.mrf.mxu0 }
 0x377   : > { %v8100_v57 = vadd.f32 %v5697_v28, %v7998_v21  ;;  %v8102_v16 = vpop.f32.mrf.mxu1 }
 0x378   : > { %v2780_v3 = vpop.f32.mrf.mxu0 }
 0x379   : > { %v8105_v33 = vadd.f32 %v2780_v3, %v8003_v8  ;;  %v8107_v48 = vpop.f32.mrf.mxu1 }
 0x37c   : > { %v5700_v10 = vpop.f32.mrf.mxu0 }
 0x37d   : > { %v8110_v11 = vadd.f32 %v5700_v10, %v8011_v61  ;;  %v8112_v45 = vpop.f32.mrf.mxu1 }
 0x37e   : > { %8456 = vst [vmem:[#allocation13_spill] sm:$0xff] %v8112_v45  ;;  %v2790_v60 = vpop.f32.mrf.mxu0 }
 0x37f   : > { %8455 = vst [vmem:[#allocation10_spill] sm:$0xff] %v8110_v11  ;;  %v8115_v9 = vadd.f32 %v2790_v60, %v8016_v27  ;;  %v8117_v21 = vpop.f32.mrf.mxu1 }
 0x380   : > { %8458 = vst [vmem:[#allocation12_spill] sm:$0xff] %v8117_v21 }
 0x381   : > { %8457 = vst [vmem:[#allocation42_spill] sm:$0xff] %v8115_v9  ;;  %v3012_v9 = vadd.f32 %v8058_v34, %v8056_v53  ;;  %v3017_v34 = vadd.f32 %v8082_v62, %v8080_v50 }
 0x382   : > { %v5703_v23 = vpop.f32.mrf.mxu0 }
 0x383   : > { %v8120_v51 = vadd.f32 %v5703_v23, %v8024_v59  ;;  %v8122_v8 = vpop.f32.mrf.mxu1 }
 0x384   : > { %8460 = vst [vmem:[#allocation24_spill] sm:$0xff] %v8122_v8  ;;  %v2800_v24 = vpop.f32.mrf.mxu0 }
 0x385   : > { %8459 = vst [vmem:[#allocation23_spill] sm:$0xff] %v8120_v51  ;;  %v8125_v40 = vadd.f32 %v2800_v24, %v8029_v52  ;;  %v8127_v61 = vpop.f32.mrf.mxu1 }
 0x386   : > { %8462 = vst [vmem:[#allocation26_spill] sm:$0xff] %v8127_v61 }
 0x387   : > { %8461 = vst [vmem:[#allocation25_spill] sm:$0xff] %v8125_v40 }
 0x388   : > { %v5706_v1 = vpop.f32.mrf.mxu0 }
 0x389   : > { %v8130_v36 = vadd.f32 %v5706_v1, %v8037_v35  ;;  %v8132_v27 = vpop.f32.mrf.mxu1 }
 0x38a   : > { %8464 = vst [vmem:[#allocation43_spill] sm:$0xff] %v8132_v27  ;;  %v2810_v43 = vpop.f32.mrf.mxu0 }
 0x38b   : > { %8463 = vst [vmem:[#allocation14_spill] sm:$0xff] %v8130_v36  ;;  %v8135_v20 = vadd.f32 %v2810_v43, %v8042_v42  ;;  %v8137_v59 = vpop.f32.mrf.mxu1 }
 0x38c   : > { %8466 = vst [vmem:[#allocation27_spill] sm:$0xff] %v8137_v59 }
 0x38d   : > { %8465 = vst [vmem:[#allocation16_spill] sm:$0xff] %v8135_v20 }
 0x38e   : > { %v5797_v49 = vpop.f32.mrf.mxu0 }
 0x38f   : > { %v5853_v37 = vpop.f32.mrf.mxu1 }
 0x390   : > { %v3126_v54 = vpop.f32.mrf.mxu0 }
 0x391   : > { %v3319_v46 = vpop.f32.mrf.mxu1 }
 0x394   : > { %v5800_v52 = vpop.f32.mrf.mxu0 }
 0x395   : > { %v8139_v26 = vpop.f32.mrf.mxu1 }
 0x396   : > { %v3136_v13 = vpop.f32.mrf.mxu0 }
 0x397   : > { %v8141_v28 = vpop.f32.mrf.mxu1 }
 0x39a   : > { %v8143_v35 = vpop.f32.mrf.mxu0 }
 0x39b   : > { %v8145_v3 = vpop.f32.mrf.mxu1 }
 0x39c   : > { %v8147_v10 = vpop.f32.mrf.mxu0 }
 0x39d   : > { %v8149_v42 = vpop.f32.mrf.mxu1 }
 0x3a0   : > { %v8151_v60 = vpop.f32.mrf.mxu0 }
 0x3a1   : > { %v8153_v23 = vpop.f32.mrf.mxu1 }
 0x3a2   : > { %v8155_v24 = vpop.f32.mrf.mxu0 }
 0x3a3   : > { %v8157_v1 = vpop.f32.mrf.mxu1 }
 0x3a6   : > { %v8159_v43 = vpop.f32.mrf.mxu0 }
 0x3a7   : > { %v8161_v56 = vpop.f32.mrf.mxu1 }
 0x3a8   : > { %8467 = vst [vmem:[#allocation28_spill] sm:$0xff] %v8161_v56  ;;  %v8163_v17 = vpop.f32.mrf.mxu0 }
 0x3a9   : > { %v8165_v38 = vpop.f32.mrf.mxu1 }
 0x3aa   : > { %8468 = vst [vmem:[#allocation29_spill] sm:$0xff] %v8165_v38  ;;  %v3013_v38 = vadd.f32 %v8050_v18, %v8048_v5  ;;  %v3014_v5 = vadd.f32 %v8077_v19, %v8075_v6  ;;  %v3210_v19 = vadd.f32 %v8143_v35, %v3017_v34  ;;  %v8493_v34 = vld [vmem:[#allocation12_spill] sm:$0xff] }
 0x3ac   : > { %v8167_v29 = vpop.f32.mrf.mxu0 }
 0x3ad   : > { %8469 = vst [vmem:[#allocation30_spill] sm:$0xff] %v8167_v29  ;;  %v8169_v25 = vpop.f32.mrf.mxu1 }
 0x3ae   : > { %8470 = vst [vmem:[#allocation15_spill] sm:$0xff] %v8169_v25  ;;  %v8171_v14 = vpop.f32.mrf.mxu0 }
 0x3af   : > { %8471 = vst [vmem:[#allocation17_spill] sm:$0xff] %v8171_v14  ;;  %v8173_v4 = vpop.f32.mrf.mxu1 }
 0x3b0   : > { %8472 = vst [vmem:[#allocation18_spill] sm:$0xff] %v8173_v4 }
 0x3b2   : > { %v8175_v63 = vpop.f32.mrf.mxu0 }
 0x3b3   : > { %8473 = vst [vmem:[#allocation31_spill] sm:$0xff] %v8175_v63  ;;  %v8177_v39 = vpop.f32.mrf.mxu1 }
 0x3b4   : > { %8474 = vst [vmem:[#allocation32_spill] sm:$0xff] %v8177_v39  ;;  %v8179_v55 = vpop.f32.mrf.mxu0 }
 0x3b5   : > { %8475 = vst [vmem:[#allocation33_spill] sm:$0xff] %v8179_v55  ;;  %v8181_v58 = vpop.f32.mrf.mxu1 }
 0x3b6   : > { %8476 = vst [vmem:[#allocation34_spill] sm:$0xff] %v8181_v58 }
 0x3b8   : > { %v8183_v30 = vpop.f32.mrf.mxu0 }
 0x3b9   : > { %8477 = vst [vmem:[#allocation35_spill] sm:$0xff] %v8183_v30  ;;  %v8185_v41 = vpop.f32.mrf.mxu1 }
 0x3ba   : > { %8478 = vst [vmem:[#allocation36_spill] sm:$0xff] %v8185_v41  ;;  %v8187_v32 = vpop.f32.mrf.mxu0 }
 0x3bb   : > { %8479 = vst [vmem:[#allocation44_spill] sm:$0xff] %v8187_v32  ;;  %v8189_v12 = vpop.f32.mrf.mxu1 }
 0x3bc   : > { %8480 = vst [vmem:[#allocation45_spill] sm:$0xff] %v8189_v12 }
 0x3be   : > { %v5909_v59 = vpop.f32.mrf.mxu0 }
 0x3bf   : > { %v5965_v20 = vpop.f32.mrf.mxu1 }
 0x3c0   : > { %v3512_v27 = vpop.f32.mrf.mxu0 }
 0x3c1   : > { %v3705_v36 = vpop.f32.mrf.mxu1 }
 0x3c2   : > { %v5912_v4 = vpop.f32.mrf.mxu0 }
 0x3c3   : > { %v5968_v61 = vpop.f32.mrf.mxu1 }
 0x3c4   : > { %v3522_v63 = vpop.f32.mrf.mxu0 }
 0x3c5   : > { %v3715_v55 = vpop.f32.mrf.mxu1 }
 0x3c6   : > { %v5915_v39 = vpop.f32.mrf.mxu0 }
 0x3c7   : > { %v5971_v30 = vpop.f32.mrf.mxu1 }
 0x3c8   : > { %v3532_v40 = vpop.f32.mrf.mxu0 }
 0x3c9   : > { %v3725_v12 = vpop.f32.mrf.mxu1 }
 0x3ca   : > { %v8191_v25 = vpop.f32.mrf.mxu0 }
 0x3cb   : > { %v8203_v14 = vpop.f32.mrf.mxu1 }
 0x3cc   : > { %v8193_v58 = vpop.f32.mrf.mxu0  ;;  %8485 = vst [vmem:[#allocation50_spill] sm:$0xff] %v8203_v14 }
 0x3cd   : > { %v8213_v56 = vpop.f32.mrf.mxu1 }
 0x3ce   : > { %v8195_v41 = vpop.f32.mrf.mxu0 }
 0x3cf   : > { %8481 = vst [vmem:[#allocation46_spill] sm:$0xff] %v8195_v41  ;;  %v3206_v41 = vadd.f32 %v5797_v49, %v3013_v38  ;;  %v8223_v11 = vpop.f32.mrf.mxu1  ;;  %v3207_v38 = vadd.f32 %v3136_v13, %v3014_v5 }
 0x3d0   : > { %v8197_v32 = vpop.f32.mrf.mxu0 }
 0x3d1   : > { %8482 = vst [vmem:[#allocation47_spill] sm:$0xff] %v8197_v32  ;;  %v3399_v14 = vadd.f32 %v5853_v37, %v3206_v41  ;;  %v3016_v41 = vadd.f32 %v8087_v22, %v8085_v0 }
 0x3d2   : > { %v8199_v8 = vpop.f32.mrf.mxu0 }
 0x3d3   : > { %8483 = vst [vmem:[#allocation48_spill] sm:$0xff] %v8199_v8  ;;  %v3205_v8 = vadd.f32 %v3126_v54, %v3012_v9 }
 0x3d4   : > { %v8201_v51 = vpop.f32.mrf.mxu0 }
 0x3d5   : > { %8484 = vst [vmem:[#allocation49_spill] sm:$0xff] %v8201_v51  ;;  %v3015_v51 = vadd.f32 %v8069_v7, %v8067_v15  ;;  %v3398_v18 = vadd.f32 %v3319_v46, %v3205_v8  ;;  %v3400_v7 = vadd.f32 %v8141_v28, %v3207_v38  ;;  %v8491_v38 = vld [vmem:[#allocation50_spill] sm:$0xff] }
 0x3d6   : > { %v8205_v29 = vpop.f32.mrf.mxu0 }
 0x3d7   : > { %8486 = vst [vmem:[#allocation51_spill] sm:$0xff] %v8205_v29  ;;  %v3592_v29 = vadd.f32 %v5909_v59, %v3399_v14  ;;  %v3591_v53 = vadd.f32 %v3512_v27, %v3398_v18  ;;  %v3209_v59 = vadd.f32 %v8147_v10, %v3016_v41  ;;  %v3593_v50 = vadd.f32 %v3522_v63, %v3400_v7  ;;  %v8488_v18 = vld [vmem:[#allocation10_spill] sm:$0xff] }
 0x3d8   : > { %v8209_v21 = vpop.f32.mrf.mxu0 }
 0x3d9   : > { %8487 = vst [vmem:[#allocation52_spill] sm:$0xff] %v8209_v21  ;;  %v3208_v21 = vadd.f32 %v5800_v52, %v3015_v51  ;;  %v3785_v49 = vadd.f32 %v5965_v20, %v3592_v29  ;;  %v3784_v6 = vadd.f32 %v3705_v36, %v3591_v53  ;;  %v8232_v51 = vpop.f32.mrf.mxu1  ;;  %v3019_v29 = vadd.f32 %v8092_v47, %v8090_v2 }
 0x3da   : > { %v8215_v32 = vpop.f32.mrf.mxu0  ;;  %v3018_v36 = vadd.f32 %v8097_v31, %v8095_v44  ;;  %v3786_v20 = vadd.f32 %v3715_v55, %v3593_v50  ;;  %v3021_v44 = vadd.f32 %v8102_v16, %v8100_v57  ;;  %v8497_v50 = vld [vmem:[#allocation17_spill] sm:$0xff] }
 0x3db   : > { %v3401_v9 = vadd.f32 %v8139_v26, %v3208_v21  ;;  %v3403_v21 = vadd.f32 %v8145_v3, %v3210_v19  ;;  %v3212_v54 = vadd.f32 %v8151_v60, %v3019_v29  ;;  %v8242_v52 = vpop.f32.mrf.mxu1  ;;  %v8498_v29 = vld [vmem:[#allocation47_spill] sm:$0xff] }
 0x3dc   : > { %v8219_v45 = vpop.f32.mrf.mxu0  ;;  %v3211_v2 = vadd.f32 %v8155_v24, %v3018_v36  ;;  %v8500_v36 = vld [vmem:[#allocation24_spill] sm:$0xff] }
 0x3dd   : > { %v3594_v14 = vadd.f32 %v5912_v4, %v3401_v9  ;;  %v3402_v4 = vadd.f32 %v8149_v42, %v3209_v59  ;;  %v3596_v46 = vadd.f32 %v5915_v39, %v3403_v21  ;;  %v3405_v31 = vadd.f32 %v8153_v23, %v3212_v54  ;;  %v3755_v60 = vpop.f32.mrf.mxu1 }
 0x3de   : > { %v3020_v39 = vadd.f32 %v8107_v48, %v8105_v33  ;;  %v3404_v35 = vadd.f32 %v8157_v1, %v3211_v2  ;;  %v3214_v42 = vadd.f32 %v8159_v43, %v3021_v44  ;;  %v8489_v33 = vld [vmem:[#allocation13_spill] sm:$0xff]  ;;  %v8490_v1 = vld [vmem:[#allocation28_spill] sm:$0xff]  ;;  %v8505_v44 = vld [vmem:[#allocation31_spill] sm:$0xff] }
 0x3df   : > { %v3787_v0 = vadd.f32 %v5968_v61, %v3594_v14  ;;  %v3595_v47 = vadd.f32 %v3532_v40, %v3402_v4  ;;  %v3789_v55 = vadd.f32 %v5971_v30, %v3596_v46  ;;  %v3598_v40 = vadd.f32 %v8191_v25, %v3405_v31  ;;  %v8492_v25 = vld [vmem:[#allocation42_spill] sm:$0xff]  ;;  %v5983_v14 = vpop.f32.mrf.mxu1  ;;  %v8502_v46 = vld [vmem:[#allocation25_spill] sm:$0xff] }
 0x3e0   : > { %v6021_v15 = vpop.f32.mrf.mxu0  ;;  %v3213_v16 = vadd.f32 %v8163_v17, %v3020_v39  ;;  %v3597_v30 = vadd.f32 %v8193_v58, %v3404_v35  ;;  %v3023_v48 = vadd.f32 %v8489_v33, %v8488_v18  ;;  %v3022_v9 = vadd.f32 %v8493_v34, %v8492_v25  ;;  %v8495_v58 = vld [vmem:[#allocation30_spill] sm:$0xff]  ;;  %v8515_v34 = vld [vmem:[#allocation35_spill] sm:$0xff] }
 0x3e1   : > { %v3978_v8 = vadd.f32 %v6021_v15, %v3785_v49  ;;  %v3788_v3 = vadd.f32 %v3725_v12, %v3595_v47  ;;  %v3407_v12 = vadd.f32 %v8490_v1, %v3214_v42  ;;  %v3791_v53 = vadd.f32 %v8491_v38, %v3598_v40  ;;  %v8494_v49 = vld [vmem:[#allocation29_spill] sm:$0xff]  ;;  %v3765_v39 = vpop.f32.mrf.mxu1  ;;  %v8513_v1 = vld [vmem:[#allocation27_spill] sm:$0xff]  ;;  %v8514_v38 = vld [vmem:[#allocation34_spill] sm:$0xff] }
 0x3e2   : > { %v3898_v27 = vpop.f32.mrf.mxu0  ;;  %v3406_v15 = vadd.f32 %v8494_v49, %v3213_v16  ;;  %v3790_v17 = vadd.f32 %v8213_v56, %v3597_v30  ;;  %v3216_v7 = vadd.f32 %v8495_v58, %v3023_v48  ;;  %v8507_v42 = vld [vmem:[#allocation33_spill] sm:$0xff]  ;;  %v8510_v16 = vld [vmem:[#allocation43_spill] sm:$0xff]  ;;  %v8512_v48 = vld [vmem:[#allocation16_spill] sm:$0xff] }
 0x3e3   : > { %v3977_v62 = vadd.f32 %v3898_v27, %v3784_v6  ;;  %v3994_v63 = vmax.f32 %v3978_v8, 0.0  ;;  %v8496_v6 = vld [vmem:[#allocation46_spill] sm:$0xff]  ;;  %v8508_v40 = vld [vmem:[#allocation49_spill] sm:$0xff]  ;;  %v8516_v49 = vld [vmem:[#allocation51_spill] sm:$0xff] }
 0x3e4   : > { %v6024_v22 = vpop.f32.mrf.mxu0  ;;  %v3600_v19 = vadd.f32 %v8496_v6, %v3407_v12  ;;  %v3599_v21 = vadd.f32 %v8498_v29, %v3406_v15  ;;  %v3026_v12 = vadd.f32 %v8513_v1, %v8512_v48  ;;  %v8517_v6 = vld [vmem:[#allocation44_spill] sm:$0xff] }
 0x3e5   : > { %v3993_v37 = vmax.f32 %v3977_v62, 0.0  ;;  %v3980_v26 = vadd.f32 %v6024_v22, %v3787_v0  ;;  %v3215_v62 = vadd.f32 %v8497_v50, %v3022_v9  ;;  %v8499_v22 = vld [vmem:[#allocation23_spill] sm:$0xff] }
 0x3e6   : > { %v3908_v13 = vpop.f32.mrf.mxu0  ;;  %v3025_v4 = vadd.f32 %v8500_v36, %v8499_v22  ;;  %v3792_v47 = vadd.f32 %v8232_v51, %v3599_v21 }
 0x3e7   : > { %v3979_v61 = vadd.f32 %v3908_v13, %v3786_v20  ;;  %6075 = vmatprep.mubr.f32.mxu1 %v3993_v37  ;;  %v3996_v24 = vmax.f32 %v3980_v26, 0.0  ;;  %v8501_v20 = vld [vmem:[#allocation15_spill] sm:$0xff]  ;;  %v3793_v37 = vadd.f32 %v8223_v11, %v3600_v19  ;;  %v8504_v13 = vld [vmem:[#allocation18_spill] sm:$0xff]  ;;  %v3219_v19 = vadd.f32 %v8517_v6, %v3026_v12 }
 0x3e8   : > { %v6027_v28 = vpop.f32.mrf.mxu0  ;;  %6076 = vmatmul.mubr.f32.vlgmr.msra.gmra.mxu1 %v3994_v63  ;;  %v3409_v56 = vadd.f32 %v8501_v20, %v3216_v7  ;;  %v8503_v63 = vld [vmem:[#allocation26_spill] sm:$0xff]  ;;  %v3408_v2 = vadd.f32 %v8504_v13, %v3215_v62  ;;  %v3218_v31 = vadd.f32 %v8505_v44, %v3025_v4  ;;  %v8526_v12 = vld [vmem:[#allocation39_spill] sm:$0xff] }
 0x3e9   : > { %v3995_v10 = vmax.f32 %v3979_v61, 0.0  ;;  %v3982_v5 = vadd.f32 %v6027_v28, %v3789_v55  ;;  %v3024_v26 = vadd.f32 %v8503_v63, %v8502_v46  ;;  %v8506_v55 = vld [vmem:[#allocation48_spill] sm:$0xff] }
 0x3ea   : > { %v3918_v57 = vpop.f32.mrf.mxu0  ;;  %v3602_v28 = vadd.f32 %v8506_v55, %v3409_v56 }
 0x3eb   : > { %v3981_v23 = vadd.f32 %v3918_v57, %v3788_v3  ;;  %6078 = vmatprep.mubr.f32.mxu1 %v3995_v10  ;;  %v3998_v8 = vmax.f32 %v3982_v5, 0.0  ;;  %v3217_v11 = vadd.f32 %v8507_v42, %v3024_v26  ;;  %v8509_v57 = vld [vmem:[#allocation14_spill] sm:$0xff] }
 0x3ec   : > { %v6030_v43 = vpop.f32.mrf.mxu0  ;;  %6079 = vmatmul.mubr.f32.gmra.mxu1 %v3996_v24  ;;  %v3601_v24 = vadd.f32 %v8508_v40, %v3408_v2  ;;  %v3027_v30 = vadd.f32 %v8510_v16, %v8509_v57  ;;  %v3795_v18 = vadd.f32 %v8242_v52, %v3602_v28  ;;  %v8518_v52 = vld [vmem:[#allocation52_spill] sm:$0xff]  ;;  %v8523_v40 = vld [vmem:[#allocation37_spill] sm:$0xff]  ;;  %v8524_v16 = vld [vmem:[#allocation38_spill] sm:$0xff] }
 0x3ed   : > { %v3997_v41 = vmax.f32 %v3981_v23, 0.0  ;;  %v3984_v27 = vadd.f32 %v6030_v43, %v3791_v53  ;;  %v8511_v23 = vld [vmem:[#allocation32_spill] sm:$0xff]  ;;  %v3410_v53 = vadd.f32 %v8514_v38, %v3217_v11 }
 0x3ee   : > { %v3928_v59 = vpop.f32.mrf.mxu0  ;;  %v3411_v51 = vadd.f32 %v8511_v23, %v3218_v31  ;;  %v3794_v43 = vadd.f32 %v3755_v60, %v3601_v24  ;;  %v3220_v9 = vadd.f32 %v8515_v34, %v3027_v30  ;;  %v8520_v60 = vld [vmem:[#allocation45_spill] sm:$0xff] }
 0x3ef   : > { %v3983_v0 = vadd.f32 %v3928_v59, %v3790_v17  ;;  %6081 = vmatprep.mubr.f32.mxu1 %v3997_v41  ;;  %v4000_v35 = vmax.f32 %v3984_v27, 0.0  ;;  %v5986_v17 = vpop.f32.mrf.mxu1  ;;  %v8519_v59 = vld [vmem:[#allocation36_spill] sm:$0xff]  ;;  %v3412_v21 = vadd.f32 %v8520_v60, %v3219_v19 }
 0x3f0   : > { %v6033_v54 = vpop.f32.mrf.mxu0  ;;  %6082 = vmatmul.mubr.f32.gmra.mxu1 %v3998_v8  ;;  %v3604_v15 = vadd.f32 %v8516_v49, %v3411_v51  ;;  %v3603_v8 = vadd.f32 %v8518_v52, %v3410_v53  ;;  %v3413_v50 = vadd.f32 %v8519_v59, %v3220_v9 }
 0x3f1   : > { %v3999_v61 = vmax.f32 %v3983_v0, 0.0  ;;  %v3986_v3 = vadd.f32 %v6033_v54, %v3793_v37  ;;  %v3775_v4 = vpop.f32.mrf.mxu1  ;;  %v3605_v54 = vadd.f32 %v8219_v45, %v3412_v21  ;;  %v8521_v45 = vld [vmem:[#allocation4_spill] sm:$0xff] }
 0x3f2   : > { %v3938_v10 = vpop.f32.mrf.mxu0  ;;  %v3797_v62 = vadd.f32 %v5983_v14, %v3604_v15  ;;  %v3796_v0 = vadd.f32 %v3765_v39, %v3603_v8  ;;  %v3606_v36 = vadd.f32 %v8215_v32, %v3413_v50  ;;  %v8528_v15 = vld [vmem:[#allocation20_spill] sm:$0xff] }
 0x3f3   : > { %v3985_v5 = vadd.f32 %v3938_v10, %v3792_v47  ;;  %6084 = vmatprep.mubr.f32.mxu1 %v3999_v61  ;;  %v4002_v41 = vmax.f32 %v3986_v3, 0.0  ;;  %v3798_v14 = vadd.f32 %v3775_v4, %v3605_v54  ;;  %v8522_v3 = vld [vmem:[#allocation7_spill] sm:$0xff]  ;;  %v8530_v8 = vld [vmem:[#allocation8_spill] sm:$0xff] }
 0x3f4   : > { %v6036_v33 = vpop.f32.mrf.mxu0  ;;  %6085 = vmatmul.mubr.f32.gmra.mxu1 %v4000_v35  ;;  %v3799_v63 = vadd.f32 %v5986_v17, %v3606_v36 }
 0x3f5   : > { %v4001_v25 = vmax.f32 %v3985_v5, 0.0  ;;  %v3988_v58 = vadd.f32 %v6036_v33, %v3795_v18  ;;  %v8525_v18 = vld [vmem:[#allocation5_spill] sm:$0xff] }
 0x3f6   : > { %v3948_v7 = vpop.f32.mrf.mxu0 }
 0x3f7   : > { %v3987_v27 = vadd.f32 %v3948_v7, %v3794_v43  ;;  %6087 = vmatprep.mubr.f32.mxu1 %v4001_v25  ;;  %v4004_v20 = vmax.f32 %v3988_v58, 0.0  ;;  %v8527_v25 = vld [vmem:[#allocation19_spill] sm:$0xff]  ;;  %v8529_v7 = vld [vmem:[#allocation6_spill] sm:$0xff] }
 0x3f8   : > { %v6039_v29 = vpop.f32.mrf.mxu0  ;;  %6088 = vmatmul.mubr.f32.gmra.mxu1 %v4002_v41 }
 0x3f9   : > { %v4003_v22 = vmax.f32 %v3987_v27, 0.0  ;;  %v3990_v56 = vadd.f32 %v6039_v29, %v3797_v62  ;;  %v8531_v62 = vld [vmem:[#allocation21_spill] sm:$0xff] }
 0x3fa   : > { %v3958_v37 = vpop.f32.mrf.mxu0 }
 0x3fb   : > { %v3989_v46 = vadd.f32 %v3958_v37, %v3796_v0  ;;  %6090 = vmatprep.mubr.f32.mxu1 %v4003_v22  ;;  %v4006_v2 = vmax.f32 %v3990_v56, 0.0  ;;  %v8532_v0 = vld [vmem:[#allocation22_spill] sm:$0xff] }
 0x3fc   : > { %v6042_v26 = vpop.f32.mrf.mxu0  ;;  %6091 = vmatmul.mubr.f32.gmra.mxu1 %v4004_v20  ;;  %v8533_v20 = vld [vmem:[#allocation9_spill] sm:$0xff] }
 0x3fd   : > { %v4005_v13 = vmax.f32 %v3989_v46, 0.0  ;;  %v3992_v47 = vadd.f32 %v6042_v26, %v3799_v63  ;;  %v8534_v46 = vld [vmem:[#allocation11_spill] sm:$0xff] }
 0x3fe   : > { %v3968_v61 = vpop.f32.mrf.mxu0 }
 0x3ff   : > { %v3991_v44 = vadd.f32 %v3968_v61, %v3798_v14  ;;  %6093 = vmatprep.mubr.f32.mxu1 %v4005_v13  ;;  %v4008_v31 = vmax.f32 %v3992_v47, 0.0  ;;  %v8535_v13 = vld [vmem:[#allocation41_spill] sm:$0xff] }
 0x400   : > { %6094 = vmatmul.mubr.f32.gmra.mxu1 %v4006_v2 }
 0x401   : > { %v4007_v32 = vmax.f32 %v3991_v44, 0.0  ;;  %v8536_v44 = vld [vmem:[#allocation40_spill] sm:$0xff] }
 0x403   : > { %6096 = vmatprep.mubr.f32.mxu1 %v4007_v32 }
 0x404   : > { %6097 = vmatmul.mubr.f32.gmra.mxu1 %v4008_v31 }
 0x4a8   : > { %v6077_v55 = vpop.f32.mrf.mxu1 }
 0x4a9   : > { %v4187_v28 = vadd.f32 %v6077_v55, %v8521_v45 }
 0x4aa   : > { %v4091_v39 = vpop.f32.mrf.mxu1 }
 0x4ab   : > { %v4235_v35 = vmax.f32 %v4187_v28, 0.0  ;;  %v4186_v10 = vadd.f32 %v4091_v39, %v8522_v3 }
 0x4ac   : > { %v6080_v42 = vpop.f32.mrf.mxu1 }
 0x4ad   : > { %4251 = vst [vmem:[%s8300_s28 + $0x8] sm:$0xff] %v4235_v35  ;;  %v4234_v11 = vmax.f32 %v4186_v10, 0.0  ;;  %v4189_v24 = vadd.f32 %v6080_v42, %v8523_v40 }
 0x4ae   : > { %v4101_v5 = vpop.f32.mrf.mxu1 }
 0x4af   : > { %4250 = vst [vmem:[%s8300_s28] sm:$0xff] %v4234_v11  ;;  %v4237_v57 = vmax.f32 %v4189_v24, 0.0  ;;  %v4188_v30 = vadd.f32 %v4101_v5, %v8524_v16 }
 0x4b0   : > { %v6083_v23 = vpop.f32.mrf.mxu1 }
 0x4b1   : > { %4253 = vst [vmem:[%s8300_s28 + $0x18] sm:$0xff] %v4237_v57  ;;  %v4236_v51 = vmax.f32 %v4188_v30, 0.0  ;;  %v4191_v33 = vadd.f32 %v6083_v23, %v8525_v18 }
 0x4b2   : > { %v4111_v48 = vpop.f32.mrf.mxu1 }
 0x4b3   : > { %4252 = vst [vmem:[%s8300_s28 + $0x10] sm:$0xff] %v4236_v51  ;;  %v4239_v1 = vmax.f32 %v4191_v33, 0.0  ;;  %v4190_v38 = vadd.f32 %v4111_v48, %v8526_v12 }
 0x4b4   : > { %v6086_v53 = vpop.f32.mrf.mxu1 }
 0x4b5   : > { %4255 = vst [vmem:[%s8300_s28 + $0x28] sm:$0xff] %v4239_v1  ;;  %v4238_v43 = vmax.f32 %v4190_v38, 0.0  ;;  %v4193_v34 = vadd.f32 %v6086_v53, %v8527_v25 }
 0x4b6   : > { %v4121_v9 = vpop.f32.mrf.mxu1 }
 0x4b7   : > { %4254 = vst [vmem:[%s8300_s28 + $0x20] sm:$0xff] %v4238_v43  ;;  %v4241_v49 = vmax.f32 %v4193_v34, 0.0  ;;  %v4192_v17 = vadd.f32 %v4121_v9, %v8528_v15 }
 0x4b8   : > { %v6089_v41 = vpop.f32.mrf.mxu1 }
 0x4b9   : > { %4257 = vst [vmem:[%s8300_s28 + $0x38] sm:$0xff] %v4241_v49  ;;  %v4240_v58 = vmax.f32 %v4192_v17, 0.0  ;;  %v4195_v6 = vadd.f32 %v6089_v41, %v8529_v7 }
 0x4ba   : > { %v4131_v19 = vpop.f32.mrf.mxu1 }
 0x4bb   : > { %4256 = vst [vmem:[%s8300_s28 + $0x30] sm:$0xff] %v4240_v58  ;;  %v4243_v52 = vmax.f32 %v4195_v6, 0.0  ;;  %v4194_v27 = vadd.f32 %v4131_v19, %v8530_v8 }
 0x4bc   : > { %v6092_v59 = vpop.f32.mrf.mxu1 }
 0x4bd   : > { %4259 = vst [vmem:[%s8300_s28 + $0x48] sm:$0xff] %v4243_v52  ;;  %v4242_v50 = vmax.f32 %v4194_v27, 0.0  ;;  %v4197_v29 = vadd.f32 %v6092_v59, %v8531_v62 }
 0x4be   : > { %v4141_v60 = vpop.f32.mrf.mxu1 }
 0x4bf   : > { %4258 = vst [vmem:[%s8300_s28 + $0x40] sm:$0xff] %v4242_v50  ;;  %v4245_v21 = vmax.f32 %v4197_v29, 0.0  ;;  %v4196_v22 = vadd.f32 %v4141_v60, %v8532_v0 }
 0x4c0   : > { %v6095_v36 = vpop.f32.mrf.mxu1 }
 0x4c1   : > { %4261 = vst [vmem:[%s8300_s28 + $0x58] sm:$0xff] %v4245_v21  ;;  %v4244_v4 = vmax.f32 %v4196_v22, 0.0  ;;  %v4199_v56 = vadd.f32 %v6095_v36, %v8533_v20 }
 0x4c2   : > { %v4151_v37 = vpop.f32.mrf.mxu1 }
 0x4c3   : > { %4260 = vst [vmem:[%s8300_s28 + $0x50] sm:$0xff] %v4244_v4  ;;  %v4247_v54 = vmax.f32 %v4199_v56, 0.0  ;;  %v4198_v63 = vadd.f32 %v4151_v37, %v8534_v46 }
 0x4c4   : > { %v6098_v26 = vpop.f32.mrf.mxu1 }
 0x4c5   : > { %4263 = vst [vmem:[%s8300_s28 + $0x68] sm:$0xff] %v4247_v54  ;;  %v4246_v14 = vmax.f32 %v4198_v63, 0.0  ;;  %v4201_v2 = vadd.f32 %v6098_v26, %v8535_v13 }
 0x4c6   : > { %v4161_v47 = vpop.f32.mrf.mxu1 }
 0x4c7   : > { %4262 = vst [vmem:[%s8300_s28 + $0x60] sm:$0xff] %v4246_v14  ;;  %v4249_v61 = vmax.f32 %v4201_v2, 0.0  ;;  %v4200_v32 = vadd.f32 %v4161_v47, %v8536_v44 }
 0x4c9   : > { %4265 = vst [vmem:[%s8300_s28 + $0x78] sm:$0xff] %v4249_v61  ;;  %v4248_v31 = vmax.f32 %v4200_v32, 0.0 }
 0x4cb   : > { %4264 = vst [vmem:[%s8300_s28 + $0x70] sm:$0xff] %v4248_v31 }
 0x4cc PF: > { %s13_s12 = sadd.s32 1, %s6130_s12  }
 0x4cd   : > { %p10_p4 = scmp.ge.s32.totalorder %s13_s12, 4  }
 0x4cf   :  { %12 = sbr.rel (!%p10_p4) target bundleno = 1 (0x1), region = 65 }

</bundles_post_ra>
